<compile_context>
chip_gen: v5e
topology: v5e:2x2
jax: 0.10.0
libtpu: 0.0.40
codegen_flags: <defaults>
</compile_context>

<pallas_src>
import jax
import jax.numpy as jnp
from jax.experimental import pallas as pl
from jax.experimental.pallas import tpu as pltpu

LATENT_DIMS = 2
IN_FEATURES = 784      # 1 * 28 * 28
HIDDEN = 512
HEADS = 128            # fused (mu || log-sigma) head width: cols 0:2 = mu, 2:4 = log-sigma


def _ceil_div(a, b):
    return -(-a // b)


def _round_up(a, m):
    return _ceil_div(a, m) * m


def _choose_tile(batch, max_tile=512, min_steps=2):
    """Batch tile: multiple of 8, <= max_tile, >= min_steps grid steps when the batch
    is big enough (v7x megacore), padding waste capped at < 8 rows per step."""
    b8 = _round_up(batch, 8)
    steps = max(_ceil_div(b8, max_tile), min(min_steps, b8 // 8), 1)
    tm = _round_up(_ceil_div(b8, steps), 8)
    return tm, _ceil_div(b8, tm) * tm


def vae_kernel(x_ref, eps_ref,
               w1_ref, b1_ref, wh_ref, bh_ref,
               wd1_ref, bd1_ref, wd2_ref, bd2_ref,
               out_ref):
    f32, bf16 = jnp.float32, jnp.bfloat16

    # ---- encoder: h = relu(x @ W1 + b1)  (bf16 MXU operands, f32 accum/VPU) ----
    x = x_ref[...].astype(bf16)                       # cast in-kernel; no wrapper pass
    h = jnp.dot(x, w1_ref[...], preferred_element_type=f32) + b1_ref[...]
    h = jnp.maximum(h, 0.0)
    hb = h.astype(bf16)

    # ---- fused latent heads: single N=128 matmul; cols 0:2 = mu, 2:4 = log-sigma ----
    heads = jnp.dot(hb, wh_ref[...], preferred_element_type=f32) + bh_ref[...]
    mu = heads[:, 0:LATENT_DIMS]
    sigma = jnp.exp(heads[:, LATENT_DIMS:2 * LATENT_DIMS])

    # ---- reparameterisation at the true latent width (2) ----
    z = mu + sigma * eps_ref[...]                     # (tm, 2) f32

    # ---- decoder linear1 as rank-2 VPU update (true K is only 2) ----
    wd1 = wd1_ref[...]                                # (2, 512) f32
    hd = z[:, 0:1] * wd1[0:1, :] + z[:, 1:2] * wd1[1:2, :] + bd1_ref[...]
    hd = jnp.maximum(hd, 0.0)

    # ---- decoder linear2 + sigmoid ----
    logits = jnp.dot(hd.astype(bf16), wd2_ref[...],
                     preferred_element_type=f32) + bd2_ref[...]
    out_ref[...] = pl.reciprocal(1.0 + jnp.exp(-logits), approx=True).astype(out_ref.dtype)


def prepare_params(w1, b1, wmu, bmu, wls, bls, wd1, bd1, wd2, bd2):
    """One-time layout prep (do NOT redo per forward call): cast MXU weights to bf16
    and fuse the two latent heads into a single (512, 128) weight/(1, 128) bias."""
    f32, bf16 = jnp.float32, jnp.bfloat16
    wh = (jnp.zeros((HIDDEN, HEADS), f32)
          .at[:, 0:LATENT_DIMS].set(wmu)
          .at[:, LATENT_DIMS:2 * LATENT_DIMS].set(wls)).astype(bf16)
    bh = (jnp.zeros((1, HEADS), f32)
          .at[:, 0:LATENT_DIMS].set(bmu.reshape(1, -1))
          .at[:, LATENT_DIMS:2 * LATENT_DIMS].set(bls.reshape(1, -1)))
    return (w1.astype(bf16), b1.reshape(1, -1).astype(f32),
            wh, bh,
            wd1.astype(f32), bd1.reshape(1, -1).astype(f32),
            wd2.astype(bf16), bd2.reshape(1, -1).astype(f32))


def vae_forward(x, eps, prepared, *, max_tile=512):
    """x: (B, 1, 28, 28) f32, eps: (B, 2) f32, prepared = prepare_params(...).
    Returns (B, 1, 28, 28) f32."""
    B = x.shape[0]
    x_flat = x.reshape(B, IN_FEATURES).astype(jnp.float32)
    eps = eps.astype(jnp.float32)

    tm, b_pad = _choose_tile(B, max_tile)
    if b_pad != B:   # minimal batch-only pad; <8 junk rows per grid step
        x_flat = jnp.pad(x_flat, ((0, b_pad - B), (0, 0)))
        eps = jnp.pad(eps, ((0, b_pad - B), (0, 0)))

    w1, b1, wh, bh, wd1, bd1, wd2, bd2 = prepared

    batch = lambda i: (i, 0)       # streamed over batch tiles
    resident = lambda i: (0, 0)    # weights/biases stay VMEM-resident across tiles

    out = pl.pallas_call(
        vae_kernel,
        out_shape=jax.ShapeDtypeStruct((b_pad, IN_FEATURES), jnp.float32),
        grid_spec=pltpu.PrefetchScalarGridSpec(
            num_scalar_prefetch=0,
            grid=(b_pad // tm,),
            in_specs=[
                pl.BlockSpec((tm, IN_FEATURES), batch),          # x (f32 -> bf16 in-kernel)
                pl.BlockSpec((tm, LATENT_DIMS), batch),          # eps (true width 2)
                pl.BlockSpec((IN_FEATURES, HIDDEN), resident),   # W1      bf16
                pl.BlockSpec((1, HIDDEN), resident),             # b1      f32
                pl.BlockSpec((HIDDEN, HEADS), resident),         # W_heads bf16 (mu || log-sigma)
                pl.BlockSpec((1, HEADS), resident),              # b_heads f32
                pl.BlockSpec((LATENT_DIMS, HIDDEN), resident),   # W_d1    f32 (VPU path)
                pl.BlockSpec((1, HIDDEN), resident),             # b_d1    f32
                pl.BlockSpec((HIDDEN, IN_FEATURES), resident),   # W_d2    bf16
                pl.BlockSpec((1, IN_FEATURES), resident),        # b_d2    f32
            ],
            out_specs=pl.BlockSpec((tm, IN_FEATURES), batch),
        ),
        compiler_params=pltpu.CompilerParams(
            dimension_semantics=("parallel",),
            # ~10-12 MiB actually needed at tm=512; 32 MiB raises v5e's 16 MiB scoped
            # default while leaving headroom on v7x (64 MiB total per-TC VMEM).
            vmem_limit_bytes=32 << 20,
        ),
    )(x_flat, eps, w1, b1, wh, bh, wd1, bd1, wd2, bd2)

    return out[:B].reshape(B, 1, 28, 28)


def init_params(key):
    """Mimics nn.Linear's U(-1/sqrt(fan_in), 1/sqrt(fan_in)); weights stored (in, out)."""
    ks = jax.random.split(key, 10)

    def linear(kw, kb, fan_in, fan_out):
        bound = 1.0 / float(fan_in) ** 0.5
        w = jax.random.uniform(kw, (fan_in, fan_out), jnp.float32, -bound, bound)
        b = jax.random.uniform(kb, (1, fan_out), jnp.float32, -bound, bound)
        return w, b

    w1, b1 = linear(ks[0], ks[1], IN_FEATURES, HIDDEN)     # encoder.linear1
    wmu, bmu = linear(ks[2], ks[3], HIDDEN, LATENT_DIMS)   # encoder.linear2 (mu)
    wls, bls = linear(ks[4], ks[5], HIDDEN, LATENT_DIMS)   # encoder.linear3 (log sigma)
    wd1, bd1 = linear(ks[6], ks[7], LATENT_DIMS, HIDDEN)   # decoder.linear1
    wd2, bd2 = linear(ks[8], ks[9], HIDDEN, IN_FEATURES)   # decoder.linear2
    return w1, b1, wmu, bmu, wls, bls, wd1, bd1, wd2, bd2


def ref_forward(x_flat, eps, w1, b1, wmu, bmu, wls, bls, wd1, bd1, wd2, bd2):
    """Plain-JAX reference mirroring the kernel's bf16 MXU inputs / f32 accumulation."""
    f32, bf16 = jnp.float32, jnp.bfloat16
    xb = x_flat.astype(bf16)
    h = jnp.dot(xb, w1.astype(bf16), preferred_element_type=f32) + b1
    h = jnp.maximum(h, 0.0)
    hb = h.astype(bf16)
    mu = jnp.dot(hb, wmu.astype(bf16), preferred_element_type=f32) + bmu
    ls = jnp.dot(hb, wls.astype(bf16), preferred_element_type=f32) + bls
    z = mu + jnp.exp(ls) * eps
    # decoder linear1 in f32, same rank-2 form as the kernel
    hd = z[:, 0:1] * wd1[0:1, :] + z[:, 1:2] * wd1[1:2, :] + bd1
    hd = jnp.maximum(hd, 0.0)
    logits = jnp.dot(hd.astype(bf16), wd2.astype(bf16), preferred_element_type=f32) + bd2
    y = 1.0 / (1.0 + jnp.exp(-logits))
    return y.reshape(-1, 1, 28, 28)


if __name__ == "__main__":
    key = jax.random.PRNGKey(0)
    kx, keps, kp = jax.random.split(key, 3)

    B = 12  # exercises batch padding (-> 16) and a 2-step grid (megacore split on v7x)
    x = jax.random.uniform(kx, (B, 1, 28, 28), jnp.float32)   # MNIST-like in [0,1]
    eps = jax.random.normal(keps, (B, LATENT_DIMS), jnp.float32)
    params = init_params(kp)
    prepared = prepare_params(*params)   # one-time weight layout prep

    out = jax.block_until_ready(vae_forward(x, eps, prepared))
    assert out.shape == (B, 1, 28, 28)

    ref = ref_forward(x.reshape(B, -1), eps, *params)
    err = float(jnp.max(jnp.abs(out - ref)))
    assert jnp.allclose(out, ref, atol=1e-2, rtol=1e-2), err

    print("KERNEL_OK")
</pallas_src>

<mosaic_0001>
module attributes {stable_mosaic.version = 11 : i64} {
  func.func @vae_kernel(%arg0: i32, %arg1: memref<8x784xf32, #tpu.memory_space<vmem>>, %arg2: memref<8x2xf32, #tpu.memory_space<vmem>>, %arg3: memref<784x512xbf16, #tpu.memory_space<vmem>>, %arg4: memref<1x512xf32, #tpu.memory_space<vmem>>, %arg5: memref<512x128xbf16, #tpu.memory_space<vmem>>, %arg6: memref<1x128xf32, #tpu.memory_space<vmem>>, %arg7: memref<2x512xf32, #tpu.memory_space<vmem>>, %arg8: memref<1x512xf32, #tpu.memory_space<vmem>>, %arg9: memref<512x784xbf16, #tpu.memory_space<vmem>>, %arg10: memref<1x784xf32, #tpu.memory_space<vmem>>, %arg11: memref<8x784xf32, #tpu.memory_space<vmem>>) attributes {dimension_semantics = [#tpu.dimension_semantics<parallel>], iteration_bounds = array<i64: 2>, scalar_prefetch = 0 : i64, scratch_operands = 0 : i64, tpu.core_type = #tpu.core_type<tc>, window_params = [{transform_indices = @transform_0, window_bounds = array<i64: 8, 784>}, {transform_indices = @transform_1, window_bounds = array<i64: 8, 2>}, {pipeline_mode = #tpu.pipeline_mode<synchronous>, transform_indices = @transform_2, window_bounds = array<i64: 784, 512>}, {pipeline_mode = #tpu.pipeline_mode<synchronous>, transform_indices = @transform_3, window_bounds = array<i64: 1, 512>}, {pipeline_mode = #tpu.pipeline_mode<synchronous>, transform_indices = @transform_4, window_bounds = array<i64: 512, 128>}, {pipeline_mode = #tpu.pipeline_mode<synchronous>, transform_indices = @transform_5, window_bounds = array<i64: 1, 128>}, {pipeline_mode = #tpu.pipeline_mode<synchronous>, transform_indices = @transform_6, window_bounds = array<i64: 2, 512>}, {pipeline_mode = #tpu.pipeline_mode<synchronous>, transform_indices = @transform_7, window_bounds = array<i64: 1, 512>}, {pipeline_mode = #tpu.pipeline_mode<synchronous>, transform_indices = @transform_8, window_bounds = array<i64: 512, 784>}, {pipeline_mode = #tpu.pipeline_mode<synchronous>, transform_indices = @transform_9, window_bounds = array<i64: 1, 784>}, {transform_indices = @transform_10, window_bounds = array<i64: 8, 784>}]} {
    %c0 = arith.constant 0 : index
    %c0_0 = arith.constant 0 : index
    %0 = vector.load %arg1[%c0, %c0_0] : memref<8x784xf32, #tpu.memory_space<vmem>>, vector<8x784xf32>
    %1 = arith.truncf %0 : vector<8x784xf32> to vector<8x784xbf16>
    %c0_1 = arith.constant 0 : index
    %c0_2 = arith.constant 0 : index
    %2 = vector.load %arg3[%c0_1, %c0_2] : memref<784x512xbf16, #tpu.memory_space<vmem>>, vector<784x512xbf16>
    %cst = arith.constant dense<0.000000e+00> : vector<8x512xf32>
    %3 = tpu.matmul %1, %2, %cst {dimension_numbers = #tpu.dot_dimension_numbers<[1], [0], [0], [1], [0, 0, 1, 1], [], []>} : vector<8x784xbf16>, vector<784x512xbf16>, vector<8x512xf32> -> vector<8x512xf32>
    %c0_3 = arith.constant 0 : index
    %c0_4 = arith.constant 0 : index
    %4 = vector.load %arg4[%c0_3, %c0_4] : memref<1x512xf32, #tpu.memory_space<vmem>>, vector<1x512xf32>
    %5 = vector.broadcast %4 : vector<1x512xf32> to vector<8x512xf32>
    %6 = arith.addf %3, %5 : vector<8x512xf32>
    %cst_5 = arith.constant 0.000000e+00 : f32
    %7 = vector.broadcast %cst_5 : f32 to vector<8x512xf32>
    %8 = arith.maximumf %6, %7 : vector<8x512xf32>
    %9 = arith.truncf %8 : vector<8x512xf32> to vector<8x512xbf16>
    %c0_6 = arith.constant 0 : index
    %c0_7 = arith.constant 0 : index
    %10 = vector.load %arg5[%c0_6, %c0_7] : memref<512x128xbf16, #tpu.memory_space<vmem>>, vector<512x128xbf16>
    %cst_8 = arith.constant dense<0.000000e+00> : vector<8x128xf32>
    %11 = tpu.matmul %9, %10, %cst_8 {dimension_numbers = #tpu.dot_dimension_numbers<[1], [0], [0], [1], [0, 0, 1, 1], [], []>} : vector<8x512xbf16>, vector<512x128xbf16>, vector<8x128xf32> -> vector<8x128xf32>
    %c0_9 = arith.constant 0 : index
    %c0_10 = arith.constant 0 : index
    %12 = vector.load %arg6[%c0_9, %c0_10] : memref<1x128xf32, #tpu.memory_space<vmem>>, vector<1x128xf32>
    %13 = vector.broadcast %12 : vector<1x128xf32> to vector<8x128xf32>
    %14 = arith.addf %11, %13 : vector<8x128xf32>
    %15 = vector.extract_strided_slice %14 {offsets = [0, 0], sizes = [8, 2], strides = [1, 1]} : vector<8x128xf32> to vector<8x2xf32>
    %16 = vector.extract_strided_slice %14 {offsets = [0, 2], sizes = [8, 2], strides = [1, 1]} : vector<8x128xf32> to vector<8x2xf32>
    %17 = math.exp %16 : vector<8x2xf32>
    %c0_11 = arith.constant 0 : index
    %c0_12 = arith.constant 0 : index
    %18 = vector.load %arg2[%c0_11, %c0_12] : memref<8x2xf32, #tpu.memory_space<vmem>>, vector<8x2xf32>
    %19 = arith.mulf %17, %18 : vector<8x2xf32>
    %20 = arith.addf %15, %19 : vector<8x2xf32>
    %c0_13 = arith.constant 0 : index
    %c0_14 = arith.constant 0 : index
    %21 = vector.load %arg7[%c0_13, %c0_14] : memref<2x512xf32, #tpu.memory_space<vmem>>, vector<2x512xf32>
    %22 = vector.extract_strided_slice %20 {offsets = [0, 0], sizes = [8, 1], strides = [1, 1]} : vector<8x2xf32> to vector<8x1xf32>
    %23 = vector.extract_strided_slice %21 {offsets = [0, 0], sizes = [1, 512], strides = [1, 1]} : vector<2x512xf32> to vector<1x512xf32>
    %24 = vector.broadcast %22 : vector<8x1xf32> to vector<8x512xf32>
    %25 = vector.broadcast %23 : vector<1x512xf32> to vector<8x512xf32>
    %26 = arith.mulf %24, %25 : vector<8x512xf32>
    %27 = vector.extract_strided_slice %20 {offsets = [0, 1], sizes = [8, 1], strides = [1, 1]} : vector<8x2xf32> to vector<8x1xf32>
    %28 = vector.extract_strided_slice %21 {offsets = [1, 0], sizes = [1, 512], strides = [1, 1]} : vector<2x512xf32> to vector<1x512xf32>
    %29 = vector.broadcast %27 : vector<8x1xf32> to vector<8x512xf32>
    %30 = vector.broadcast %28 : vector<1x512xf32> to vector<8x512xf32>
    %31 = arith.mulf %29, %30 : vector<8x512xf32>
    %32 = arith.addf %26, %31 : vector<8x512xf32>
    %c0_15 = arith.constant 0 : index
    %c0_16 = arith.constant 0 : index
    %33 = vector.load %arg8[%c0_15, %c0_16] : memref<1x512xf32, #tpu.memory_space<vmem>>, vector<1x512xf32>
    %34 = vector.broadcast %33 : vector<1x512xf32> to vector<8x512xf32>
    %35 = arith.addf %32, %34 : vector<8x512xf32>
    %cst_17 = arith.constant 0.000000e+00 : f32
    %36 = vector.broadcast %cst_17 : f32 to vector<8x512xf32>
    %37 = arith.maximumf %35, %36 : vector<8x512xf32>
    %38 = arith.truncf %37 : vector<8x512xf32> to vector<8x512xbf16>
    %c0_18 = arith.constant 0 : index
    %c0_19 = arith.constant 0 : index
    %39 = vector.load %arg9[%c0_18, %c0_19] : memref<512x784xbf16, #tpu.memory_space<vmem>>, vector<512x784xbf16>
    %cst_20 = arith.constant dense<0.000000e+00> : vector<8x784xf32>
    %40 = tpu.matmul %38, %39, %cst_20 {dimension_numbers = #tpu.dot_dimension_numbers<[1], [0], [0], [1], [0, 0, 1, 1], [], []>} : vector<8x512xbf16>, vector<512x784xbf16>, vector<8x784xf32> -> vector<8x784xf32>
    %c0_21 = arith.constant 0 : index
    %c0_22 = arith.constant 0 : index
    %41 = vector.load %arg10[%c0_21, %c0_22] : memref<1x784xf32, #tpu.memory_space<vmem>>, vector<1x784xf32>
    %42 = vector.broadcast %41 : vector<1x784xf32> to vector<8x784xf32>
    %43 = arith.addf %40, %42 : vector<8x784xf32>
    %cst_23 = arith.constant 0.000000e+00 : f32
    %44 = vector.broadcast %cst_23 : f32 to vector<8x784xf32>
    %45 = arith.subf %44, %43 : vector<8x784xf32>
    %46 = math.exp %45 : vector<8x784xf32>
    %cst_24 = arith.constant 1.000000e+00 : f32
    %47 = vector.broadcast %cst_24 : f32 to vector<8x784xf32>
    %48 = arith.addf %47, %46 : vector<8x784xf32>
    %49 = tpu.reciprocal %48 {approx = true} : vector<8x784xf32> -> vector<8x784xf32>
    %c0_25 = arith.constant 0 : index
    %c0_26 = arith.constant 0 : index
    %50 = vector.load %arg11[%c0_25, %c0_26] : memref<8x784xf32, #tpu.memory_space<vmem>>, vector<8x784xf32>
    tpu.vector_store %arg11[%c0_25, %c0_26], %49 {strides = array<i32>} : memref<8x784xf32, #tpu.memory_space<vmem>>, vector<8x784xf32>,
    return
  }
  func.func @transform_0(%arg0: i32) -> (i32, i32) {
    %c0_i32 = arith.constant 0 : i32
    %c0_i32_0 = arith.constant 0 : i32
    return %arg0, %c0_i32 : i32, i32
  }
  func.func @transform_1(%arg0: i32) -> (i32, i32) {
    %c0_i32 = arith.constant 0 : i32
    %c0_i32_0 = arith.constant 0 : i32
    return %arg0, %c0_i32 : i32, i32
  }
  func.func @transform_2(%arg0: i32) -> (i32, i32) {
    %c0_i32 = arith.constant 0 : i32
    %c0_i32_0 = arith.constant 0 : i32
    %c0_i32_1 = arith.constant 0 : i32
    return %c0_i32, %c0_i32_0 : i32, i32
  }
  func.func @transform_3(%arg0: i32) -> (i32, i32) {
    %c0_i32 = arith.constant 0 : i32
    %c0_i32_0 = arith.constant 0 : i32
    %c0_i32_1 = arith.constant 0 : i32
    return %c0_i32, %c0_i32_0 : i32, i32
  }
  func.func @transform_4(%arg0: i32) -> (i32, i32) {
    %c0_i32 = arith.constant 0 : i32
    %c0_i32_0 = arith.constant 0 : i32
    %c0_i32_1 = arith.constant 0 : i32
    return %c0_i32, %c0_i32_0 : i32, i32
  }
  func.func @transform_5(%arg0: i32) -> (i32, i32) {
    %c0_i32 = arith.constant 0 : i32
    %c0_i32_0 = arith.constant 0 : i32
    %c0_i32_1 = arith.constant 0 : i32
    return %c0_i32, %c0_i32_0 : i32, i32
  }
  func.func @transform_6(%arg0: i32) -> (i32, i32) {
    %c0_i32 = arith.constant 0 : i32
    %c0_i32_0 = arith.constant 0 : i32
    %c0_i32_1 = arith.constant 0 : i32
    return %c0_i32, %c0_i32_0 : i32, i32
  }
  func.func @transform_7(%arg0: i32) -> (i32, i32) {
    %c0_i32 = arith.constant 0 : i32
    %c0_i32_0 = arith.constant 0 : i32
    %c0_i32_1 = arith.constant 0 : i32
    return %c0_i32, %c0_i32_0 : i32, i32
  }
  func.func @transform_8(%arg0: i32) -> (i32, i32) {
    %c0_i32 = arith.constant 0 : i32
    %c0_i32_0 = arith.constant 0 : i32
    %c0_i32_1 = arith.constant 0 : i32
    return %c0_i32, %c0_i32_0 : i32, i32
  }
  func.func @transform_9(%arg0: i32) -> (i32, i32) {
    %c0_i32 = arith.constant 0 : i32
    %c0_i32_0 = arith.constant 0 : i32
    %c0_i32_1 = arith.constant 0 : i32
    return %c0_i32, %c0_i32_0 : i32, i32
  }
  func.func @transform_10(%arg0: i32) -> (i32, i32) {
    %c0_i32 = arith.constant 0 : i32
    %c0_i32_0 = arith.constant 0 : i32
    return %arg0, %c0_i32 : i32, i32
  }
}

</mosaic_0001>

<bundles_post_ra>
// kernel: tpu_custom_call.1
= control target key start
LH: loop header
LB: loop body
LE: loop exit
PB: predicated region body
PF: predicated region fallthrough
CT: control target
= control target key end

     0   :  { %s9602_s0 = inlined_call_operand.vmem [shape: f32[16,784], index: 0, kind: input, shape index: {}]   ;;  %s9603_s1 = inlined_call_operand.vmem [shape: f32[16,2], index: 1, kind: input, shape index: {}]   ;;  %s9604_s2 = inlined_call_operand.vmem [shape: bf16[784,512], index: 2, kind: input, shape index: {}]   ;;  %s9605_s3 = inlined_call_operand.vmem [shape: f32[1,512], index: 3, kind: input, shape index: {}]   ;;  %s9606_s4 = inlined_call_operand.vmem [shape: bf16[512,128], index: 4, kind: input, shape index: {}]   ;;  %s9607_s5 = inlined_call_operand.vmem [shape: f32[1,128], index: 5, kind: input, shape index: {}]   ;;  %s9608_s6 = inlined_call_operand.vmem [shape: f32[2,512], index: 6, kind: input, shape index: {}]   ;;  %s9609_s7 = inlined_call_operand.vmem [shape: f32[1,512], index: 7, kind: input, shape index: {}]   ;;  %s9610_s8 = inlined_call_operand.vmem [shape: bf16[512,784], index: 8, kind: input, shape index: {}]   ;;  %s9611_s9 = inlined_call_operand.vmem [shape: f32[1,784], index: 9, kind: input, shape index: {}]   ;;  %s9612_s10 = inlined_call_operand.hbm [shape: f32[16,784], index: 10, kind: output, shape index: {}]  }
   0x1   :  { %9614 = sst [smem:[#allocation7_spill]] %s9602_s0 }
   0x2   :  { %15 = vsyncpa [#allocation3], 0 }
   0x3   :  { %17 = vsyncpa [#allocation3 + $0x1], 0  ;;  %s6740_s13 = smov 0   ;;  %s6742_s14 = smov 0  }
   0x4   :  { %s6744_s15 = smov 0   ;;  %s6746_s16 = smov 0  }
   0x5 LB: > { %9615 = sst [smem:[#allocation5_spill]] %s6675_s15  ;;  %s6761_s17 = sadd.s32 4294967295, %s6679_s16   ;;  %s6679_s16 = sphi %s6746_s16, %s9624_s16   ;;  %s6675_s15 = sphi %s6744_s15, %s9621_s15   ;;  %s6671_s14 = sphi %s6742_s14, %s9623_s14   ;;  %s6667_s13 = sphi %s6740_s13, %s9622_s13  }
   0x6   : > { %s4264_s18 = sadd.s32 4294967294, %s6679_s16   ;;  %s6765_s19 = sadd.s32 1, %s6679_s16  }
   0x7   : > { %s250_s20 = sadd.s32 1, %s6675_s15  ;;  %s247_s21 = ssub.s32 %s6679_s16, %s6765_s19 }
   0x8   : > { %p260_p0 = scmp.ne.s32.totalorder %s6675_s15, %s6671_s14  ;;  %p248_p1 = scmp.eq.s32.totalorder %s247_s21, 0 }
   0x9   : > { %p261_p2 = scmp.eq.s32.totalorder %s6761_s17, 1  ;;  %p266_p3 = scmp.ne.s32.totalorder %s6671_s14, %s6667_s13 }
   0xa   : > { %p267_p4 = scmp.eq.s32.totalorder %s4264_s18, 1  ;;  %p4267_p7 = scmp.ge.s32.totalorder %s6679_s16, 1 }
   0xb   : > { %s6776_s22 = scalar_select %p248_p1, %s6675_s15, %s250_s20  }
   0xc   : > { %p6778_p5 = por %p261_p2, %p260_p0  ;;  %p6782_p6 = por %p267_p4, %p266_p3 }
   0xd   : > { %9616 = sst [smem:[#allocation6_spill]] %s6776_s22  ;;  %p324_p8 = scmp.lt.s32.totalorder %s6679_s16, 3 }
   0xf   : > { %p325_p9 = pnand %p4267_p7, %p324_p8 }
  0x10   : > { %p366_p10 = scmp.lt.s32.totalorder (!%p325_p9), %s6761_s17, 1  ;;  %s9619_s0 = sld [smem:[#allocation7_spill]] (!%p325_p9) }
  0x11   : > { %328 = sbr.rel (%p325_p9) target bundleno = 1081 (0x439), region = 60  ;;  %s6681_s26 = smov (!%p325_p9), 2  }
  0x12   : > { %s6637_s18 = scalar_lea.hbm (!%p325_p9), %s9612_s10, 112 }
  0x16   : > { %v4384_v0 = vld [vmem:[%s9604_s2 + $0xe0] sm:$0xf]  ;;  %v6115_v1 = vld [vmem:[%s9604_s2 + $0xec] sm:$0xf0]  ;;  %s6988_s20 = scalar_select %p366_p10, %s6761_s17, 1  ;;  %vm1576_vm0 = vcmask 130048  }
  0x17   : > { %v4512_v2 = vld [vmem:[%s9604_s2 + $0x1e0] sm:$0xf]  ;;  %v4385_v3 = vor.u32 %v6115_v1, %v4384_v0  ;;  %v6147_v4 = vld [vmem:[%s9604_s2 + $0x1ec] sm:$0xf0] }
  0x18   : > { %v4640_v5 = vld [vmem:[%s9604_s2 + $0x2e0] sm:$0xf]  ;;  %v6179_v6 = vld [vmem:[%s9604_s2 + $0x2ec] sm:$0xf0]  ;;  %v4513_v7 = vor.u32 %v6147_v4, %v4512_v2  ;;  %s6538_s11 = smul.u32 56, %s6988_s20  ;;  %s4269_s21 = sshll.u32 %s6988_s20, 3 }
  0x19   : > { %v4641_v8 = vor.u32 %v6179_v6, %v4640_v5  ;;  %v4768_v9 = vld [vmem:[%s9604_s2 + $0x3e0] sm:$0xf]  ;;  %v6211_v10 = vld [vmem:[%s9604_s2 + $0x3ec] sm:$0xf0]  ;;  %1580 = vmatpush.bf16.msra.mxu0 %v4385_v3  ;;  %s374_s25 = scalar_lea.vmem %s9603_s1, %s4269_s21  ;;  %s363_s21 = sand.u32 1, %s6671_s14  }
  0x1a   : > { %v4368_v11 = vld [vmem:[%s9604_s2 + $0xc0] sm:$0xf]  ;;  %v4769_v12 = vor.u32 %v6211_v10, %v4768_v9  ;;  %v6111_v13 = vld [vmem:[%s9604_s2 + $0xcc] sm:$0xf0]  ;;  %1593 = vmatpush.bf16.msra.mxu1 %v4513_v7  ;;  %s7018_s12 = scalar_lea.vmem %s9619_s0, %s6538_s11  ;;  %s6682_s11 = smov 126  }
  0x1b   : > { %v4496_v14 = vld [vmem:[%s9604_s2 + $0x1c0] sm:$0xf]  ;;  %v6143_v15 = vld [vmem:[%s9604_s2 + $0x1cc] sm:$0xf0]  ;;  %1606 = vmatpush.bf16.msra.mxu2 %v4641_v8  ;;  %v4369_v16 = vor.u32 %v6111_v13, %v4368_v11  ;;  %s6537_s22 = smul.u32 56, %s363_s21  ;;  %s4177_s0 = scalar_lea.sflag [#allocation3], %s363_s21 }
  0x1c   : > { %v4497_v17 = vor.u32 %v6143_v15, %v4496_v14  ;;  %v4624_v18 = vld [vmem:[%s9604_s2 + $0x2c0] sm:$0xf]  ;;  %v6175_v19 = vld [vmem:[%s9604_s2 + $0x2cc] sm:$0xf0]  ;;  %1619 = vmatpush.bf16.msra.mxu3 %v4769_v12 }
  0x1d   : > { %v4752_v20 = vld [vmem:[%s9604_s2 + $0x3c0] sm:$0xf]  ;;  %v4625_v21 = vor.u32 %v6175_v19, %v4624_v18  ;;  %v6207_v22 = vld [vmem:[%s9604_s2 + $0x3cc] sm:$0xf0]  ;;  %1581 = vmatpush.bf16.msra.mxu0 %v4369_v16 }
  0x1e   : > { %v4352_v23 = vld [vmem:[%s9604_s2 + $0xa0] sm:$0xf]  ;;  %v6107_v24 = vld [vmem:[%s9604_s2 + $0xac] sm:$0xf0]  ;;  %v4753_v25 = vor.u32 %v6207_v22, %v4752_v20  ;;  %1594 = vmatpush.bf16.msra.mxu1 %v4497_v17 }
  0x1f   : > { %v4480_v26 = vld [vmem:[%s9604_s2 + $0x1a0] sm:$0xf]  ;;  %v6139_v27 = vld [vmem:[%s9604_s2 + $0x1ac] sm:$0xf0]  ;;  %v4353_v29 = vor.u32 %v6107_v24, %v4352_v23  ;;  %1607 = vmatpush.bf16.msra.mxu2 %v4625_v21 }
  0x20   : > { %v4608_v28 = vld [vmem:[%s9604_s2 + $0x2a0] sm:$0xf]  ;;  %v6171_v30 = vld [vmem:[%s9604_s2 + $0x2ac] sm:$0xf0]  ;;  %v4481_v33 = vor.u32 %v6139_v27, %v4480_v26  ;;  %1620 = vmatpush.bf16.msra.mxu3 %v4753_v25 }
  0x21   : > { %v4736_v31 = vld [vmem:[%s9604_s2 + $0x3a0] sm:$0xf]  ;;  %v6203_v32 = vld [vmem:[%s9604_s2 + $0x3ac] sm:$0xf0]  ;;  %v4609_v34 = vor.u32 %v6171_v30, %v4608_v28  ;;  %1582 = vmatpush.bf16.msra.mxu0 %v4353_v29 }
  0x22   : > { %v4336_v35 = vld [vmem:[%s9604_s2 + $0x80] sm:$0xf]  ;;  %v6103_v36 = vld [vmem:[%s9604_s2 + $0x8c] sm:$0xf0]  ;;  %v4737_v38 = vor.u32 %v6203_v32, %v4736_v31  ;;  %1595 = vmatpush.bf16.msra.mxu1 %v4481_v33  ;;  %v6113_v32 = vld [vmem:[%s9604_s2 + $0xe4] sm:$0xf] }
  0x23   : > { %v4464_v37 = vld [vmem:[%s9604_s2 + $0x180] sm:$0xf]  ;;  %v6135_v39 = vld [vmem:[%s9604_s2 + $0x18c] sm:$0xf0]  ;;  %v4337_v44 = vor.u32 %v6103_v36, %v4336_v35  ;;  %1608 = vmatpush.bf16.msra.mxu2 %v4609_v34  ;;  %v4386_v34 = vld [vmem:[%s9604_s2 + $0xf0] sm:$0xf0] }
  0x24   : > { %v4592_v40 = vld [vmem:[%s9604_s2 + $0x280] sm:$0xf]  ;;  %v6167_v41 = vld [vmem:[%s9604_s2 + $0x28c] sm:$0xf0]  ;;  %v4465_v45 = vor.u32 %v6135_v39, %v4464_v37  ;;  %1621 = vmatpush.bf16.msra.mxu3 %v4737_v38  ;;  %v6145_v39 = vld [vmem:[%s9604_s2 + $0x1e4] sm:$0xf] }
  0x25   : > { %v4720_v42 = vld [vmem:[%s9604_s2 + $0x380] sm:$0xf]  ;;  %v6199_v43 = vld [vmem:[%s9604_s2 + $0x38c] sm:$0xf0]  ;;  %v4593_v46 = vor.u32 %v6167_v41, %v4592_v40  ;;  %1583 = vmatpush.bf16.msra.mxu0 %v4337_v44  ;;  %v4514_v40 = vld [vmem:[%s9604_s2 + $0x1f0] sm:$0xf0] }
  0x26   : > { %v4320_v47 = vld [vmem:[%s9604_s2 + $0x60] sm:$0xf]  ;;  %v6099_v48 = vld [vmem:[%s9604_s2 + $0x6c] sm:$0xf0]  ;;  %v4721_v50 = vor.u32 %v6199_v43, %v4720_v42  ;;  %1596 = vmatpush.bf16.msra.mxu1 %v4465_v45 }
  0x27   : > { %v4448_v49 = vld [vmem:[%s9604_s2 + $0x160] sm:$0xf]  ;;  %v6131_v51 = vld [vmem:[%s9604_s2 + $0x16c] sm:$0xf0]  ;;  %v4321_v56 = vor.u32 %v6099_v48, %v4320_v47  ;;  %1609 = vmatpush.bf16.msra.mxu2 %v4593_v46  ;;  %v4389_v47 = vor.u32 %v6113_v32, %v4386_v34 }
  0x28   : > { %v4576_v52 = vld [vmem:[%s9604_s2 + $0x260] sm:$0xf]  ;;  %v6163_v53 = vld [vmem:[%s9604_s2 + $0x26c] sm:$0xf0]  ;;  %v4449_v57 = vor.u32 %v6131_v51, %v4448_v49  ;;  %1622 = vmatpush.bf16.msra.mxu3 %v4721_v50  ;;  %v379_v50 = vld [vmem:[%s7018_s12 + $0x18] sm:$0xff] }
  0x29   : > { %v4704_v54 = vld [vmem:[%s9604_s2 + $0x360] sm:$0xf]  ;;  %v6195_v55 = vld [vmem:[%s9604_s2 + $0x36c] sm:$0xf0]  ;;  %v4577_v58 = vor.u32 %v6163_v53, %v4576_v52  ;;  %1584 = vmatpush.bf16.msra.mxu0 %v4321_v56  ;;  %v6109_v53 = vld [vmem:[%s9604_s2 + $0xc4] sm:$0xf] }
  0x2a   : > { %v4304_v59 = vld [vmem:[%s9604_s2 + $0x40] sm:$0xf]  ;;  %v6095_v60 = vld [vmem:[%s9604_s2 + $0x4c] sm:$0xf0]  ;;  %v4705_v62 = vor.u32 %v6195_v55, %v4704_v54  ;;  %1597 = vmatpush.bf16.msra.mxu1 %v4449_v57  ;;  %v4370_v54 = vld [vmem:[%s9604_s2 + $0xd0] sm:$0xf0]  ;;  %v7045_v57 = vpack.c.bf16 %v379_v50, %v379_v50 }
  0x2b   : > { %v4432_v61 = vld [vmem:[%s9604_s2 + $0x140] sm:$0xf]  ;;  %v6127_v63 = vld [vmem:[%s9604_s2 + $0x14c] sm:$0xf0]  ;;  %v4305_v4 = vor.u32 %v6095_v60, %v4304_v59  ;;  %1610 = vmatpush.bf16.msra.mxu2 %v4577_v58  ;;  %v377_v58 = vld [vmem:[%s7018_s12 + $0x8] sm:$0xff]  ;;  %v4517_v59 = vor.u32 %v6145_v39, %v4514_v40 }
  0x2c   : > { %v4560_v0 = vld [vmem:[%s9604_s2 + $0x240] sm:$0xf]  ;;  %v6159_v1 = vld [vmem:[%s9604_s2 + $0x24c] sm:$0xf0]  ;;  %v4433_v6 = vor.u32 %v6127_v63, %v4432_v61  ;;  %1623 = vmatpush.bf16.msra.mxu3 %v4705_v62  ;;  %v6141_v61 = vld [vmem:[%s9604_s2 + $0x1c4] sm:$0xf] }
  0x2d   : > { %v4688_v2 = vld [vmem:[%s9604_s2 + $0x340] sm:$0xf]  ;;  %v6191_v3 = vld [vmem:[%s9604_s2 + $0x34c] sm:$0xf0]  ;;  %v4561_v7 = vor.u32 %v6159_v1, %v4560_v0  ;;  %1585 = vmatpush.bf16.msra.mxu0 %v4305_v4  ;;  %v4498_v62 = vld [vmem:[%s9604_s2 + $0x1d0] sm:$0xf0]  ;;  %v4373_v0 = vor.u32 %v6109_v53, %v4370_v54 }
  0x2e   : > { %v4288_v5 = vld [vmem:[%s9604_s2 + $0x20] sm:$0xf]  ;;  %v6091_v8 = vld [vmem:[%s9604_s2 + $0x2c] sm:$0xf0]  ;;  %v4689_v11 = vor.u32 %v6191_v3, %v4688_v2  ;;  %1598 = vmatpush.bf16.msra.mxu1 %v4433_v6  ;;  %v4354_v6 = vld [vmem:[%s9604_s2 + $0xb0] sm:$0xf0] }
  0x2f   : > { %v4416_v9 = vld [vmem:[%s9604_s2 + $0x120] sm:$0xf]  ;;  %v6123_v10 = vld [vmem:[%s9604_s2 + $0x12c] sm:$0xf0]  ;;  %v4289_v18 = vor.u32 %v6091_v8, %v4288_v5  ;;  %1611 = vmatpush.bf16.msra.mxu2 %v4561_v7  ;;  %v6105_v5 = vld [vmem:[%s9604_s2 + $0xa4] sm:$0xf]  ;;  %v7074_v7 = vpack.c.bf16 %v377_v58, %v377_v58  ;;  %v4501_v8 = vor.u32 %v6141_v61, %v4498_v62 }
  0x30   : > { %v4544_v12 = vld [vmem:[%s9604_s2 + $0x220] sm:$0xf]  ;;  %v6155_v13 = vld [vmem:[%s9604_s2 + $0x22c] sm:$0xf0]  ;;  %v4417_v22 = vor.u32 %v6123_v10, %v4416_v9  ;;  %1624 = vmatpush.bf16.msra.mxu3 %v4689_v11  ;;  %v6137_v10 = vld [vmem:[%s9604_s2 + $0x1a4] sm:$0xf] }
  0x31   : > { %v4672_v14 = vld [vmem:[%s9604_s2 + $0x320] sm:$0xf]  ;;  %v6187_v15 = vld [vmem:[%s9604_s2 + $0x32c] sm:$0xf0]  ;;  %v4545_v23 = vor.u32 %v6155_v13, %v4544_v12  ;;  %1586 = vmatpush.bf16.msra.mxu0 %v4289_v18  ;;  %v4482_v11 = vld [vmem:[%s9604_s2 + $0x1b0] sm:$0xf0]  ;;  %v4357_v13 = vor.u32 %v6105_v5, %v4354_v6 }
  0x32   : > { %v4272_v16 = vld [vmem:[%s9604_s2] sm:$0xf]  ;;  %v6087_v17 = vld [vmem:[%s9604_s2 + $0xc] sm:$0xf0]  ;;  %v4673_v27 = vor.u32 %v6187_v15, %v4672_v14  ;;  %1599 = vmatpush.bf16.msra.mxu1 %v4417_v22  ;;  %v6101_v18 = vld [vmem:[%s9604_s2 + $0x84] sm:$0xf] }
  0x33   : > { %v4400_v19 = vld [vmem:[%s9604_s2 + $0x100] sm:$0xf]  ;;  %v6119_v20 = vld [vmem:[%s9604_s2 + $0x10c] sm:$0xf0]  ;;  %v4273_v33 = vor.u32 %v6087_v17, %v4272_v16  ;;  %1612 = vmatpush.bf16.msra.mxu2 %v4545_v23  ;;  %v6133_v22 = vld [vmem:[%s9604_s2 + $0x184] sm:$0xf] }
  0x34   : > { %v4528_v21 = vld [vmem:[%s9604_s2 + $0x200] sm:$0xf]  ;;  %v6151_v24 = vld [vmem:[%s9604_s2 + $0x20c] sm:$0xf0]  ;;  %v4401_v36 = vor.u32 %v6119_v20, %v4400_v19  ;;  %1625 = vmatpush.bf16.msra.mxu3 %v4673_v27  ;;  %v4338_v19 = vld [vmem:[%s9604_s2 + $0x90] sm:$0xf0]  ;;  %v4485_v20 = vor.u32 %v6137_v10, %v4482_v11 }
  0x35   : > { %v4656_v25 = vld [vmem:[%s9604_s2 + $0x300] sm:$0xf]  ;;  %v6183_v26 = vld [vmem:[%s9604_s2 + $0x30c] sm:$0xf0]  ;;  %v4529_v37 = vor.u32 %v6151_v24, %v4528_v21  ;;  %1587 = vmatpush.bf16.msra.mxu0 %v4273_v33  ;;  %v4466_v23 = vld [vmem:[%s9604_s2 + $0x190] sm:$0xf0] }
  0x36   : > { %v4896_v28 = vld [vmem:[%s9604_s2 + $0x4e0] sm:$0xf]  ;;  %v6243_v29 = vld [vmem:[%s9604_s2 + $0x4ec] sm:$0xf0]  ;;  %v4657_v41 = vor.u32 %v6183_v26, %v4656_v25  ;;  %1600 = vmatpush.bf16.msra.mxu1 %v4401_v36  ;;  %v4341_v25 = vor.u32 %v6101_v18, %v4338_v19  ;;  %v4469_v33 = vor.u32 %v6133_v22, %v4466_v23  ;;  %v4450_v36 = vld [vmem:[%s9604_s2 + $0x170] sm:$0xf0] }
  0x37   : > { %v5024_v30 = vld [vmem:[%s9604_s2 + $0x5e0] sm:$0xf]  ;;  %v6275_v31 = vld [vmem:[%s9604_s2 + $0x5ec] sm:$0xf0]  ;;  %v4897_v42 = vor.u32 %v6243_v29, %v4896_v28  ;;  %1613 = vmatpush.bf16.msra.mxu2 %v4529_v37  ;;  %v6177_v10 = vld [vmem:[%s9604_s2 + $0x2e4] sm:$0xf] }
  0x38   : > { %v5040_v35 = vld [vmem:[%s9604_s2 + $0x600] sm:$0xf]  ;;  %v6279_v38 = vld [vmem:[%s9604_s2 + $0x60c] sm:$0xf0]  ;;  %v5025_v46 = vor.u32 %v6275_v31, %v5024_v30  ;;  %1626 = vmatpush.bf16.msra.mxu3 %v4657_v41  ;;  %v6097_v30 = vld [vmem:[%s9604_s2 + $0x64] sm:$0xf] }
  0x39   : > { %v4880_v43 = vld [vmem:[%s9604_s2 + $0x4c0] sm:$0xf]  ;;  %v6239_v44 = vld [vmem:[%s9604_s2 + $0x4cc] sm:$0xf0]  ;;  %v5041_v56 = vor.u32 %v6279_v38, %v5040_v35  ;;  %1632 = vmatpush.bf16.msrb.mxu0 %v4897_v42  ;;  %1601 = vmatmul.bf16.vlgmr.msra.gmra.mxu1 %v7074_v7  ;;  %v4322_v31 = vld [vmem:[%s9604_s2 + $0x70] sm:$0xf0] }
  0x3a   : > { %v5008_v45 = vld [vmem:[%s9604_s2 + $0x5c0] sm:$0xf]  ;;  %v378_v48 = vld [vmem:[%s7018_s12 + $0x10] sm:$0xff]  ;;  %v4881_v60 = vor.u32 %v6239_v44, %v4880_v43  ;;  %1645 = vmatpush.bf16.msrb.mxu1 %v5025_v46  ;;  %v6129_v35 = vld [vmem:[%s9604_s2 + $0x164] sm:$0xf]  ;;  %v4325_v38 = vor.u32 %v6097_v30, %v4322_v31 }
  0x3b   : > { %v376_v49 = vld [vmem:[%s7018_s12] sm:$0xff]  ;;  %v7032_v51 = vpack.c.bf16 %v378_v48, %v378_v48  ;;  %v6271_v52 = vld [vmem:[%s9604_s2 + $0x5cc] sm:$0xf0]  ;;  %1665 = vmatpush.bf16.msrb.mxu2 %v5041_v56  ;;  %1627 = vmatmul.bf16.vlgmr.msra.gmra.mxu3 %v7045_v57  ;;  %v4306_v44 = vld [vmem:[%s9604_s2 + $0x50] sm:$0xf0]  ;;  %v4453_v46 = vor.u32 %v6129_v35, %v4450_v36 }
  0x3c   : > { %v7043_v55 = vpack.c.bf16 %v376_v49, %v376_v49  ;;  %1671 = vmatpush.bf16.msrb.mxu3 %v4389_v47  ;;  %v5009_v63 = vor.u32 %v6271_v52, %v5008_v45  ;;  %v4864_v1 = vld [vmem:[%s9604_s2 + $0x4a0] sm:$0xf]  ;;  %v6235_v2 = vld [vmem:[%s9604_s2 + $0x4ac] sm:$0xf0]  ;;  %v6093_v43 = vld [vmem:[%s9604_s2 + $0x44] sm:$0xf] }
  0x3d   : > { %v4992_v3 = vld [vmem:[%s9604_s2 + $0x5a0] sm:$0xf]  ;;  %1614 = vmatmul.bf16.vlgmr.msra.gmra.mxu2 %v7032_v51  ;;  %v6267_v4 = vld [vmem:[%s9604_s2 + $0x5ac] sm:$0xf0]  ;;  %1633 = vmatpush.bf16.msrb.mxu0 %v4881_v60  ;;  %v4865_v9 = vor.u32 %v6235_v2, %v4864_v1  ;;  %v6125_v48 = vld [vmem:[%s9604_s2 + $0x144] sm:$0xf]  ;;  %v4309_v52 = vor.u32 %v6093_v43, %v4306_v44 }
  0x3e   : > { %1588 = vmatmul.bf16.vlgmr.msra.gmra.mxu0 %v7043_v55  ;;  %1646 = vmatpush.bf16.msrb.mxu1 %v5009_v63  ;;  %v4993_v12 = vor.u32 %v6267_v4, %v4992_v3  ;;  %v4848_v14 = vld [vmem:[%s9604_s2 + $0x480] sm:$0xf]  ;;  %v6231_v15 = vld [vmem:[%s9604_s2 + $0x48c] sm:$0xf0]  ;;  %v4434_v49 = vld [vmem:[%s9604_s2 + $0x150] sm:$0xf0] }
  0x3f   : > { %1684 = vmatpush.bf16.msra.mxu2 %v4517_v59  ;;  %v4976_v16 = vld [vmem:[%s9604_s2 + $0x580] sm:$0xf]  ;;  %v6263_v17 = vld [vmem:[%s9604_s2 + $0x58c] sm:$0xf0]  ;;  %v4849_v21 = vor.u32 %v6231_v15, %v4848_v14  ;;  %v6089_v59 = vld [vmem:[%s9604_s2 + $0x24] sm:$0xf]  ;;  %v4437_v61 = vor.u32 %v6125_v48, %v4434_v49 }
  0x40   : > { %1672 = vmatpush.bf16.msrb.mxu3 %v4373_v0  ;;  %v4977_v24 = vor.u32 %v6263_v17, %v4976_v16  ;;  %v4832_v26 = vld [vmem:[%s9604_s2 + $0x460] sm:$0xf]  ;;  %v6227_v27 = vld [vmem:[%s9604_s2 + $0x46c] sm:$0xf0]  ;;  %v4290_v60 = vld [vmem:[%s9604_s2 + $0x30] sm:$0xf0] }
  0x41   : > { %1634 = vmatpush.bf16.msrb.mxu0 %v4865_v9  ;;  %v4960_v28 = vld [vmem:[%s9604_s2 + $0x560] sm:$0xf]  ;;  %v6259_v29 = vld [vmem:[%s9604_s2 + $0x56c] sm:$0xf0]  ;;  %v4833_v34 = vor.u32 %v6227_v27, %v4832_v26  ;;  %v6121_v63 = vld [vmem:[%s9604_s2 + $0x124] sm:$0xf]  ;;  %v4293_v3 = vor.u32 %v6089_v59, %v4290_v60 }
  0x42   : > { %1647 = vmatpush.bf16.msrb.mxu1 %v4993_v12  ;;  %v382_v32 = vld [vmem:[%s7018_s12 + $0x30] sm:$0xff]  ;;  %v4961_v37 = vor.u32 %v6259_v29, %v4960_v28  ;;  %v4816_v39 = vld [vmem:[%s9604_s2 + $0x440] sm:$0xf]  ;;  %v6209_v12 = vld [vmem:[%s9604_s2 + $0x3e4] sm:$0xf] }
  0x43   : > { %1685 = vmatpush.bf16.msra.mxu2 %v4501_v8  ;;  %v6223_v40 = vld [vmem:[%s9604_s2 + $0x44c] sm:$0xf0]  ;;  %v4944_v41 = vld [vmem:[%s9604_s2 + $0x540] sm:$0xf]  ;;  %v7151_v45 = vpack.c.bf16 %v382_v32, %v382_v32  ;;  %v4418_v0 = vld [vmem:[%s9604_s2 + $0x130] sm:$0xf0] }
  0x44   : > { %1673 = vmatpush.bf16.msrb.mxu3 %v4357_v13  ;;  %v6255_v42 = vld [vmem:[%s9604_s2 + $0x54c] sm:$0xf0]  ;;  %v4817_v47 = vor.u32 %v6223_v40, %v4816_v39  ;;  %v4800_v53 = vld [vmem:[%s9604_s2 + $0x420] sm:$0xf]  ;;  %v6085_v8 = vld [vmem:[%s9604_s2 + $0x4] sm:$0xf]  ;;  %v4421_v14 = vor.u32 %v6121_v63, %v4418_v0 }
  0x45   : > { %1635 = vmatpush.bf16.msrb.mxu0 %v4849_v21  ;;  %v4945_v50 = vor.u32 %v6255_v42, %v4944_v41  ;;  %v6219_v54 = vld [vmem:[%s9604_s2 + $0x42c] sm:$0xf0]  ;;  %v4928_v56 = vld [vmem:[%s9604_s2 + $0x520] sm:$0xf]  ;;  %v4274_v9 = vld [vmem:[%s9604_s2 + $0x10] sm:$0xf0] }
  0x46   : > { %1648 = vmatpush.bf16.msrb.mxu1 %v4977_v24  ;;  %v6251_v58 = vld [vmem:[%s9604_s2 + $0x52c] sm:$0xf0]  ;;  %v4801_v62 = vor.u32 %v6219_v54, %v4800_v53  ;;  %v4784_v1 = vld [vmem:[%s9604_s2 + $0x400] sm:$0xf]  ;;  %v4642_v11 = vld [vmem:[%s9604_s2 + $0x2f0] sm:$0xf0] }
  0x47   : > { %1686 = vmatpush.bf16.msra.mxu2 %v4485_v20  ;;  %v4929_v2 = vor.u32 %v6251_v58, %v4928_v56  ;;  %v6215_v4 = vld [vmem:[%s9604_s2 + $0x40c] sm:$0xf0]  ;;  %v4912_v5 = vld [vmem:[%s9604_s2 + $0x500] sm:$0xf]  ;;  %v4770_v13 = vld [vmem:[%s9604_s2 + $0x3f0] sm:$0xf0]  ;;  %v4277_v20 = vor.u32 %v6085_v8, %v4274_v9  ;;  %v4645_v24 = vor.u32 %v6177_v10, %v4642_v11 }
  0x48   : > { %1674 = vmatpush.bf16.msrb.mxu3 %v4341_v25  ;;  %v6247_v6 = vld [vmem:[%s9604_s2 + $0x50c] sm:$0xf0]  ;;  %v4785_v15 = vor.u32 %v6215_v4, %v4784_v1  ;;  %v6241_v16 = vld [vmem:[%s9604_s2 + $0x4e4] sm:$0xf]  ;;  %v4898_v17 = vld [vmem:[%s9604_s2 + $0x4f0] sm:$0xf0]  ;;  %v4773_v25 = vor.u32 %v6209_v12, %v4770_v13 }
  0x49   : > { %1636 = vmatpush.bf16.msrb.mxu0 %v4833_v34  ;;  %v380_v18 = vld [vmem:[%s7018_s12 + $0x20] sm:$0xff]  ;;  %v4913_v19 = vor.u32 %v6247_v6, %v4912_v5  ;;  %v4402_v22 = vld [vmem:[%s9604_s2 + $0x110] sm:$0xf0]  ;;  %v381_v23 = vld [vmem:[%s7018_s12 + $0x28] sm:$0xff]  ;;  %v4901_v29 = vor.u32 %v6241_v16, %v4898_v17  ;;  %s9553_s12 = scalar_lea.vmem [#allocation2], %s6537_s22 }
  0x4a   : > { %1649 = vmatpush.bf16.msrb.mxu1 %v4961_v37  ;;  %v6117_v21 = vld [vmem:[%s9604_s2 + $0x104] sm:$0xf]  ;;  %v5026_v27 = vld [vmem:[%s9604_s2 + $0x5f0] sm:$0xf0]  ;;  %v7238_v30 = vpack.c.bf16 %v380_v18, %v380_v18  ;;  %v7249_v35 = vpack.c.bf16 %v381_v23, %v381_v23 }
  0x4b   : > { %1687 = vmatpush.bf16.msra.mxu2 %v4469_v33  ;;  %v6273_v26 = vld [vmem:[%s9604_s2 + $0x5e4] sm:$0xf]  ;;  %v4626_v31 = vld [vmem:[%s9604_s2 + $0x2d0] sm:$0xf0]  ;;  %v4405_v34 = vor.u32 %v6117_v21, %v4402_v22 }
  0x4c   : > { %1675 = vmatpush.bf16.msrb.mxu3 %v4325_v38  ;;  %v6173_v28 = vld [vmem:[%s9604_s2 + $0x2c4] sm:$0xf]  ;;  %v4754_v33 = vld [vmem:[%s9604_s2 + $0x3d0] sm:$0xf0]  ;;  %v5029_v38 = vor.u32 %v6273_v26, %v5026_v27 }
  0x4d   : > { %5054 = vmatmul.msk.bf16.vlgmr.msrb.gmra.mxu2 %vm1576_vm0, %v7151_v45  ;;  %1637 = vmatpush.bf16.msrb.mxu0 %v4817_v47  ;;  %v6205_v32 = vld [vmem:[%s9604_s2 + $0x3c4] sm:$0xf]  ;;  %v4882_v37 = vld [vmem:[%s9604_s2 + $0x4d0] sm:$0xf0]  ;;  %v4629_v39 = vor.u32 %v6173_v28, %v4626_v31 }
  0x4e   : > { %1650 = vmatpush.bf16.msrb.mxu1 %v4945_v50  ;;  %v6237_v36 = vld [vmem:[%s9604_s2 + $0x4c4] sm:$0xf]  ;;  %v4757_v40 = vor.u32 %v6205_v32, %v4754_v33  ;;  %v5010_v42 = vld [vmem:[%s9604_s2 + $0x5d0] sm:$0xf0] }
  0x4f   : > { %1688 = vmatpush.bf16.msra.mxu2 %v4453_v46  ;;  %v6269_v41 = vld [vmem:[%s9604_s2 + $0x5c4] sm:$0xf]  ;;  %v4885_v44 = vor.u32 %v6237_v36, %v4882_v37  ;;  %v4610_v46 = vld [vmem:[%s9604_s2 + $0x2b0] sm:$0xf0] }
  0x50   : > { %1676 = vmatpush.bf16.msrb.mxu3 %v4309_v52  ;;  %v6169_v43 = vld [vmem:[%s9604_s2 + $0x2a4] sm:$0xf]  ;;  %v4738_v48 = vld [vmem:[%s9604_s2 + $0x3b0] sm:$0xf0]  ;;  %v5013_v52 = vor.u32 %v6269_v41, %v5010_v42 }
  0x51   : > { %1638 = vmatpush.bf16.msrb.mxu0 %v4801_v62  ;;  %v6201_v47 = vld [vmem:[%s9604_s2 + $0x3a4] sm:$0xf]  ;;  %v4866_v50 = vld [vmem:[%s9604_s2 + $0x4b0] sm:$0xf0]  ;;  %v4613_v53 = vor.u32 %v6169_v43, %v4610_v46 }
  0x52   : > { %1651 = vmatpush.bf16.msrb.mxu1 %v4929_v2  ;;  %v6233_v49 = vld [vmem:[%s9604_s2 + $0x4a4] sm:$0xf]  ;;  %v4741_v54 = vor.u32 %v6201_v47, %v4738_v48  ;;  %v4994_v58 = vld [vmem:[%s9604_s2 + $0x5b0] sm:$0xf0] }
  0x53   : > { %1689 = vmatpush.bf16.msra.mxu2 %v4437_v61  ;;  %v6265_v56 = vld [vmem:[%s9604_s2 + $0x5a4] sm:$0xf]  ;;  %v4869_v60 = vor.u32 %v6233_v49, %v4866_v50  ;;  %v4594_v61 = vld [vmem:[%s9604_s2 + $0x290] sm:$0xf0] }
  0x54   : > { %1677 = vmatpush.bf16.msrb.mxu3 %v4293_v3  ;;  %v6165_v59 = vld [vmem:[%s9604_s2 + $0x284] sm:$0xf]  ;;  %v4722_v63 = vld [vmem:[%s9604_s2 + $0x390] sm:$0xf0]  ;;  %v4997_v2 = vor.u32 %v6265_v56, %v4994_v58  ;;  %v4392_v56 = vld [vmem:[%s9604_s2 + $0xe8] sm:$0xf] }
  0x55   : > { %1639 = vmatpush.bf16.msrb.mxu0 %v4785_v15  ;;  %v6197_v62 = vld [vmem:[%s9604_s2 + $0x384] sm:$0xf]  ;;  %v4850_v1 = vld [vmem:[%s9604_s2 + $0x490] sm:$0xf0]  ;;  %v4597_v3 = vor.u32 %v6165_v59, %v4594_v61  ;;  %v6116_v58 = vld [vmem:[%s9604_s2 + $0xf4] sm:$0xf0] }
  0x56   : > { %1652 = vmatpush.bf16.msrb.mxu1 %v4913_v19  ;;  %v6229_v0 = vld [vmem:[%s9604_s2 + $0x484] sm:$0xf]  ;;  %v4725_v4 = vor.u32 %v6197_v62, %v4722_v63  ;;  %v4978_v6 = vld [vmem:[%s9604_s2 + $0x590] sm:$0xf0]  ;;  %v4648_v62 = vld [vmem:[%s9604_s2 + $0x2e8] sm:$0xf] }
  0x57   : > { %1690 = vmatpush.bf16.msra.mxu2 %v4421_v14  ;;  %v6261_v5 = vld [vmem:[%s9604_s2 + $0x584] sm:$0xf]  ;;  %v4853_v9 = vor.u32 %v6229_v0, %v4850_v1  ;;  %v4578_v10 = vld [vmem:[%s9604_s2 + $0x270] sm:$0xf0]  ;;  %v6180_v63 = vld [vmem:[%s9604_s2 + $0x2f4] sm:$0xf0] }
  0x58   : > { %1678 = vmatpush.bf16.msrb.mxu3 %v4277_v20  ;;  %1640 = vmatmul.bf16.vlgmr.msrb.gmra.mxu0 %v7238_v30  ;;  %v6161_v8 = vld [vmem:[%s9604_s2 + $0x264] sm:$0xf]  ;;  %v4706_v12 = vld [vmem:[%s9604_s2 + $0x370] sm:$0xf0]  ;;  %v4981_v15 = vor.u32 %v6261_v5, %v4978_v6  ;;  %v4393_v5 = vor.u32 %v6116_v58, %v4392_v56  ;;  %v4776_v6 = vld [vmem:[%s9604_s2 + $0x3e8] sm:$0xf] }
  0x59   : > { %1697 = vmatpush.bf16.msra.mxu0 %v4645_v24  ;;  %1653 = vmatmul.bf16.vlgmr.msrb.gmra.mxu1 %v7249_v35  ;;  %v6193_v11 = vld [vmem:[%s9604_s2 + $0x364] sm:$0xf]  ;;  %v4834_v14 = vld [vmem:[%s9604_s2 + $0x470] sm:$0xf0]  ;;  %v4581_v16 = vor.u32 %v6161_v8, %v4578_v10  ;;  %v6212_v8 = vld [vmem:[%s9604_s2 + $0x3f4] sm:$0xf0] }
  0x5a   : > { %1710 = vmatpush.bf16.msra.mxu1 %v4773_v25  ;;  %v6225_v13 = vld [vmem:[%s9604_s2 + $0x464] sm:$0xf]  ;;  %v4709_v17 = vor.u32 %v6193_v11, %v4706_v12  ;;  %v4962_v19 = vld [vmem:[%s9604_s2 + $0x570] sm:$0xf0]  ;;  %v4520_v10 = vld [vmem:[%s9604_s2 + $0x1e8] sm:$0xf]  ;;  %v4649_v12 = vor.u32 %v6180_v63, %v4648_v62 }
  0x5b   : > { %1691 = vmatpush.bf16.msra.mxu2 %v4405_v34  ;;  %1679 = vmatmul.bf16.vlgmr.msrb.gmra.mxu3 %v7043_v55  ;;  %v6257_v18 = vld [vmem:[%s9604_s2 + $0x564] sm:$0xf]  ;;  %v4837_v21 = vor.u32 %v6225_v13, %v4834_v14  ;;  %v4562_v22 = vld [vmem:[%s9604_s2 + $0x250] sm:$0xf0]  ;;  %v6148_v11 = vld [vmem:[%s9604_s2 + $0x1f4] sm:$0xf0] }
  0x5c   : > { %1723 = vmatpush.bf16.msra.mxu3 %v4901_v29  ;;  %v6157_v20 = vld [vmem:[%s9604_s2 + $0x244] sm:$0xf]  ;;  %v4690_v24 = vld [vmem:[%s9604_s2 + $0x350] sm:$0xf0]  ;;  %v4965_v27 = vor.u32 %v6257_v18, %v4962_v19  ;;  %v4376_v14 = vld [vmem:[%s9604_s2 + $0xc8] sm:$0xf]  ;;  %v4521_v19 = vor.u32 %v6148_v11, %v4520_v10 }
  0x5d   : > { %1698 = vmatpush.bf16.msra.mxu0 %v4629_v39  ;;  %v6189_v23 = vld [vmem:[%s9604_s2 + $0x344] sm:$0xf]  ;;  %v4818_v26 = vld [vmem:[%s9604_s2 + $0x450] sm:$0xf0]  ;;  %v4565_v28 = vor.u32 %v6157_v20, %v4562_v22  ;;  %v6176_v18 = vld [vmem:[%s9604_s2 + $0x2d4] sm:$0xf0] }
  0x5e   : > { %1711 = vmatpush.bf16.msra.mxu1 %v4757_v40  ;;  %1692 = vmatmul.bf16.vlgmr.msra.gmra.mxu2 %v7074_v7  ;;  %v6221_v25 = vld [vmem:[%s9604_s2 + $0x444] sm:$0xf]  ;;  %v4693_v29 = vor.u32 %v6189_v23, %v4690_v24  ;;  %v4946_v32 = vld [vmem:[%s9604_s2 + $0x550] sm:$0xf0]  ;;  %v4760_v20 = vld [vmem:[%s9604_s2 + $0x3c8] sm:$0xf] }
  0x5f   : > { %1736 = vmatpush.bf16.msrb.mxu2 %v5029_v38  ;;  %v6253_v31 = vld [vmem:[%s9604_s2 + $0x544] sm:$0xf]  ;;  %v4821_v34 = vor.u32 %v6221_v25, %v4818_v26  ;;  %v4546_v36 = vld [vmem:[%s9604_s2 + $0x230] sm:$0xf0]  ;;  %v4504_v23 = vld [vmem:[%s9604_s2 + $0x1c8] sm:$0xf] }
  0x60   : > { %1724 = vmatpush.bf16.msra.mxu3 %v4885_v44  ;;  %v6153_v33 = vld [vmem:[%s9604_s2 + $0x224] sm:$0xf]  ;;  %v4674_v38 = vld [vmem:[%s9604_s2 + $0x330] sm:$0xf0]  ;;  %v4949_v41 = vor.u32 %v6253_v31, %v4946_v32  ;;  %v6144_v24 = vld [vmem:[%s9604_s2 + $0x1d4] sm:$0xf0] }
  0x61   : > { %1699 = vmatpush.bf16.msra.mxu0 %v4613_v53  ;;  %v6185_v37 = vld [vmem:[%s9604_s2 + $0x324] sm:$0xf]  ;;  %v4802_v40 = vld [vmem:[%s9604_s2 + $0x430] sm:$0xf0]  ;;  %v4549_v44 = vor.u32 %v6153_v33, %v4546_v36  ;;  %v4360_v26 = vld [vmem:[%s9604_s2 + $0xa8] sm:$0xf]  ;;  %v4505_v32 = vor.u32 %v6144_v24, %v4504_v23 }
  0x62   : > { %1712 = vmatpush.bf16.msra.mxu1 %v4741_v54  ;;  %v6217_v39 = vld [vmem:[%s9604_s2 + $0x424] sm:$0xf]  ;;  %v4930_v43 = vld [vmem:[%s9604_s2 + $0x530] sm:$0xf0]  ;;  %v4677_v46 = vor.u32 %v6185_v37, %v4674_v38  ;;  %v6172_v31 = vld [vmem:[%s9604_s2 + $0x2b4] sm:$0xf0] }
  0x63   : > { %1737 = vmatpush.bf16.msrb.mxu2 %v5013_v52  ;;  %v6249_v42 = vld [vmem:[%s9604_s2 + $0x524] sm:$0xf]  ;;  %v4530_v48 = vld [vmem:[%s9604_s2 + $0x210] sm:$0xf0]  ;;  %v4805_v50 = vor.u32 %v6217_v39, %v4802_v40  ;;  %v4744_v33 = vld [vmem:[%s9604_s2 + $0x3a8] sm:$0xf] }
  0x64   : > { %1725 = vmatpush.bf16.msra.mxu3 %v4869_v60  ;;  %v6149_v47 = vld [vmem:[%s9604_s2 + $0x204] sm:$0xf]  ;;  %v4658_v52 = vld [vmem:[%s9604_s2 + $0x310] sm:$0xf0]  ;;  %v4933_v60 = vor.u32 %v6249_v42, %v4930_v43  ;;  %v4488_v37 = vld [vmem:[%s9604_s2 + $0x1a8] sm:$0xf] }
  0x65   : > { %1700 = vmatpush.bf16.msra.mxu0 %v4597_v3  ;;  %v6181_v49 = vld [vmem:[%s9604_s2 + $0x304] sm:$0xf]  ;;  %v4786_v54 = vld [vmem:[%s9604_s2 + $0x410] sm:$0xf0]  ;;  %v4533_v0 = vor.u32 %v6149_v47, %v4530_v48  ;;  %v6140_v38 = vld [vmem:[%s9604_s2 + $0x1b4] sm:$0xf0] }
  0x66   : > { %1713 = vmatpush.bf16.msra.mxu1 %v4725_v4  ;;  %v6213_v53 = vld [vmem:[%s9604_s2 + $0x404] sm:$0xf]  ;;  %v5042_v61 = vld [vmem:[%s9604_s2 + $0x610] sm:$0xf0]  ;;  %v4661_v1 = vor.u32 %v6181_v49, %v4658_v52  ;;  %v4344_v40 = vld [vmem:[%s9604_s2 + $0x88] sm:$0xf] }
  0x67   : > { %1738 = vmatpush.bf16.msrb.mxu2 %v4997_v2  ;;  %v6277_v59 = vld [vmem:[%s9604_s2 + $0x604] sm:$0xf]  ;;  %v4914_v3 = vld [vmem:[%s9604_s2 + $0x510] sm:$0xf0]  ;;  %v4789_v4 = vor.u32 %v6213_v53, %v4786_v54  ;;  %v4600_v43 = vld [vmem:[%s9604_s2 + $0x288] sm:$0xf] }
  0x68   : > { %1726 = vmatpush.bf16.msra.mxu3 %v4853_v9  ;;  %v6245_v2 = vld [vmem:[%s9604_s2 + $0x504] sm:$0xf]  ;;  %v5045_v9 = vor.u32 %v6277_v59, %v5042_v61  ;;  %v4728_v47 = vld [vmem:[%s9604_s2 + $0x388] sm:$0xf]  ;;  %v6200_v48 = vld [vmem:[%s9604_s2 + $0x394] sm:$0xf0] }
  0x69   : > { %1701 = vmatpush.bf16.msra.mxu0 %v4581_v16  ;;  %v4917_v13 = vor.u32 %v6245_v2, %v4914_v3  ;;  %v4777_v16 = vor.u32 %v6212_v8, %v4776_v6  ;;  %v6136_v52 = vld [vmem:[%s9604_s2 + $0x194] sm:$0xf0]  ;;  %v4328_v54 = vld [vmem:[%s9604_s2 + $0x68] sm:$0xf]  ;;  %v4729_v58 = vor.u32 %v6200_v48, %v4728_v47  ;;  %v6114_v47 = vld [vmem:[%s9604_s2 + $0xec] sm:$0xf] }
  0x6a   : > { %1714 = vmatpush.bf16.msra.mxu1 %v4709_v17  ;;  %v4632_v17 = vld [vmem:[%s9604_s2 + $0x2c8] sm:$0xf]  ;;  %v6100_v56 = vld [vmem:[%s9604_s2 + $0x74] sm:$0xf0]  ;;  %v4394_v48 = vld [vmem:[%s9604_s2 + $0xf8] sm:$0xf0] }
  0x6b   : > { %1739 = vmatpush.bf16.msrb.mxu2 %v4981_v15  ;;  %v6112_v15 = vld [vmem:[%s9604_s2 + $0xd4] sm:$0xf0]  ;;  %v4633_v25 = vor.u32 %v6176_v18, %v4632_v17  ;;  %v4584_v59 = vld [vmem:[%s9604_s2 + $0x268] sm:$0xf] }
  0x6c   : > { %1727 = vmatpush.bf16.msra.mxu3 %v4837_v21  ;;  %v6208_v21 = vld [vmem:[%s9604_s2 + $0x3d4] sm:$0xf0]  ;;  %v4377_v22 = vor.u32 %v6112_v15, %v4376_v14  ;;  %v4712_v62 = vld [vmem:[%s9604_s2 + $0x368] sm:$0xf] }
  0x6d   : > { %1702 = vmatpush.bf16.msra.mxu0 %v4565_v28  ;;  %v4761_v28 = vor.u32 %v6208_v21, %v4760_v20  ;;  %v6196_v63 = vld [vmem:[%s9604_s2 + $0x374] sm:$0xf0]  ;;  %v4568_v8 = vld [vmem:[%s9604_s2 + $0x248] sm:$0xf] }
  0x6e   : > { %1715 = vmatpush.bf16.msra.mxu1 %v4693_v29  ;;  %v4616_v29 = vld [vmem:[%s9604_s2 + $0x2a8] sm:$0xf]  ;;  %v6132_v2 = vld [vmem:[%s9604_s2 + $0x174] sm:$0xf0]  ;;  %v4713_v6 = vor.u32 %v6196_v63, %v4712_v62  ;;  %v4397_v63 = vor.u32 %v6114_v47, %v4394_v48 }
  0x6f   : > { %1740 = vmatpush.bf16.msrb.mxu2 %v4965_v27  ;;  %v6108_v27 = vld [vmem:[%s9604_s2 + $0xb4] sm:$0xf0]  ;;  %v4617_v39 = vor.u32 %v6172_v31, %v4616_v29  ;;  %v4696_v11 = vld [vmem:[%s9604_s2 + $0x348] sm:$0xf] }
  0x70   : > { %1728 = vmatpush.bf16.msra.mxu3 %v4821_v34  ;;  %v6204_v34 = vld [vmem:[%s9604_s2 + $0x3b4] sm:$0xf0]  ;;  %v4361_v36 = vor.u32 %v6108_v27, %v4360_v26  ;;  %v4440_v14 = vld [vmem:[%s9604_s2 + $0x148] sm:$0xf] }
  0x71   : > { %1703 = vmatpush.bf16.msra.mxu0 %v4549_v44  ;;  %v4745_v42 = vor.u32 %v6204_v34, %v4744_v33  ;;  %v6168_v44 = vld [vmem:[%s9604_s2 + $0x294] sm:$0xf0]  ;;  %v4296_v17 = vld [vmem:[%s9604_s2 + $0x28] sm:$0xf] }
  0x72   : > { %1716 = vmatpush.bf16.msra.mxu1 %v4677_v46  ;;  %v4489_v46 = vor.u32 %v6140_v38, %v4488_v37  ;;  %v4601_v53 = vor.u32 %v6168_v44, %v4600_v43  ;;  %v6128_v15 = vld [vmem:[%s9604_s2 + $0x154] sm:$0xf0]  ;;  %v4552_v20 = vld [vmem:[%s9604_s2 + $0x228] sm:$0xf] }
  0x73   : > { %1741 = vmatpush.bf16.msrb.mxu2 %v4949_v41  ;;  %v6104_v41 = vld [vmem:[%s9604_s2 + $0x94] sm:$0xf0]  ;;  %v4680_v23 = vld [vmem:[%s9604_s2 + $0x328] sm:$0xf] }
  0x74   : > { %1729 = vmatpush.bf16.msra.mxu3 %v4805_v50  ;;  %v4345_v49 = vor.u32 %v6104_v41, %v4344_v40  ;;  %v4472_v50 = vld [vmem:[%s9604_s2 + $0x188] sm:$0xf]  ;;  %v6092_v18 = vld [vmem:[%s9604_s2 + $0x34] sm:$0xf0] }
  0x75   : > { %1704 = vmatpush.bf16.msra.mxu0 %v4533_v0  ;;  %v4473_v61 = vor.u32 %v6136_v52, %v4472_v50  ;;  %v4329_v0 = vor.u32 %v6100_v56, %v4328_v54  ;;  %v6156_v21 = vld [vmem:[%s9604_s2 + $0x234] sm:$0xf0]  ;;  %v4424_v26 = vld [vmem:[%s9604_s2 + $0x128] sm:$0xf] }
  0x76   : > { %1717 = vmatpush.bf16.msra.mxu1 %v4661_v1  ;;  %v4456_v1 = vld [vmem:[%s9604_s2 + $0x168] sm:$0xf]  ;;  %v6188_v24 = vld [vmem:[%s9604_s2 + $0x334] sm:$0xf0]  ;;  %v4553_v29 = vor.u32 %v6156_v21, %v4552_v20 }
  0x77   : > { %1742 = vmatpush.bf16.msrb.mxu2 %v4933_v60  ;;  %v6164_v60 = vld [vmem:[%s9604_s2 + $0x274] sm:$0xf0]  ;;  %v4457_v10 = vor.u32 %v6132_v2, %v4456_v1  ;;  %v4681_v34 = vor.u32 %v6188_v24, %v4680_v23  ;;  %v4536_v37 = vld [vmem:[%s9604_s2 + $0x208] sm:$0xf]  ;;  %v6110_v1 = vld [vmem:[%s9604_s2 + $0xcc] sm:$0xf] }
  0x78   : > { %1730 = vmatpush.bf16.msra.mxu3 %v4789_v4  ;;  %1705 = vmatmul.bf16.vlgmr.msra.gmra.mxu0 %v7032_v51  ;;  %v4585_v3 = vor.u32 %v6164_v60, %v4584_v59  ;;  %v4312_v4 = vld [vmem:[%s9604_s2 + $0x48] sm:$0xf]  ;;  %v6124_v27 = vld [vmem:[%s9604_s2 + $0x134] sm:$0xf0]  ;;  %v6146_v60 = vld [vmem:[%s9604_s2 + $0x1ec] sm:$0xf] }
  0x79   : > { %1788 = vmatpush.bf16.msrb.mxu0 %v4649_v12  ;;  %1718 = vmatmul.bf16.vlgmr.msra.gmra.mxu1 %v7045_v57  ;;  %v6192_v12 = vld [vmem:[%s9604_s2 + $0x354] sm:$0xf0]  ;;  %v4425_v40 = vor.u32 %v6124_v27, %v4424_v26  ;;  %v5032_v52 = vld [vmem:[%s9604_s2 + $0x5e8] sm:$0xf]  ;;  %v4378_v2 = vld [vmem:[%s9604_s2 + $0xd8] sm:$0xf0] }
  0x7a   : > { %1762 = vmatpush.bf16.msrb.mxu1 %v4393_v5  ;;  %v6096_v5 = vld [vmem:[%s9604_s2 + $0x54] sm:$0xf0]  ;;  %v4888_v54 = vld [vmem:[%s9604_s2 + $0x4c8] sm:$0xf]  ;;  %v4490_v23 = vld [vmem:[%s9604_s2 + $0x1b8] sm:$0xf0] }
  0x7b   : > { %1743 = vmatpush.bf16.msrb.mxu2 %v4917_v13  ;;  %1731 = vmatmul.bf16.vlgmr.msra.gmra.mxu3 %v7238_v30  ;;  %v4313_v13 = vor.u32 %v6096_v5, %v4312_v4  ;;  %v6088_v31 = vld [vmem:[%s9604_s2 + $0x14] sm:$0xf0]  ;;  %v5016_v5 = vld [vmem:[%s9604_s2 + $0x5c8] sm:$0xf]  ;;  %v6102_v26 = vld [vmem:[%s9604_s2 + $0x8c] sm:$0xf] }
  0x7c   : > { %1756 = vmatpush.bf16.msrb.mxu3 %v5045_v9  ;;  %v6160_v9 = vld [vmem:[%s9604_s2 + $0x254] sm:$0xf0]  ;;  %v4856_v20 = vld [vmem:[%s9604_s2 + $0x488] sm:$0xf]  ;;  %v4346_v27 = vld [vmem:[%s9604_s2 + $0x98] sm:$0xf0] }
  0x7d   : > { %1789 = vmatpush.bf16.msrb.mxu0 %v4633_v25  ;;  %v4297_v25 = vor.u32 %v6092_v18, %v4296_v17  ;;  %v6244_v33 = vld [vmem:[%s9604_s2 + $0x4f4] sm:$0xf0]  ;;  %v5000_v18 = vld [vmem:[%s9604_s2 + $0x5a8] sm:$0xf] }
  0x7e   : > { %1763 = vmatpush.bf16.msrb.mxu1 %v4377_v22  ;;  %1744 = vmatmul.bf16.vlgmr.msrb.gmra.mxu2 %v7249_v35  ;;  %v4441_v22 = vor.u32 %v6128_v15, %v4440_v14  ;;  %v6152_v38 = vld [vmem:[%s9604_s2 + $0x214] sm:$0xf0]  ;;  %v6106_v14 = vld [vmem:[%s9604_s2 + $0xac] sm:$0xf]  ;;  %v4362_v15 = vld [vmem:[%s9604_s2 + $0xb8] sm:$0xf0] }
  0x7f   : > { %1801 = vmatpush.bf16.msra.mxu2 %v4777_v16  ;;  %v4569_v16 = vor.u32 %v6160_v9, %v4568_v8  ;;  %v6184_v41 = vld [vmem:[%s9604_s2 + $0x314] sm:$0xf0]  ;;  %v4537_v50 = vor.u32 %v6152_v38, %v4536_v37  ;;  %v4872_v8 = vld [vmem:[%s9604_s2 + $0x4a8] sm:$0xf]  ;;  %v4365_v24 = vor.u32 %v6106_v14, %v4362_v15  ;;  %v4474_v37 = vld [vmem:[%s9604_s2 + $0x198] sm:$0xf0]  ;;  %v4349_v38 = vor.u32 %v6102_v26, %v4346_v27 }
  0x80   : > { %1775 = vmatpush.bf16.msra.mxu3 %v4521_v19  ;;  %v4697_v19 = vor.u32 %v6192_v12, %v4696_v11  ;;  %v6280_v43 = vld [vmem:[%s9604_s2 + $0x614] sm:$0xf0]  ;;  %v4506_v11 = vld [vmem:[%s9604_s2 + $0x1d8] sm:$0xf0]  ;;  %v4381_v12 = vor.u32 %v6110_v1, %v4378_v2  ;;  %v4824_v47 = vld [vmem:[%s9604_s2 + $0x448] sm:$0xf] }
  0x81   : > { %1790 = vmatpush.bf16.msrb.mxu0 %v4617_v39  ;;  %v4664_v39 = vld [vmem:[%s9604_s2 + $0x308] sm:$0xf]  ;;  %v6236_v9 = vld [vmem:[%s9604_s2 + $0x4b4] sm:$0xf0]  ;;  %v4442_v1 = vld [vmem:[%s9604_s2 + $0x158] sm:$0xf0] }
  0x82   : > { %1764 = vmatpush.bf16.msrb.mxu1 %v4361_v36  ;;  %v4408_v36 = vld [vmem:[%s9604_s2 + $0x108] sm:$0xf]  ;;  %v4665_v56 = vor.u32 %v6184_v41, %v4664_v39  ;;  %v6232_v21 = vld [vmem:[%s9604_s2 + $0x494] sm:$0xf0]  ;;  %v4330_v41 = vld [vmem:[%s9604_s2 + $0x78] sm:$0xf0] }
  0x83   : > { %1802 = vmatpush.bf16.msra.mxu2 %v4761_v28  ;;  %v4280_v28 = vld [vmem:[%s9604_s2 + $0x8] sm:$0xf]  ;;  %v6224_v48 = vld [vmem:[%s9604_s2 + $0x454] sm:$0xf0]  ;;  %v4426_v14 = vld [vmem:[%s9604_s2 + $0x138] sm:$0xf0] }
  0x84   : > { %1776 = vmatpush.bf16.msra.mxu3 %v4505_v32  ;;  %v4904_v32 = vld [vmem:[%s9604_s2 + $0x4e8] sm:$0xf]  ;;  %v4281_v44 = vor.u32 %v6088_v31, %v4280_v28  ;;  %v4857_v28 = vor.u32 %v6232_v21, %v4856_v20  ;;  %v6086_v20 = vld [vmem:[%s9604_s2 + $0xc] sm:$0xf]  ;;  %v4282_v21 = vld [vmem:[%s9604_s2 + $0x18] sm:$0xf0] }
  0x85   : > { %1791 = vmatpush.bf16.msrb.mxu0 %v4601_v53  ;;  %v6276_v53 = vld [vmem:[%s9604_s2 + $0x5f4] sm:$0xf0]  ;;  %v4984_v31 = vld [vmem:[%s9604_s2 + $0x588] sm:$0xf]  ;;  %v4778_v26 = vld [vmem:[%s9604_s2 + $0x3f8] sm:$0xf0] }
  0x86   : > { %1765 = vmatpush.bf16.msrb.mxu1 %v4345_v49  ;;  %v4905_v49 = vor.u32 %v6244_v33, %v4904_v32  ;;  %v6264_v32 = vld [vmem:[%s9604_s2 + $0x594] sm:$0xf0]  ;;  %v4840_v33 = vld [vmem:[%s9604_s2 + $0x468] sm:$0xf] }
  0x87   : > { %1803 = vmatpush.bf16.msra.mxu2 %v4745_v42  ;;  %v5048_v42 = vld [vmem:[%s9604_s2 + $0x608] sm:$0xf]  ;;  %v4985_v39 = vor.u32 %v6264_v32, %v4984_v31  ;;  %v6174_v31 = vld [vmem:[%s9604_s2 + $0x2cc] sm:$0xf]  ;;  %v4285_v32 = vor.u32 %v6086_v20, %v4282_v21  ;;  %v4714_v21 = vld [vmem:[%s9604_s2 + $0x378] sm:$0xf0] }
  0x88   : > { %1777 = vmatpush.bf16.msra.mxu3 %v4489_v46  ;;  %v6120_v46 = vld [vmem:[%s9604_s2 + $0x114] sm:$0xf0]  ;;  %v5049_v59 = vor.u32 %v6280_v43, %v5048_v42 }
  0x89   : > { %1792 = vmatpush.bf16.msrb.mxu0 %v4585_v3  ;;  %v4409_v62 = vor.u32 %v6120_v46, %v4408_v36  ;;  %v6134_v36 = vld [vmem:[%s9604_s2 + $0x18c] sm:$0xf]  ;;  %v6260_v46 = vld [vmem:[%s9604_s2 + $0x574] sm:$0xf0] }
  0x8a   : > { %1766 = vmatpush.bf16.msrb.mxu1 %v4329_v0  ;;  %v5033_v0 = vor.u32 %v6276_v53, %v5032_v52  ;;  %v4477_v43 = vor.u32 %v6134_v36, %v4474_v37  ;;  %v4410_v36 = vld [vmem:[%s9604_s2 + $0x118] sm:$0xf0] }
  0x8b   : > { %1804 = vmatpush.bf16.msra.mxu2 %v4729_v58  ;;  %5055 = vmatmul.msk.bf16.vlgmr.msrb.gmra.mxu3 %vm1576_vm0, %v7151_v45  ;;  %v6240_v58 = vld [vmem:[%s9604_s2 + $0x4d4] sm:$0xf0] }
  0x8c   : > { %1778 = vmatpush.bf16.msra.mxu3 %v4473_v61  ;;  %v4522_v61 = vld [vmem:[%s9604_s2 + $0x1f8] sm:$0xf0]  ;;  %v4889_v3 = vor.u32 %v6240_v58, %v4888_v54  ;;  %v6094_v54 = vld [vmem:[%s9604_s2 + $0x4c] sm:$0xf]  ;;  %v4825_v58 = vor.u32 %v6224_v48, %v4824_v47 }
  0x8d   : > { %1793 = vmatpush.bf16.msrb.mxu0 %v4569_v16  ;;  %v4525_v4 = vor.u32 %v6146_v60, %v4522_v61  ;;  %v4873_v16 = vor.u32 %v6236_v9, %v4872_v8  ;;  %v4952_v60 = vld [vmem:[%s9604_s2 + $0x548] sm:$0xf]  ;;  %v6256_v61 = vld [vmem:[%s9604_s2 + $0x554] sm:$0xf0]  ;;  %v6238_v47 = vld [vmem:[%s9604_s2 + $0x4cc] sm:$0xf] }
  0x8e   : > { %1767 = vmatpush.bf16.msrb.mxu1 %v4313_v13  ;;  %v4936_v9 = vld [vmem:[%s9604_s2 + $0x528] sm:$0xf]  ;;  %v4890_v48 = vld [vmem:[%s9604_s2 + $0x4d8] sm:$0xf0] }
  0x8f   : > { %1805 = vmatpush.bf16.msra.mxu2 %v4713_v6  ;;  %v6272_v6 = vld [vmem:[%s9604_s2 + $0x5d4] sm:$0xf0] }
  0x90   : > { %1779 = vmatpush.bf16.msra.mxu3 %v4457_v10  ;;  %v6142_v10 = vld [vmem:[%s9604_s2 + $0x1cc] sm:$0xf]  ;;  %v5017_v13 = vor.u32 %v6272_v6, %v5016_v5  ;;  %v4298_v5 = vld [vmem:[%s9604_s2 + $0x38] sm:$0xf0] }
  0x91   : > { %1794 = vmatpush.bf16.msrb.mxu0 %v4553_v29  ;;  %v4509_v17 = vor.u32 %v6142_v10, %v4506_v11  ;;  %v6252_v10 = vld [vmem:[%s9604_s2 + $0x534] sm:$0xf0]  ;;  %v4792_v11 = vld [vmem:[%s9604_s2 + $0x408] sm:$0xf] }
  0x92   : > { %1768 = vmatpush.bf16.msrb.mxu1 %v4297_v25 }
  0x93   : > { %1806 = vmatpush.bf16.msra.mxu2 %v4697_v19  ;;  %v6268_v19 = vld [vmem:[%s9604_s2 + $0x5b4] sm:$0xf0] }
  0x94   : > { %1780 = vmatpush.bf16.msra.mxu3 %v4441_v22  ;;  %v6138_v22 = vld [vmem:[%s9604_s2 + $0x1ac] sm:$0xf]  ;;  %v5001_v25 = vor.u32 %v6268_v19, %v5000_v18  ;;  %v4937_v18 = vor.u32 %v6252_v10, %v4936_v9  ;;  %v4920_v19 = vld [vmem:[%s9604_s2 + $0x508] sm:$0xf] }
  0x95   : > { %1795 = vmatpush.bf16.msrb.mxu0 %v4537_v50  ;;  %v4493_v29 = vor.u32 %v6138_v22, %v4490_v23  ;;  %v4458_v50 = vld [vmem:[%s9604_s2 + $0x178] sm:$0xf0]  ;;  %v6230_v10 = vld [vmem:[%s9604_s2 + $0x48c] sm:$0xf] }
  0x96   : > { %1769 = vmatpush.bf16.msrb.mxu1 %v4281_v44  ;;  %v4968_v44 = vld [vmem:[%s9604_s2 + $0x568] sm:$0xf] }
  0x97   : > { %1807 = vmatpush.bf16.msra.mxu2 %v4681_v34  ;;  %v6228_v34 = vld [vmem:[%s9604_s2 + $0x474] sm:$0xf0]  ;;  %v4969_v53 = vor.u32 %v6260_v46, %v4968_v44  ;;  %v4762_v46 = vld [vmem:[%s9604_s2 + $0x3d8] sm:$0xf0] }
  0x98   : > { %1781 = vmatpush.bf16.msra.mxu3 %v4425_v40  ;;  %1796 = vmatmul.bf16.vlgmr.msrb.gmra.mxu0 %v7032_v51  ;;  %v6098_v40 = vld [vmem:[%s9604_s2 + $0x6c] sm:$0xf]  ;;  %v4841_v42 = vor.u32 %v6228_v34, %v4840_v33  ;;  %v4634_v33 = vld [vmem:[%s9604_s2 + $0x2d8] sm:$0xf0] }
  0x99   : > { %1847 = vmatpush.bf16.msra.mxu0 %v5049_v59  ;;  %1770 = vmatmul.bf16.vlgmr.msrb.gmra.mxu1 %v7043_v55  ;;  %v4333_v52 = vor.u32 %v6098_v40, %v4330_v41  ;;  %v6118_v34 = vld [vmem:[%s9604_s2 + $0x10c] sm:$0xf] }
  0x9a   : > { %1814 = vmatpush.bf16.msra.mxu1 %v4905_v49  ;;  %v6130_v49 = vld [vmem:[%s9604_s2 + $0x16c] sm:$0xf]  ;;  %v4413_v44 = vor.u32 %v6118_v34, %v4410_v36 }
  0x9b   : > { %1808 = vmatpush.bf16.msra.mxu2 %v4665_v56  ;;  %v4314_v56 = vld [vmem:[%s9604_s2 + $0x58] sm:$0xf0]  ;;  %v4461_v59 = vor.u32 %v6130_v49, %v4458_v50  ;;  %v6170_v50 = vld [vmem:[%s9604_s2 + $0x2ac] sm:$0xf] }
  0x9c   : > { %1782 = vmatpush.bf16.msra.mxu3 %v4409_v62  ;;  %v4808_v62 = vld [vmem:[%s9604_s2 + $0x428] sm:$0xf]  ;;  %v4317_v2 = vor.u32 %v6094_v54, %v4314_v56  ;;  %v5018_v54 = vld [vmem:[%s9604_s2 + $0x5d8] sm:$0xf0]  ;;  %v6190_v34 = vld [vmem:[%s9604_s2 + $0x34c] sm:$0xf] }
  0x9d   : > { %1866 = vmatpush.bf16.msrb.mxu0 %v4525_v4  ;;  %v6090_v4 = vld [vmem:[%s9604_s2 + $0x2c] sm:$0xf] }
  0x9e   : > { %1815 = vmatpush.bf16.msra.mxu1 %v4889_v3  ;;  %1809 = vmatmul.bf16.vlgmr.msra.gmra.mxu2 %v7045_v57  ;;  %v4953_v3 = vor.u32 %v6256_v61, %v4952_v60  ;;  %v4301_v15 = vor.u32 %v6090_v4, %v4298_v5  ;;  %v4746_v61 = vld [vmem:[%s9604_s2 + $0x3b8] sm:$0xf0] }
  0x9f   : > { %1853 = vmatpush.bf16.msrb.mxu2 %v4397_v63  ;;  %1783 = vmatmul.bf16.vlgmr.msra.gmra.mxu3 %v7074_v7  ;;  %v6220_v63 = vld [vmem:[%s9604_s2 + $0x434] sm:$0xf0]  ;;  %v5002_v4 = vld [vmem:[%s9604_s2 + $0x5b8] sm:$0xf0] }
  0xa0   : > { %1827 = vmatpush.bf16.msrb.mxu3 %v5033_v0  ;;  %v6126_v0 = vld [vmem:[%s9604_s2 + $0x14c] sm:$0xf]  ;;  %v4809_v6 = vor.u32 %v6220_v63, %v4808_v62  ;;  %v4874_v63 = vld [vmem:[%s9604_s2 + $0x4b8] sm:$0xf0] }
  0xa1   : > { %1867 = vmatpush.bf16.msrb.mxu0 %v4509_v17  ;;  %v4445_v8 = vor.u32 %v6126_v0, %v4442_v1  ;;  %v4650_v17 = vld [vmem:[%s9604_s2 + $0x2f8] sm:$0xf0]  ;;  %v6234_v62 = vld [vmem:[%s9604_s2 + $0x4ac] sm:$0xf] }
  0xa2   : > { %1816 = vmatpush.bf16.msra.mxu1 %v4873_v16  ;;  %v6178_v16 = vld [vmem:[%s9604_s2 + $0x2ec] sm:$0xf] }
  0xa3   : > { %1854 = vmatpush.bf16.msrb.mxu2 %v4381_v12  ;;  %v6216_v12 = vld [vmem:[%s9604_s2 + $0x414] sm:$0xf0]  ;;  %v4653_v27 = vor.u32 %v6178_v16, %v4650_v17  ;;  %v6166_v1 = vld [vmem:[%s9604_s2 + $0x28c] sm:$0xf] }
  0xa4   : > { %1828 = vmatpush.bf16.msrb.mxu3 %v5017_v13  ;;  %v6122_v13 = vld [vmem:[%s9604_s2 + $0x12c] sm:$0xf]  ;;  %v4793_v22 = vor.u32 %v6216_v12, %v4792_v11  ;;  %v4858_v11 = vld [vmem:[%s9604_s2 + $0x498] sm:$0xf0] }
  0xa5   : > { %1868 = vmatpush.bf16.msrb.mxu0 %v4493_v29  ;;  %v4429_v23 = vor.u32 %v6122_v13, %v4426_v14  ;;  %v4906_v29 = vld [vmem:[%s9604_s2 + $0x4f8] sm:$0xf0]  ;;  %v6162_v13 = vld [vmem:[%s9604_s2 + $0x26c] sm:$0xf] }
  0xa6   : > { %1817 = vmatpush.bf16.msra.mxu1 %v4857_v28  ;;  %v6242_v28 = vld [vmem:[%s9604_s2 + $0x4ec] sm:$0xf]  ;;  %v4586_v14 = vld [vmem:[%s9604_s2 + $0x278] sm:$0xf0] }
  0xa7   : > { %1855 = vmatpush.bf16.msrb.mxu2 %v4365_v24  ;;  %v6248_v24 = vld [vmem:[%s9604_s2 + $0x514] sm:$0xf0]  ;;  %v4909_v41 = vor.u32 %v6242_v28, %v4906_v29  ;;  %v6262_v16 = vld [vmem:[%s9604_s2 + $0x58c] sm:$0xf]  ;;  %v4589_v20 = vor.u32 %v6162_v13, %v4586_v14  ;;  %v4970_v29 = vld [vmem:[%s9604_s2 + $0x578] sm:$0xf0] }
  0xa8   : > { %1829 = vmatpush.bf16.msrb.mxu3 %v5001_v25  ;;  %5056 = vmatmul.msk.bf16.vlgmr.msra.gmra.mxu0 %vm1576_vm0, %v7151_v45  ;;  %v6210_v25 = vld [vmem:[%s9604_s2 + $0x3ec] sm:$0xf]  ;;  %v4921_v37 = vor.u32 %v6248_v24, %v4920_v19 }
  0xa9   : > { %1869 = vmatpush.bf16.msrb.mxu0 %v4477_v43  ;;  %v4781_v40 = vor.u32 %v6210_v25, %v4778_v26  ;;  %v4637_v43 = vor.u32 %v6174_v31, %v4634_v33  ;;  %v6194_v19 = vld [vmem:[%s9604_s2 + $0x36c] sm:$0xf] }
  0xaa   : > { %1818 = vmatpush.bf16.msra.mxu1 %v4841_v42  ;;  %v6206_v42 = vld [vmem:[%s9604_s2 + $0x3cc] sm:$0xf] }
  0xab   : > { %1856 = vmatpush.bf16.msrb.mxu2 %v4349_v38  ;;  %v6274_v38 = vld [vmem:[%s9604_s2 + $0x5ec] sm:$0xf]  ;;  %v4765_v56 = vor.u32 %v6206_v42, %v4762_v46 }
  0xac   : > { %1830 = vmatpush.bf16.msrb.mxu3 %v4985_v39  ;;  %v5034_v39 = vld [vmem:[%s9604_s2 + $0x5f8] sm:$0xf0]  ;;  %v6158_v26 = vld [vmem:[%s9604_s2 + $0x24c] sm:$0xf] }
  0xad   : > { %1870 = vmatpush.bf16.msrb.mxu0 %v4461_v59  ;;  %v5037_v49 = vor.u32 %v6274_v38, %v5034_v39  ;;  %v6202_v59 = vld [vmem:[%s9604_s2 + $0x3ac] sm:$0xf]  ;;  %v4698_v38 = vld [vmem:[%s9604_s2 + $0x358] sm:$0xf0] }
  0xae   : > { %1819 = vmatpush.bf16.msra.mxu1 %v4825_v58  ;;  %v4893_v58 = vor.u32 %v6238_v47, %v4890_v48  ;;  %v4749_v5 = vor.u32 %v6202_v59, %v4746_v61  ;;  %v6258_v28 = vld [vmem:[%s9604_s2 + $0x56c] sm:$0xf]  ;;  %v4954_v47 = vld [vmem:[%s9604_s2 + $0x558] sm:$0xf0]  ;;  %v4701_v48 = vor.u32 %v6190_v34, %v4698_v38 }
  0xaf   : > { %1857 = vmatpush.bf16.msrb.mxu2 %v4333_v52  ;;  %v4618_v52 = vld [vmem:[%s9604_s2 + $0x2b8] sm:$0xf0]  ;;  %v6222_v39 = vld [vmem:[%s9604_s2 + $0x44c] sm:$0xf] }
  0xb0   : > { %1831 = vmatpush.bf16.msrb.mxu3 %v4969_v53  ;;  %v6270_v53 = vld [vmem:[%s9604_s2 + $0x5cc] sm:$0xf]  ;;  %v4621_v60 = vor.u32 %v6170_v50, %v4618_v52 }
  0xb1   : > { %1871 = vmatpush.bf16.msrb.mxu0 %v4445_v8  ;;  %v5021_v0 = vor.u32 %v6270_v53, %v5018_v54  ;;  %v6198_v8 = vld [vmem:[%s9604_s2 + $0x38c] sm:$0xf]  ;;  %v4682_v53 = vld [vmem:[%s9604_s2 + $0x338] sm:$0xf0] }
  0xb2   : > { %1820 = vmatpush.bf16.msra.mxu1 %v4809_v6  ;;  %v4877_v6 = vor.u32 %v6234_v62, %v4874_v63  ;;  %v6154_v42 = vld [vmem:[%s9604_s2 + $0x22c] sm:$0xf]  ;;  %v4938_v63 = vld [vmem:[%s9604_s2 + $0x538] sm:$0xf0] }
  0xb3   : > { %1858 = vmatpush.bf16.msrb.mxu2 %v4317_v2  ;;  %v4602_v2 = vld [vmem:[%s9604_s2 + $0x298] sm:$0xf0]  ;;  %v6254_v46 = vld [vmem:[%s9604_s2 + $0x54c] sm:$0xf] }
  0xb4   : > { %1832 = vmatpush.bf16.msrb.mxu3 %v4953_v3  ;;  %v6266_v3 = vld [vmem:[%s9604_s2 + $0x5ac] sm:$0xf]  ;;  %v4605_v9 = vor.u32 %v6166_v1, %v4602_v2  ;;  %v5050_v1 = vld [vmem:[%s9604_s2 + $0x618] sm:$0xf0] }
  0xb5   : > { %1872 = vmatpush.bf16.msrb.mxu0 %v4429_v23  ;;  %v5005_v12 = vor.u32 %v6266_v3, %v5002_v4  ;;  %v4842_v23 = vld [vmem:[%s9604_s2 + $0x478] sm:$0xf0]  ;;  %v6186_v50 = vld [vmem:[%s9604_s2 + $0x32c] sm:$0xf] }
  0xb6   : > { %1821 = vmatpush.bf16.msra.mxu1 %v4793_v22  ;;  %v6226_v22 = vld [vmem:[%s9604_s2 + $0x46c] sm:$0xf]  ;;  %v7939_v25 = vpop.f32.mrf.mxu1  ;;  %v4685_v3 = vor.u32 %v6186_v50, %v4682_v53 }
  0xb7   : > { %1859 = vmatpush.bf16.msrb.mxu2 %v4301_v15  ;;  %v4845_v33 = vor.u32 %v6226_v22, %v4842_v23  ;;  %v6218_v54 = vld [vmem:[%s9604_s2 + $0x42c] sm:$0xf]  ;;  %v6296_v23 = vld [vmem:[%s9606_s4 + $0x78] sm:$0xff] }
  0xb8   : > { %1833 = vmatpush.bf16.msrb.mxu3 %v4937_v18  ;;  %v4861_v18 = vor.u32 %v6230_v10, %v4858_v11  ;;  %v6150_v59 = vld [vmem:[%s9604_s2 + $0x20c] sm:$0xf] }
  0xb9   : > { %1822 = vmatmul.bf16.vlgmr.msra.gmra.mxu1 %v7238_v30  ;;  %1873 = vmatpush.bf16.msrb.mxu0 %v4413_v44  ;;  %v6250_v61 = vld [vmem:[%s9604_s2 + $0x52c] sm:$0xf] }
  0xba   : > { %1879 = vmatpush.bf16.msrb.mxu1 %v4653_v27  ;;  %v4570_v27 = vld [vmem:[%s9604_s2 + $0x258] sm:$0xf0]  ;;  %v4941_v10 = vor.u32 %v6250_v61, %v4938_v63  ;;  %v6214_v11 = vld [vmem:[%s9604_s2 + $0x40c] sm:$0xf] }
  0xbb   : > { %1860 = vmatpush.bf16.msrb.mxu2 %v4285_v32  ;;  %v7919_v15 = vpop.f32.mrf.mxu0  ;;  %v4717_v32 = vor.u32 %v6194_v19, %v4714_v21  ;;  %v4573_v36 = vor.u32 %v6158_v26, %v4570_v27  ;;  %v6246_v14 = vld [vmem:[%s9604_s2 + $0x50c] sm:$0xf]  ;;  %v6288_v19 = vld [vmem:[%s9606_s4 + $0x38] sm:$0xff]  ;;  %v6295_v27 = vld [vmem:[%s9606_s4 + $0x70] sm:$0xff] }
  0xbc   : > { %1834 = vmatpush.bf16.msrb.mxu3 %v4921_v37  ;;  %1874 = vmatmul.bf16.vlgmr.msrb.gmra.mxu0 %v7074_v7  ;;  %v4986_v7 = vld [vmem:[%s9604_s2 + $0x598] sm:$0xf0] }
  0xbd   : > { %1918 = vmatpush.bf16.msra.mxu0 %v5037_v49  ;;  %v4989_v24 = vor.u32 %v6262_v16, %v4986_v7  ;;  %v4922_v16 = vld [vmem:[%s9604_s2 + $0x518] sm:$0xf0] }
  0xbe   : > { %1880 = vmatpush.bf16.msrb.mxu1 %v4637_v43  ;;  %1861 = vmatmul.bf16.vlgmr.msrb.gmra.mxu2 %v7043_v55  ;;  %v4730_v55 = vld [vmem:[%s9604_s2 + $0x398] sm:$0xf0]  ;;  %v7958_v37 = vpop.f32.mrf.mxu3  ;;  %v1604_v62 = vpop.f32.mrf.mxu1 }
  0xbf   : > { %1905 = vmatpush.bf16.msra.mxu2 %v4909_v41  ;;  %1835 = vmatmul.bf16.vlgmr.msrb.gmra.mxu3 %v7249_v35  ;;  %v4733_v17 = vor.u32 %v6198_v8, %v4730_v55  ;;  %v4973_v41 = vor.u32 %v6258_v28, %v4970_v29  ;;  %v4554_v43 = vld [vmem:[%s9604_s2 + $0x238] sm:$0xf0]  ;;  %v6182_v8 = vld [vmem:[%s9604_s2 + $0x30c] sm:$0xf] }
  0xc0   : > { %1892 = vmatpush.bf16.msra.mxu3 %v4781_v40  ;;  %v7953_v31 = vpop.f32.mrf.mxu2  ;;  %v4826_v40 = vld [vmem:[%s9604_s2 + $0x458] sm:$0xf0]  ;;  %v4557_v52 = vor.u32 %v6154_v42, %v4554_v43  ;;  %v6282_v42 = vld [vmem:[%s9606_s4 + $0x8] sm:$0xff] }
  0xc1   : > { %1919 = vmatpush.bf16.msra.mxu0 %v5021_v0  ;;  %v4829_v49 = vor.u32 %v6222_v39, %v4826_v40  ;;  %v6278_v0 = vld [vmem:[%s9604_s2 + $0x60c] sm:$0xf] }
  0xc2   : > { %1881 = vmatpush.bf16.msrb.mxu1 %v4621_v60  ;;  %v4538_v60 = vld [vmem:[%s9604_s2 + $0x218] sm:$0xf0]  ;;  %v5053_v13 = vor.u32 %v6278_v0, %v5050_v1 }
  0xc3   : > { %1906 = vmatpush.bf16.msra.mxu2 %v4893_v58  ;;  %v1591_v44 = vpop.f32.mrf.mxu0  ;;  %v4957_v58 = vor.u32 %v6254_v46, %v4954_v47  ;;  %v6281_v46 = vld [vmem:[%s9606_s4] sm:$0xff]  ;;  %v6304_v1 = vld [vmem:[%s9606_s4 + $0xb8] sm:$0xff] }
  0xc4   : > { %1893 = vmatpush.bf16.msra.mxu3 %v4765_v56  ;;  %v4810_v56 = vld [vmem:[%s9604_s2 + $0x438] sm:$0xf0] }
  0xc5   : > { %1920 = vmatpush.bf16.msra.mxu0 %v5005_v12  ;;  %v4813_v4 = vor.u32 %v6218_v54, %v4810_v56  ;;  %v4794_v12 = vld [vmem:[%s9604_s2 + $0x418] sm:$0xf0] }
  0xc6   : > { %1882 = vmatpush.bf16.msrb.mxu1 %v4605_v9  ;;  %v4666_v9 = vld [vmem:[%s9604_s2 + $0x318] sm:$0xf0]  ;;  %v1630_v55 = vpop.f32.mrf.mxu3 }
  0xc7   : > { %1907 = vmatpush.bf16.msra.mxu2 %v4877_v6  ;;  %v4541_v6 = vor.u32 %v6150_v59, %v4538_v60 }
  0xc8   : > { %1894 = vmatpush.bf16.msra.mxu3 %v4749_v5  ;;  %v1617_v2 = vpop.f32.mrf.mxu2  ;;  %v8014_v5 = vld [vmem:[%s9605_s3] sm:$0xf] }
  0xc9   : > { %1921 = vmatpush.bf16.msra.mxu0 %v4989_v24  ;;  %v588_v7 = vperm.slane %v8014_v5, 0  ;;  %v6287_v24 = vld [vmem:[%s9606_s4 + $0x30] sm:$0xff]  ;;  %v589_v54 = vperm.slane %v8014_v5, 1 }
  0xca   : > { %1883 = vmatpush.bf16.msrb.mxu1 %v4589_v20  ;;  %v4925_v20 = vor.u32 %v6246_v14, %v4922_v16  ;;  %v6303_v2 = vld [vmem:[%s9606_s4 + $0xb0] sm:$0xff]  ;;  %v6300_v16 = vld [vmem:[%s9606_s4 + $0x98] sm:$0xff] }
  0xcb   : > { %1908 = vmatpush.bf16.msra.mxu2 %v4861_v18  ;;  %v4797_v18 = vor.u32 %v6214_v11, %v4794_v12  ;;  %v1590_v21 = vadd.f32 %v7919_v15, %v588_v7  ;;  %v6299_v7 = vld [vmem:[%s9606_s4 + $0x90] sm:$0xff] }
  0xcc   : > { %1895 = vmatpush.bf16.msra.mxu3 %v4733_v17  ;;  %v4669_v17 = vor.u32 %v6182_v8, %v4666_v9  ;;  %v6302_v9 = vld [vmem:[%s9606_s4 + $0xa8] sm:$0xff] }
  0xcd   : > { %1922 = vmatpush.bf16.msra.mxu0 %v4973_v41  ;;  %v1603_v15 = vadd.f32 %v7939_v25, %v1590_v21  ;;  %v6292_v41 = vld [vmem:[%s9606_s4 + $0x58] sm:$0xff] }
  0xce   : > { %1884 = vmatpush.bf16.msrb.mxu1 %v4573_v36  ;;  %v6293_v36 = vld [vmem:[%s9606_s4 + $0x60] sm:$0xff] }
  0xcf   : > { %1909 = vmatpush.bf16.msra.mxu2 %v4845_v33  ;;  %v1616_v28 = vadd.f32 %v7953_v31, %v1603_v15  ;;  %v6297_v15 = vld [vmem:[%s9606_s4 + $0x80] sm:$0xff] }
  0xd0   : > { %1896 = vmatpush.bf16.msra.mxu3 %v4717_v32  ;;  %v1667_v22 = vpop.f32.mrf.mxu2  ;;  %v6284_v32 = vld [vmem:[%s9606_s4 + $0x18] sm:$0xff] }
  0xd1   : > { %1923 = vmatpush.bf16.msra.mxu0 %v4957_v58  ;;  %v1629_v25 = vadd.f32 %v7958_v37, %v1616_v28  ;;  %v6283_v37 = vld [vmem:[%s9606_s4 + $0x10] sm:$0xff] }
  0xd2   : > { %1885 = vmatpush.bf16.msrb.mxu1 %v4557_v52  ;;  %v6289_v52 = vld [vmem:[%s9606_s4 + $0x40] sm:$0xff]  ;;  %v6311_v28 = vld [vmem:[%s9606_s4 + $0xf0] sm:$0xff] }
  0xd3   : > { %1910 = vmatpush.bf16.msra.mxu2 %v4829_v49  ;;  %v6290_v49 = vld [vmem:[%s9606_s4 + $0x48] sm:$0xff] }
  0xd4   : > { %1897 = vmatpush.bf16.msra.mxu3 %v4701_v48 }
  0xd5   : > { %1924 = vmatpush.bf16.msra.mxu0 %v4941_v10  ;;  %v1641_v26 = vpop.f32.mrf.mxu0  ;;  %v6301_v10 = vld [vmem:[%s9606_s4 + $0xa0] sm:$0xff] }
  0xd6   : > { %1886 = vmatpush.bf16.msrb.mxu1 %v4541_v6  ;;  %v1654_v29 = vpop.f32.mrf.mxu1  ;;  %v1642_v31 = vadd.f32 %v1641_v26, %v1629_v25  ;;  %v6310_v25 = vld [vmem:[%s9606_s4 + $0xe8] sm:$0xff] }
  0xd7   : > { %1911 = vmatpush.bf16.msra.mxu2 %v4813_v4 }
  0xd8   : > { %1898 = vmatpush.bf16.msra.mxu3 %v4685_v3  ;;  %v1655_v40 = vadd.f32 %v1654_v29, %v1642_v31  ;;  %v590_v29 = vperm.slane %v8014_v5, 2  ;;  %v6309_v31 = vld [vmem:[%s9606_s4 + $0xe0] sm:$0xff] }
  0xd9   : > { %1887 = vmatmul.bf16.vlgmr.msrb.gmra.mxu1 %v7032_v51  ;;  %1925 = vmatpush.bf16.msra.mxu0 %v4925_v20  ;;  %v6286_v51 = vld [vmem:[%s9606_s4 + $0x28] sm:$0xff] }
  0xda   : > { %1938 = vmatpush.bf16.msra.mxu1 %v5053_v13  ;;  %v1668_v43 = vadd.f32 %v1667_v22, %v1655_v40  ;;  %v6298_v20 = vld [vmem:[%s9606_s4 + $0x88] sm:$0xff] }
  0xdb   : > { %1912 = vmatpush.bf16.msra.mxu2 %v4797_v18 }
  0xdc   : > { %1899 = vmatpush.bf16.msra.mxu3 %v4669_v17  ;;  %1926 = vmatmul.bf16.vlgmr.msra.gmra.mxu0 %v7249_v35  ;;  %v6294_v35 = vld [vmem:[%s9606_s4 + $0x68] sm:$0xff]  ;;  %v1944_v48 = vmax.f32 %v1668_v43, 0.0 }
  0xdd   : > { %v1643_v34 = vpop.f32.mrf.mxu0 }
  0xde   : > { %2225 = vmatpush.bf16.msrb.mxu1 %v6296_v23  ;;  %1913 = vmatmul.bf16.vlgmr.msra.gmra.mxu2 %v7238_v30  ;;  %v6285_v30 = vld [vmem:[%s9606_s4 + $0x20] sm:$0xff]  ;;  %v1680_v33 = vpop.f32.mrf.mxu3  ;;  %v1656_v38 = vpop.f32.mrf.mxu1  ;;  %v1948_v50 = vpack.c.bf16 %v1944_v48, %v1944_v48 }
  0xdf   : > { %1900 = vmatmul.bf16.vlgmr.msra.gmra.mxu3 %v7045_v57  ;;  %v1669_v57 = vpop.f32.mrf.mxu2  ;;  %v1681_v58 = vadd.f32 %v1680_v33, %v589_v54  ;;  %2238 = vmatpush.bf16.msrb.mxu2 %v6304_v1  ;;  %v591_v54 = vperm.slane %v8014_v5, 3 }
  0xe0   : > { %2212 = vmatpush.bf16.msrb.mxu3 %v6288_v19 }
  0xe2   : > { %2226 = vmatpush.bf16.msrb.mxu1 %v6295_v27 }
  0xe3   : > { %2239 = vmatpush.bf16.msrb.mxu2 %v6303_v2 }
  0xe4   : > { %2213 = vmatpush.bf16.msrb.mxu3 %v6287_v24 }
  0xe6   : > { %2227 = vmatpush.bf16.msrb.mxu1 %v6294_v35  ;;  %v1682_v44 = vpop.f32.mrf.mxu3 }
  0xe7   : > { %v1693_v39 = vpop.f32.mrf.mxu2  ;;  %2240 = vmatpush.bf16.msrb.mxu2 %v6302_v9 }
  0xe8   : > { %2214 = vmatpush.bf16.msrb.mxu3 %v6286_v51  ;;  %v1694_v62 = vadd.f32 %v1693_v39, %v1681_v58  ;;  %v6312_v51 = vld [vmem:[%s9606_s4 + $0xf8] sm:$0xff] }
  0xe9   : > { %5057 = vmatmul.msk.bf16.vlgmr.msra.gmra.mxu1 %vm1576_vm0, %v7151_v45  ;;  %v6291_v45 = vld [vmem:[%s9606_s4 + $0x50] sm:$0xff]  ;;  %2251 = vmatpush.bf16.msrb.mxu0 %v6312_v51 }
  0xea   : > { %2228 = vmatpush.bf16.msrb.mxu1 %v6293_v36  ;;  %v6308_v36 = vld [vmem:[%s9606_s4 + $0xd8] sm:$0xff] }
  0xeb   : > { %2241 = vmatpush.bf16.msrb.mxu2 %v6301_v10 }
  0xec   : > { %2215 = vmatpush.bf16.msrb.mxu3 %v6285_v30 }
  0xed   : > { %2252 = vmatpush.bf16.msrb.mxu0 %v6311_v28 }
  0xee   : > { %2229 = vmatpush.bf16.msrb.mxu1 %v6292_v41  ;;  %v6307_v41 = vld [vmem:[%s9606_s4 + $0xd0] sm:$0xff] }
  0xef   : > { %v1695_v47 = vpop.f32.mrf.mxu2  ;;  %2242 = vmatpush.bf16.msrb.mxu2 %v6300_v16  ;;  %v6586_v16 = vld [vmem:[%s9607_s5] ss:$0 sm:$0xff] }
  0xf0   : > { %2216 = vmatpush.bf16.msrb.mxu3 %v6284_v32 }
  0xf1   : > { %2253 = vmatpush.bf16.msrb.mxu0 %v6310_v25  ;;  %v5608_v25 = vld [vmem:[%s9610_s8 + $0x348] sm:$0xf] }
  0xf2   : > { %2230 = vmatpush.bf16.msrb.mxu1 %v6291_v45 }
  0xf3   : > { %2243 = vmatpush.bf16.msrb.mxu2 %v6299_v7 }
  0xf4   : > { %2217 = vmatpush.bf16.msrb.mxu3 %v6283_v37 }
  0xf5   : > { %v1706_v53 = vpop.f32.mrf.mxu0  ;;  %2254 = vmatpush.bf16.msrb.mxu0 %v6309_v31  ;;  %v6421_v31 = vld [vmem:[%s9610_s8 + $0x360] sm:$0xf0] }
  0xf6   : > { %2231 = vmatpush.bf16.msrb.mxu1 %v6290_v49  ;;  %v1719_v56 = vpop.f32.mrf.mxu1  ;;  %v1707_v0 = vadd.f32 %v1706_v53, %v1694_v62 }
  0xf7   : > { %2244 = vmatpush.bf16.msrb.mxu2 %v6298_v20 }
  0xf8   : > { %2218 = vmatpush.bf16.msrb.mxu3 %v6282_v42  ;;  %v1720_v4 = vadd.f32 %v1719_v56, %v1707_v0 }
  0xf9   : > { %2255 = vmatpush.bf16.msrb.mxu0 %v6308_v36  ;;  %v5609_v36 = vor.u32 %v6421_v31, %v5608_v25  ;;  %v5692_v25 = vld [vmem:[%s9610_s8 + $0x3f0] sm:$0xf] }
  0xfa   : > { %2232 = vmatpush.bf16.msrb.mxu1 %v6289_v52  ;;  %v5916_v31 = vld [vmem:[%s9610_s8 + $0x5b0] sm:$0xf] }
  0xfb   : > { %2245 = vmatpush.bf16.msrb.mxu2 %v6297_v15 }
  0xfc   : > { %2219 = vmatpush.bf16.msrb.mxu3 %v6281_v46  ;;  %v6306_v46 = vld [vmem:[%s9606_s4 + $0xc8] sm:$0xff] }
  0xfd   : > { %v1708_v60 = vpop.f32.mrf.mxu0  ;;  %2256 = vmatpush.bf16.msrb.mxu0 %v6307_v41 }
  0xfe   : > { %v1732_v59 = vpop.f32.mrf.mxu3  ;;  %v1721_v63 = vpop.f32.mrf.mxu1  ;;  %3783 = vmatpush.bf16.msra.mxu1 %v5609_v36 }
  0xff   : > { %2220 = vmatmul.bf16.vlgmr.msrb.gmra.mxu3 %v1948_v50  ;;  %v1733_v8 = vadd.f32 %v1732_v59, %v1720_v4  ;;  %v6305_v50 = vld [vmem:[%s9606_s4 + $0xc0] sm:$0xff] }
 0x101   : > { %v1745_v61 = vpop.f32.mrf.mxu2  ;;  %2257 = vmatpush.bf16.msrb.mxu0 %v6306_v46 }
 0x102   : > { %v1746_v55 = vadd.f32 %v1745_v61, %v1733_v8  ;;  %v2266_v61 = vld [vmem:[%s374_s25] sm:$0xff]  ;;  %s6539_s25 = smul.u32 56, %s6761_s17 }
 0x103   : > { %2268 = vrot.lane.b32.xlu0 %v2266_v61, %s6681_s26 }
 0x104   : > { %s4188_s15 = scalar_lea.hbm %s9612_s10, %s6539_s25 }
 0x105   : > { %2258 = vmatpush.bf16.msrb.mxu0 %v6305_v50  ;;  %s4192_s27 = sshll.u32 %s4188_s15, 4  ;;  %s4193_s27 = int_to_ptr.hbm [resolvable:$true] %s4192_s27 }
 0x106   : > { %v1734_v3 = vpop.f32.mrf.mxu3  ;;  %s6631_s28 = sshra.s32 %s4193_s27, 4  ;;  %s6632_s28 = int_to_ptr.hbm [resolvable:$true] %s6631_s28 }
 0x107   : > { %s6633_s17 = scalar_lea.hbm %s6632_s28, 56  ;;  %p6638_p0 = scmp.lt.s32.totalorder %s6632_s28, %s9612_s10 }
 0x108   : > { %p6634_p11 = scmp.ne.s32.totalorder %s6632_s28, %s6633_s17  ;;  %p6639_p1 = scmp.lt.s32.totalorder %s6637_s18, %s6633_s17 }
 0x109   : > { %v1747_v6 = vpop.f32.mrf.mxu2 }
 0x10a   : > { %p6635_p12 = pnand %p6634_p11, %p6778_p5  ;;  %p6640_p2 = por %p6639_p1, %p6638_p0 }
 0x10c   : > { %p6636_p13 = pneg %p6635_p12 }
 0x10e   : > { %v1758_v11 = vpop.f32.mrf.mxu3  ;;  %p6641_p3 = pnand %p6640_p2, %p6636_p13 }
 0x10f   : > { %v1759_v12 = vadd.f32 %v1758_v11, %v1746_v55 }
 0x111   : > { %v1945_v13 = vmax.f32 %v1759_v12, 0.0 }
 0x113   : > { %v1949_v14 = vpack.c.bf16 %v1945_v13, %v1945_v13 }
 0x115   : > { %2233 = vmatmul.bf16.vlgmr.msrb.gmra.mxu1 %v1949_v14  ;;  %v1797_v18 = vpop.f32.mrf.mxu0 }
 0x116   : > { %v1760_v17 = vpop.f32.mrf.mxu3  ;;  %v1771_v19 = vpop.f32.mrf.mxu1 }
 0x117   : > { %v1772_v30 = vadd.f32 %v1771_v19, %v590_v29  ;;  %v6683_v29 = vmov 0  }
 0x118   : > { %6583 = vset.pattern.permute.xlu1 %v6683_v29  ;;  %v5468_v29 = vld [vmem:[%s9610_s8 + $0x230] sm:$0xf] }
 0x11d   : > { %v1799_v22 = vpop.f32.mrf.mxu0 }
 0x11e   : > { %v1773_v24 = vpop.f32.mrf.mxu1 }
 0x121   : > { %v1810_v23 = vpop.f32.mrf.mxu2 }
 0x122   : > { %v1784_v21 = vpop.f32.mrf.mxu3 }
 0x123   : > { %v1785_v32 = vadd.f32 %v1784_v21, %v1772_v30  ;;  %v5384_v30 = vld [vmem:[%s9610_s8 + $0x188] sm:$0xf] }
 0x125   : > { %v1849_v27 = vpop.f32.mrf.mxu0  ;;  %v1798_v34 = vadd.f32 %v1797_v18, %v1785_v32 }
 0x127   : > { %v1811_v38 = vadd.f32 %v1810_v23, %v1798_v34  ;;  %v6477_v34 = vld [vmem:[%s9610_s8 + $0x520] sm:$0xf0] }
 0x129   : > { %v1812_v57 = vpop.f32.mrf.mxu2 }
 0x12a   : > { %v1786_v26 = vpop.f32.mrf.mxu3  ;;  %v6684_v57 = vmov 1  }
 0x12b   : > { %6585 = vset.pattern.permute.xlu0 %v6684_v57 }
 0x12d   : > { %v1851_v35 = vpop.f32.mrf.mxu0 }
 0x12e   : > { %v6365_v35 = vld [vmem:[%s9610_s8 + $0x1a0] sm:$0xf0] }
 0x12f   : > { %v5385_v32 = vor.u32 %v6365_v35, %v5384_v30  ;;  %v6386_v35 = vld [vmem:[%s9610_s8 + $0x248] sm:$0xf0] }
 0x131   : > { %3770 = vmatpush.bf16.msra.mxu3 %v5385_v32  ;;  %v6442_v32 = vld [vmem:[%s9610_s8 + $0x408] sm:$0xf0] }
 0x136   : > { %v1823_v33 = vpop.f32.mrf.mxu1 }
 0x137   : > { %v1824_v39 = vadd.f32 %v1823_v33, %v1811_v38  ;;  %v5832_v33 = vld [vmem:[%s9610_s8 + $0x508] sm:$0xf] }
 0x138   : > { %v5833_v38 = vor.u32 %v6477_v34, %v5832_v33  ;;  %v6498_v33 = vld [vmem:[%s9610_s8 + $0x5c8] sm:$0xf0] }
 0x139   : > { %v1875_v37 = vpop.f32.mrf.mxu0 }
 0x13a   : > { %3796 = vmatpush.bf16.msra.mxu2 %v5833_v38  ;;  %v5469_v38 = vor.u32 %v6386_v35, %v5468_v29  ;;  %v5554_v29 = vld [vmem:[%s9610_s8 + $0x2f4] sm:$0xf0] }
 0x13b   : > { %v5778_v35 = vld [vmem:[%s9610_s8 + $0x4b4] sm:$0xf0] }
 0x13e   : > { %v1825_v40 = vpop.f32.mrf.mxu1 }
 0x13f   : > { %v5356_v40 = vld [vmem:[%s9610_s8 + $0x150] sm:$0xf] }
 0x141   : > { %v1862_v43 = vpop.f32.mrf.mxu2  ;;  %v1877_v48 = vpop.f32.mrf.mxu0 }
 0x142   : > { %v1836_v42 = vpop.f32.mrf.mxu3  ;;  %v1863_v56 = vadd.f32 %v1862_v43, %v591_v54  ;;  %v6414_v43 = vld [vmem:[%s9610_s8 + $0x328] sm:$0xf0]  ;;  %v6351_v54 = vld [vmem:[%s9610_s8 + $0x130] sm:$0xf0] }
 0x143   : > { %v1837_v45 = vadd.f32 %v1836_v42, %v1824_v39  ;;  %v6533_v39 = vld [vmem:[%s9610_s8 + $0x6e0] sm:$0xf0]  ;;  %v6358_v42 = vld [vmem:[%s9610_s8 + $0x168] sm:$0xf0] }
 0x144   : > { %v1876_v59 = vadd.f32 %v1875_v37, %v1863_v56  ;;  %v6056_v37 = vld [vmem:[%s9610_s8 + $0x6c8] sm:$0xf]  ;;  %v6470_v48 = vld [vmem:[%s9610_s8 + $0x4e8] sm:$0xf0] }
 0x145   : > { %v1850_v44 = vadd.f32 %v1849_v27, %v1837_v45  ;;  %v6057_v41 = vor.u32 %v6533_v39, %v6056_v37  ;;  %v5580_v45 = vld [vmem:[%s9610_s8 + $0x310] sm:$0xf]  ;;  %v5693_v37 = vor.u32 %v6442_v32, %v5692_v25  ;;  %v5216_v39 = vld [vmem:[%s9610_s8 + $0x38] sm:$0xf]  ;;  %v6516_v25 = vld [vmem:[%s9610_s8 + $0x65c] sm:$0xf] }
 0x146   : > { %v5581_v46 = vor.u32 %v6414_v43, %v5580_v45  ;;  %v5917_v45 = vor.u32 %v6498_v33, %v5916_v31  ;;  %v6379_v43 = vld [vmem:[%s9610_s8 + $0x210] sm:$0xf0]  ;;  %v6002_v32 = vld [vmem:[%s9610_s8 + $0x674] sm:$0xf0] }
 0x147   : > { %v1946_v47 = vmax.f32 %v1850_v44, 0.0  ;;  %v5357_v44 = vor.u32 %v6358_v42, %v5356_v40  ;;  %3809 = vmatpush.bf16.msra.mxu0 %v6057_v41  ;;  %v6323_v40 = vld [vmem:[%s9610_s8 + $0x50] sm:$0xf0]  ;;  %v5440_v41 = vld [vmem:[%s9610_s8 + $0x1f8] sm:$0xf] }
 0x148   : > { %3784 = vmatpush.bf16.msra.mxu1 %v5581_v46  ;;  %v6435_v46 = vld [vmem:[%s9610_s8 + $0x3d0] sm:$0xf0] }
 0x149   : > { %v1950_v49 = vpack.c.bf16 %v1946_v47, %v1946_v47  ;;  %v1864_v53 = vpop.f32.mrf.mxu2  ;;  %v5804_v47 = vld [vmem:[%s9610_s8 + $0x4d0] sm:$0xf]  ;;  %3771 = vmatpush.bf16.msra.mxu3 %v5357_v44  ;;  %v5664_v44 = vld [vmem:[%s9610_s8 + $0x3b8] sm:$0xf] }
 0x14a   : > { %v1838_v52 = vpop.f32.mrf.mxu3  ;;  %v5805_v50 = vor.u32 %v6470_v48, %v5804_v47  ;;  %v5328_v53 = vld [vmem:[%s9610_s8 + $0x118] sm:$0xf]  ;;  %v5217_v48 = vor.u32 %v6323_v40, %v5216_v39  ;;  %v6397_v39 = vld [vmem:[%s9610_s8 + $0x2a4] sm:$0xf] }
 0x14b   : > { %2246 = vmatmul.bf16.vlgmr.msrb.gmra.mxu2 %v1950_v49  ;;  %v6028_v49 = vld [vmem:[%s9610_s8 + $0x690] sm:$0xf]  ;;  %v6526_v52 = vld [vmem:[%s9610_s8 + $0x6a8] sm:$0xf0]  ;;  %v5329_v61 = vor.u32 %v6351_v54, %v5328_v53  ;;  %v5888_v47 = vld [vmem:[%s9610_s8 + $0x578] sm:$0xf] }
 0x14c   : > { %v6029_v56 = vor.u32 %v6526_v52, %v6028_v49  ;;  %3797 = vmatpush.bf16.msra.mxu2 %v5805_v50  ;;  %v5188_v49 = vld [vmem:[%s9610_s8] sm:$0xf]  ;;  %v5441_v50 = vor.u32 %v6379_v43, %v5440_v41  ;;  %v5665_v52 = vor.u32 %v6435_v46, %v5664_v44  ;;  %v6316_v53 = vld [vmem:[%s9610_s8 + $0x18] sm:$0xf0]  ;;  %v6509_v46 = vld [vmem:[%s9610_s8 + $0x624] sm:$0xf] }
 0x14d   : > { %3772 = vmatpush.bf16.msra.mxu3 %v5329_v61  ;;  %v5412_v54 = vld [vmem:[%s9610_s8 + $0x1c0] sm:$0xf] }
 0x14e   : > { %3810 = vmatpush.bf16.msra.mxu0 %v6029_v56  ;;  %v6372_v56 = vld [vmem:[%s9610_s8 + $0x1d8] sm:$0xf0]  ;;  %v5860_v61 = vld [vmem:[%s9610_s8 + $0x540] sm:$0xf] }
 0x14f   : > { %v5526_v41 = vld [vmem:[%s9610_s8 + $0x2bc] sm:$0xf0] }
 0x150   : > { %v5529_v43 = vor.u32 %v6397_v39, %v5526_v41 }
 0x156   : > { %v1888_v58 = vpop.f32.mrf.mxu1 }
 0x157   : > { %v1889_v62 = vadd.f32 %v1888_v58, %v1876_v59  ;;  %v5552_v58 = vld [vmem:[%s9610_s8 + $0x2d8] sm:$0xf]  ;;  %v6407_v59 = vld [vmem:[%s9610_s8 + $0x2f0] sm:$0xf0] }
 0x159   : > { %v1927_v60 = vpop.f32.mrf.mxu0 }
 0x15e   : > { %v1890_v63 = vpop.f32.mrf.mxu1 }
 0x15f   : > { %v6000_v63 = vld [vmem:[%s9610_s8 + $0x658] sm:$0xf] }
 0x161   : > { %v1914_v2 = vpop.f32.mrf.mxu2  ;;  %v1929_v4 = vpop.f32.mrf.mxu0 }
 0x162   : > { %v1901_v0 = vpop.f32.mrf.mxu3  ;;  %v6344_v4 = vld [vmem:[%s9610_s8 + $0xf8] sm:$0xf0] }
 0x163   : > { %v1902_v1 = vadd.f32 %v1901_v0, %v1889_v62  ;;  %v6463_v62 = vld [vmem:[%s9610_s8 + $0x4b0] sm:$0xf0] }
 0x164   : > { %v6519_v0 = vld [vmem:[%s9610_s8 + $0x670] sm:$0xf0] }
 0x165   : > { %v1915_v3 = vadd.f32 %v1914_v2, %v1902_v1  ;;  %v5553_v1 = vor.u32 %v6407_v59, %v5552_v58  ;;  %v5636_v59 = vld [vmem:[%s9610_s8 + $0x380] sm:$0xf] }
 0x166   : > { %v1940_v6 = vpop.f32.mrf.mxu1 }
 0x167   : > { %v1928_v5 = vadd.f32 %v1927_v60, %v1915_v3  ;;  %v5776_v60 = vld [vmem:[%s9610_s8 + $0x498] sm:$0xf]  ;;  %v5300_v3 = vld [vmem:[%s9610_s8 + $0xe0] sm:$0xf]  ;;  %3785 = vmatpush.bf16.msra.mxu1 %v5553_v1  ;;  %v5189_v1 = vor.u32 %v6316_v53, %v5188_v49  ;;  %v5274_v49 = vld [vmem:[%s9610_s8 + $0xc4] sm:$0xf0] }
 0x168   : > { %v5777_v2 = vor.u32 %v6463_v62, %v5776_v60  ;;  %v6428_v60 = vld [vmem:[%s9610_s8 + $0x398] sm:$0xf0] }
 0x169   : > { %v1941_v8 = vadd.f32 %v1940_v6, %v1928_v5  ;;  %v1916_v55 = vpop.f32.mrf.mxu2  ;;  %v5524_v5 = vld [vmem:[%s9610_s8 + $0x2a0] sm:$0xf]  ;;  %v6001_v6 = vor.u32 %v6519_v0, %v6000_v63  ;;  %v6484_v62 = vld [vmem:[%s9610_s8 + $0x558] sm:$0xf0]  ;;  %v6362_v63 = vld [vmem:[%s9610_s8 + $0x18c] sm:$0xf] }
 0x16a   : > { %v1903_v9 = vpop.f32.mrf.mxu3  ;;  %v6456_v55 = vld [vmem:[%s9610_s8 + $0x478] sm:$0xf0]  ;;  %3798 = vmatpush.bf16.msra.mxu2 %v5777_v2  ;;  %v5386_v0 = vld [vmem:[%s9610_s8 + $0x1a4] sm:$0xf0]  ;;  %v6418_v2 = vld [vmem:[%s9610_s8 + $0x34c] sm:$0xf] }
 0x16b   : > { %v1947_v10 = vmax.f32 %v1941_v8, 0.0  ;;  %v6400_v8 = vld [vmem:[%s9610_s8 + $0x2b8] sm:$0xf0]  ;;  %v5748_v9 = vld [vmem:[%s9610_s8 + $0x460] sm:$0xf]  ;;  %3811 = vmatpush.bf16.msra.mxu0 %v6001_v6 }
 0x16c   : > { %v5834_v6 = vld [vmem:[%s9610_s8 + $0x524] sm:$0xf0] }
 0x16d   : > { %v1951_v11 = vpack.c.bf16 %v1947_v10, %v1947_v10  ;;  %v5972_v10 = vld [vmem:[%s9610_s8 + $0x620] sm:$0xf] }
 0x16e   : > { %v1942_v12 = vpop.f32.mrf.mxu1 }
 0x16f   : > { %2259 = vmatmul.bf16.vlgmr.msrb.gmra.mxu0 %v1951_v11  ;;  %v6512_v11 = vld [vmem:[%s9610_s8 + $0x638] sm:$0xf0]  ;;  %v5301_v12 = vor.u32 %v6344_v4, %v5300_v3  ;;  %v5610_v3 = vld [vmem:[%s9610_s8 + $0x364] sm:$0xf0]  ;;  %v6474_v4 = vld [vmem:[%s9610_s8 + $0x50c] sm:$0xf] }
 0x171   : > { %3773 = vmatpush.bf16.msra.mxu3 %v5301_v12  ;;  %v5613_v12 = vor.u32 %v6418_v2, %v5610_v3  ;;  %v5470_v2 = vld [vmem:[%s9610_s8 + $0x24c] sm:$0xf0] }
 0x175   : > { %v2269_v26 = vpop.permute.xlu0 %2268 }
 0x182   : > { %v2221_v13 = vpop.f32.mrf.mxu3 }
 0x183   : > { %v2222_v7 = vadd.f32 %v6586_v16, %v2221_v13  ;;  %v5525_v13 = vor.u32 %v6400_v8, %v5524_v5  ;;  %v5272_v16 = vld [vmem:[%s9610_s8 + $0xa8] sm:$0xf]  ;;  %v5413_v5 = vor.u32 %v6372_v56, %v5412_v54  ;;  %v6530_v8 = vld [vmem:[%s9610_s8 + $0x6cc] sm:$0xf] }
 0x184   : > { %v6446_v56 = vld [vmem:[%s9610_s8 + $0x42c] sm:$0xf] }
 0x185   : > { %3786 = vmatpush.bf16.msra.mxu1 %v5525_v13  ;;  %v6355_v13 = vld [vmem:[%s9610_s8 + $0x154] sm:$0xf] }
 0x18a   : > { %v2223_v14 = vpop.f32.mrf.mxu3 }
 0x18b   : > { %v5749_v14 = vor.u32 %v6456_v55, %v5748_v9  ;;  %v6058_v9 = vld [vmem:[%s9610_s8 + $0x6e4] sm:$0xf0]  ;;  %v5637_v55 = vor.u32 %v6428_v60, %v5636_v59  ;;  %v6502_v59 = vld [vmem:[%s9610_s8 + $0x5ec] sm:$0xf] }
 0x18d   : > { %3799 = vmatpush.bf16.msra.mxu2 %v5749_v14  ;;  %v5358_v14 = vld [vmem:[%s9610_s8 + $0x16c] sm:$0xf0] }
 0x192   : > { %v2234_v17 = vpop.f32.mrf.mxu1 }
 0x193   : > { %v2235_v18 = vadd.f32 %v2234_v17, %v2222_v7  ;;  %v6337_v7 = vld [vmem:[%s9610_s8 + $0xc0] sm:$0xf0]  ;;  %v5496_v17 = vld [vmem:[%s9610_s8 + $0x268] sm:$0xf] }
 0x19a   : > { %v2236_v19 = vpop.f32.mrf.mxu1 }
 0x19b   : > { %v6393_v19 = vld [vmem:[%s9610_s8 + $0x280] sm:$0xf0] }
 0x1ce   : > { %v2247_v20 = vpop.f32.mrf.mxu2 }
 0x1cf   : > { %v2248_v22 = vadd.f32 %v2247_v20, %v2235_v18  ;;  %v5973_v18 = vor.u32 %v6512_v11, %v5972_v10  ;;  %v5720_v20 = vld [vmem:[%s9610_s8 + $0x428] sm:$0xf]  ;;  %v5861_v10 = vor.u32 %v6484_v62, %v5860_v61  ;;  %v5389_v11 = vor.u32 %v6362_v63, %v5386_v0  ;;  %v6327_v63 = vld [vmem:[%s9610_s8 + $0x74] sm:$0xf]  ;;  %v5246_v0 = vld [vmem:[%s9610_s8 + $0x8c] sm:$0xf0] }
 0x1d0   : > { %v5946_v61 = vld [vmem:[%s9610_s8 + $0x604] sm:$0xf0]  ;;  %v5249_v3 = vor.u32 %v6327_v63, %v5246_v0 }
 0x1d1   : > { %3812 = vmatpush.bf16.msra.mxu0 %v5973_v18  ;;  %v5582_v18 = vld [vmem:[%s9610_s8 + $0x32c] sm:$0xf0]  ;;  %v5949_v62 = vor.u32 %v6502_v59, %v5946_v61 }
 0x1d6   : > { %v2249_v21 = vpop.f32.mrf.mxu2 }
 0x1d7   : > { %v6449_v21 = vld [vmem:[%s9610_s8 + $0x440] sm:$0xf0] }
 0x1ec   : > { %v2260_v23 = vpop.f32.mrf.mxu0 }
 0x1ed   : > { %v8151_v24 = vadd.f32 %v2260_v23, %v2248_v22  ;;  %v5944_v22 = vld [vmem:[%s9610_s8 + $0x5e8] sm:$0xf]  ;;  %v6505_v23 = vld [vmem:[%s9610_s8 + $0x600] sm:$0xf0] }
 0x1ee   : > { %v5945_v30 = vor.u32 %v6505_v23, %v5944_v22  ;;  %v5361_v22 = vor.u32 %v6355_v13, %v5358_v14  ;;  %v6376_v13 = vld [vmem:[%s9610_s8 + $0x1fc] sm:$0xf] }
 0x1ef   : > { %v2264_v15 = vmul.f32 1.442695, %v8151_v24 }
 0x1f0   : > { %3813 = vmatpush.bf16.msra.mxu0 %v5945_v30  ;;  %v6460_v30 = vld [vmem:[%s9610_s8 + $0x49c] sm:$0xf] }
 0x1f1   : > { %6587 = vpow2.f32 %v2264_v15  ;;  %v5273_v15 = vor.u32 %v6337_v7, %v5272_v16  ;;  %v5837_v16 = vor.u32 %v6474_v4, %v5834_v6  ;;  %v6061_v7 = vor.u32 %v6530_v8, %v6058_v9  ;;  %v5694_v6 = vld [vmem:[%s9610_s8 + $0x40c] sm:$0xf0]  ;;  %v6495_v8 = vld [vmem:[%s9610_s8 + $0x5b4] sm:$0xf] }
 0x1f3   : > { %3774 = vmatpush.bf16.msra.mxu3 %v5273_v15  ;;  %v6348_v15 = vld [vmem:[%s9610_s8 + $0x11c] sm:$0xf] }
 0x1f4   : > { %v2262_v51 = vpop.f32.mrf.mxu0  ;;  %3814 = vmatpush.bf16.msra.mxu0 %v5917_v45  ;;  %v5750_v45 = vld [vmem:[%s9610_s8 + $0x47c] sm:$0xf0] }
 0x1f5   : > { %v5497_v51 = vor.u32 %v6393_v19, %v5496_v17  ;;  %v6411_v17 = vld [vmem:[%s9610_s8 + $0x314] sm:$0xf] }
 0x1f6   : > { %v6467_v19 = vld [vmem:[%s9610_s8 + $0x4d4] sm:$0xf]  ;;  %v5585_v23 = vor.u32 %v6411_v17, %v5582_v18  ;;  %v5666_v17 = vld [vmem:[%s9610_s8 + $0x3d4] sm:$0xf0] }
 0x1f7   : > { %v6588_v27 = vpop.eup %6587  ;;  %3787 = vmatpush.bf16.msra.mxu1 %v5497_v51  ;;  %v5330_v51 = vld [vmem:[%s9610_s8 + $0x134] sm:$0xf0] }
 0x1f8   : > { %v2271_v28 = vmul.f32 %v6588_v27, %v2269_v26  ;;  %v5721_v26 = vor.u32 %v6449_v21, %v5720_v20  ;;  %v5244_v27 = vld [vmem:[%s9610_s8 + $0x70] sm:$0xf]  ;;  %v6523_v20 = vld [vmem:[%s9610_s8 + $0x694] sm:$0xf]  ;;  %v5333_v31 = vor.u32 %v6348_v15, %v5330_v51  ;;  %v6369_v15 = vld [vmem:[%s9610_s8 + $0x1c4] sm:$0xf] }
 0x1f9   : > { %v6030_v21 = vld [vmem:[%s9610_s8 + $0x6ac] sm:$0xf0] }
 0x1fa   : > { %2273 = vrot.lane.b32.xlu0 %v2271_v28, %s6682_s11  ;;  %v6330_v28 = vld [vmem:[%s9610_s8 + $0x88] sm:$0xf0]  ;;  %3800 = vmatpush.bf16.msra.mxu2 %v5721_v26  ;;  %s4190_s11 = sshll.u32 %s9553_s12, 4  ;;  %s4191_s11 = int_to_ptr.vmem [resolvable:$true] %s4190_s11 }
 0x1fb   : > { %v5245_v34 = vor.u32 %v6330_v28, %v5244_v27  ;;  %3788 = vmatpush.bf16.msra.mxu1 %v5469_v38  ;;  %v6033_v27 = vor.u32 %v6523_v20, %v6030_v21  ;;  %v6404_v28 = vld [vmem:[%s9610_s8 + $0x2dc] sm:$0xf]  ;;  %v6341_v38 = vld [vmem:[%s9610_s8 + $0xe4] sm:$0xf]  ;;  %v5890_v20 = vld [vmem:[%s9610_s8 + $0x594] sm:$0xf0] }
 0x1fc   : > { %v5557_v33 = vor.u32 %v6404_v28, %v5554_v29  ;;  %v5638_v28 = vld [vmem:[%s9610_s8 + $0x39c] sm:$0xf0] }
 0x1fd   : > { %3775 = vmatpush.bf16.msra.mxu3 %v5245_v34  ;;  %v5781_v34 = vor.u32 %v6460_v30, %v5778_v35  ;;  %v6481_v35 = vld [vmem:[%s9610_s8 + $0x544] sm:$0xf] }
 0x1fe   : > { %3801 = vmatpush.bf16.msra.mxu2 %v5693_v37  ;;  %v5302_v37 = vld [vmem:[%s9610_s8 + $0xfc] sm:$0xf0] }
 0x1ff   : > { %3789 = vmatpush.bf16.msra.mxu1 %v5441_v50  ;;  %v5305_v40 = vor.u32 %v6341_v38, %v5302_v37  ;;  %v6390_v50 = vld [vmem:[%s9610_s8 + $0x26c] sm:$0xf] }
 0x201   : > { %3776 = vmatpush.bf16.msra.mxu3 %v5217_v48 }
 0x202   : > { %3802 = vmatpush.bf16.msra.mxu2 %v5665_v52  ;;  %v5498_v52 = vld [vmem:[%s9610_s8 + $0x284] sm:$0xf0] }
 0x203   : > { %3790 = vmatpush.bf16.msra.mxu1 %v5413_v5  ;;  %v5501_v54 = vor.u32 %v6390_v50, %v5498_v52  ;;  %v6439_v5 = vld [vmem:[%s9610_s8 + $0x3f4] sm:$0xf] }
 0x204   : > { %v5697_v9 = vor.u32 %v6439_v5, %v5694_v6 }
 0x205   : > { %3777 = vmatpush.bf16.msra.mxu3 %v5189_v1  ;;  %v6383_v1 = vld [vmem:[%s9610_s8 + $0x234] sm:$0xf] }
 0x206   : > { %3803 = vmatpush.bf16.msra.mxu2 %v5637_v55  ;;  %v5473_v4 = vor.u32 %v6383_v1, %v5470_v2  ;;  %v5918_v55 = vld [vmem:[%s9610_s8 + $0x5cc] sm:$0xf0] }
 0x207   : > { %3835 = vmatpush.bf16.msrb.mxu1 %v5613_v12  ;;  %v5218_v12 = vld [vmem:[%s9610_s8 + $0x54] sm:$0xf0] }
 0x209   : > { %3822 = vmatpush.bf16.msrb.mxu3 %v5389_v11  ;;  %v6320_v11 = vld [vmem:[%s9610_s8 + $0x3c] sm:$0xf] }
 0x20a   : > { %3848 = vmatpush.bf16.msrb.mxu2 %v5837_v16  ;;  %v5221_v14 = vor.u32 %v6320_v11, %v5218_v12  ;;  %v5442_v16 = vld [vmem:[%s9610_s8 + $0x214] sm:$0xf0]  ;;  %v6366_v12 = vld [vmem:[%s9610_s8 + $0x1a8] sm:$0xf0] }
 0x20b   : > { %3836 = vmatpush.bf16.msrb.mxu1 %v5585_v23  ;;  %v5445_v18 = vor.u32 %v6376_v13, %v5442_v16  ;;  %v5190_v23 = vld [vmem:[%s9610_s8 + $0x1c] sm:$0xf0]  ;;  %v5616_v13 = vld [vmem:[%s9610_s8 + $0x350] sm:$0xf] }
 0x20c   : > { %v5840_v16 = vld [vmem:[%s9610_s8 + $0x510] sm:$0xf] }
 0x20d   : > { %3823 = vmatpush.bf16.msrb.mxu3 %v5361_v22  ;;  %v6313_v22 = vld [vmem:[%s9610_s8 + $0x4] sm:$0xf] }
 0x20e   : > { %v5193_v51 = vor.u32 %v6313_v22, %v5190_v23 }
 0x20f   : > { %3837 = vmatpush.bf16.msrb.mxu1 %v5557_v33 }
 0x211   : > { %3824 = vmatpush.bf16.msrb.mxu3 %v5333_v31  ;;  %v2277_v31 = vld [vmem:[%s9608_s6] sm:$0xff] }
 0x212   : > { %v2286_v38 = vperm.slane %v2277_v31, 4  ;;  %v2287_v37 = vperm.slane %v2277_v31, 6  ;;  %v2304_v39 = vperm.slane %v2277_v31, 1  ;;  %v2306_v41 = vperm.slane %v2277_v31, 5 }
 0x213   : > { %3838 = vmatpush.bf16.msrb.mxu1 %v5529_v43 }
 0x215   : > { %3825 = vmatpush.bf16.msrb.mxu3 %v5305_v40  ;;  %v2305_v40 = vperm.slane %v2277_v31, 3 }
 0x217   : > { %3839 = vmatpush.bf16.msrb.mxu1 %v5501_v54 }
 0x21b   : > { %3840 = vmatpush.bf16.msrb.mxu1 %v5473_v4 }
 0x21f   : > { %3841 = vmatpush.bf16.msrb.mxu1 %v5445_v18 }
 0x26c   : > { %v2274_v36 = vpop.permute.xlu0 %2273 }
 0x26d   : > { %v2276_v42 = vadd.f32 %v2274_v36, %v8151_v24  ;;  %v6491_v24 = vld [vmem:[%s9610_s8 + $0x590] sm:$0xf0]  ;;  %v6005_v36 = vor.u32 %v6516_v25, %v6002_v32  ;;  %v5862_v25 = vld [vmem:[%s9610_s8 + $0x55c] sm:$0xf0] }
 0x26e   : > { %v5889_v58 = vor.u32 %v6491_v24, %v5888_v47  ;;  %v5974_v47 = vld [vmem:[%s9610_s8 + $0x63c] sm:$0xf0]  ;;  %v6334_v24 = vld [vmem:[%s9610_s8 + $0xac] sm:$0xf]  ;;  %v5865_v32 = vor.u32 %v6481_v35, %v5862_v25  ;;  %v5588_v25 = vld [vmem:[%s9610_s8 + $0x318] sm:$0xf] }
 0x26f   : > { %2280 = vperm.xlu1 %6583, %v2276_v42   ;;  %v5977_v48 = vor.u32 %v6509_v46, %v5974_v47  ;;  %v5277_v53 = vor.u32 %v6334_v24, %v5274_v49  ;;  %v2295_v46 = vperm.slane %v2287_v37, 0  ;;  %v2324_v47 = vld [vmem:[%s9609_s7] sm:$0xf]  ;;  %v2312_v24 = vperm.slane %v2304_v39, 1 }
 0x270   : > { %3815 = vmatpush.bf16.msra.mxu0 %v5889_v58  ;;  %v5722_v58 = vld [vmem:[%s9610_s8 + $0x444] sm:$0xf0]  ;;  %v2314_v49 = vperm.slane %v2306_v41, 1  ;;  %v2326_v52 = vperm.slane %v2324_v47, 0  ;;  %v2328_v54 = vperm.slane %v2324_v47, 2 }
 0x271   : > { %v5725_v60 = vor.u32 %v6446_v56, %v5722_v58  ;;  %3826 = vmatpush.bf16.msrb.mxu3 %v5277_v53  ;;  %v2327_v53 = vperm.slane %v2324_v47, 1  ;;  %v2329_v56 = vperm.slane %v2324_v47, 3  ;;  %v5336_v39 = vld [vmem:[%s9610_s8 + $0x120] sm:$0xf] }
 0x272   : > { %v6008_v47 = vld [vmem:[%s9610_s8 + $0x660] sm:$0xf] }
 0x274   : > { %3816 = vmatpush.bf16.msra.mxu0 %v5861_v10  ;;  %v5921_v10 = vor.u32 %v6495_v8, %v5918_v55  ;;  %v5392_v8 = vld [vmem:[%s9610_s8 + $0x190] sm:$0xf] }
 0x275   : > { %3827 = vmatpush.bf16.msrb.mxu3 %v5249_v3  ;;  %v5393_v22 = vor.u32 %v6366_v12, %v5392_v8  ;;  %v5728_v8 = vld [vmem:[%s9610_s8 + $0x430] sm:$0xf] }
 0x277   : > { %6584 = vset.pattern.permute.xlu1 %v6684_v57  ;;  %v5806_v57 = vld [vmem:[%s9610_s8 + $0x4ec] sm:$0xf0] }
 0x278   : > { %2301 = vperm.xlu1 %6584, %v2276_v42   ;;  %3861 = vmatpush.bf16.msrb.mxu0 %v6061_v7  ;;  %v5809_v26 = vor.u32 %v6467_v19, %v5806_v57  ;;  %v6453_v42 = vld [vmem:[%s9610_s8 + $0x464] sm:$0xf]  ;;  %v6432_v7 = vld [vmem:[%s9610_s8 + $0x3bc] sm:$0xf] }
 0x279   : > { %v5753_v44 = vor.u32 %v6453_v42, %v5750_v45  ;;  %v5669_v19 = vor.u32 %v6432_v7, %v5666_v17  ;;  %v6488_v57 = vld [vmem:[%s9610_s8 + $0x57c] sm:$0xf]  ;;  %3828 = vmatpush.bf16.msrb.mxu3 %v5221_v14  ;;  %v2307_v42 = vperm.slane %v2277_v31, 7  ;;  %v6422_v14 = vld [vmem:[%s9610_s8 + $0x368] sm:$0xf0] }
 0x27a   : > { %3849 = vmatpush.bf16.msrb.mxu2 %v5809_v26  ;;  %v5893_v21 = vor.u32 %v6488_v57, %v5890_v20  ;;  %v5414_v26 = vld [vmem:[%s9610_s8 + $0x1dc] sm:$0xf0]  ;;  %v6478_v7 = vld [vmem:[%s9610_s8 + $0x528] sm:$0xf0]  ;;  %v6064_v17 = vld [vmem:[%s9610_s8 + $0x6d0] sm:$0xf]  ;;  %v5617_v23 = vor.u32 %v6422_v14, %v5616_v13 }
 0x27b   : > { %v5417_v29 = vor.u32 %v6369_v15, %v5414_v26  ;;  %v2315_v50 = vperm.slane %v2307_v42, 1  ;;  %v5252_v13 = vld [vmem:[%s9610_s8 + $0x78] sm:$0xf]  ;;  %v6331_v14 = vld [vmem:[%s9610_s8 + $0x90] sm:$0xf0] }
 0x27c   : > { %3862 = vmatpush.bf16.msrb.mxu0 %v6033_v27  ;;  %v6425_v27 = vld [vmem:[%s9610_s8 + $0x384] sm:$0xf] }
 0x27d   : > { %v5641_v30 = vor.u32 %v6425_v27, %v5638_v28  ;;  %3829 = vmatpush.bf16.msrb.mxu3 %v5193_v51  ;;  %3842 = vmatpush.bf16.msrb.mxu1 %v5417_v29  ;;  %v5364_v28 = vld [vmem:[%s9610_s8 + $0x158] sm:$0xf]  ;;  %v6359_v29 = vld [vmem:[%s9610_s8 + $0x170] sm:$0xf0] }
 0x27e   : > { %3850 = vmatpush.bf16.msrb.mxu2 %v5781_v34  ;;  %v2284_v34 = vperm.slane %v2277_v31, 0 }
 0x280   : > { %3863 = vmatpush.bf16.msrb.mxu0 %v6005_v36  ;;  %v2285_v36 = vperm.slane %v2277_v31, 2  ;;  %v2292_v45 = vperm.slane %v2284_v34, 0  ;;  %v5812_v31 = vld [vmem:[%s9610_s8 + $0x4d8] sm:$0xf] }
 0x281   : > { %v6036_v34 = vld [vmem:[%s9610_s8 + $0x698] sm:$0xf] }
 0x282   : > { %3851 = vmatpush.bf16.msrb.mxu2 %v5753_v44  ;;  %v2293_v43 = vperm.slane %v2285_v36, 0  ;;  %v2294_v44 = vperm.slane %v2286_v38, 0  ;;  %v6527_v36 = vld [vmem:[%s9610_s8 + $0x6b0] sm:$0xf0]  ;;  %v5365_v38 = vor.u32 %v6359_v29, %v5364_v28  ;;  %v5224_v28 = vld [vmem:[%s9610_s8 + $0x40] sm:$0xf] }
 0x283   : > { %v6037_v42 = vor.u32 %v6527_v36, %v6036_v34  ;;  %v6324_v29 = vld [vmem:[%s9610_s8 + $0x58] sm:$0xf0]  ;;  %v5896_v34 = vld [vmem:[%s9610_s8 + $0x580] sm:$0xf] }
 0x284   : > { %3864 = vmatpush.bf16.msrb.mxu0 %v5977_v48  ;;  %v2313_v48 = vperm.slane %v2305_v40, 1  ;;  %v6352_v40 = vld [vmem:[%s9610_s8 + $0x138] sm:$0xf0] }
 0x285   : > { %v6492_v36 = vld [vmem:[%s9610_s8 + $0x598] sm:$0xf0] }
 0x286   : > { %3852 = vmatpush.bf16.msrb.mxu2 %v5725_v60 }
 0x288   : > { %3865 = vmatpush.bf16.msrb.mxu0 %v5949_v62 }
 0x28a   : > { %3853 = vmatpush.bf16.msrb.mxu2 %v5697_v9 }
 0x28c   : > { %3866 = vmatpush.bf16.msrb.mxu0 %v5921_v10 }
 0x28e   : > { %3854 = vmatpush.bf16.msrb.mxu2 %v5669_v19 }
 0x290   : > { %3867 = vmatpush.bf16.msrb.mxu0 %v5893_v21  ;;  %v6534_v21 = vld [vmem:[%s9610_s8 + $0x6e8] sm:$0xf0] }
 0x291   : > { %v6065_v35 = vor.u32 %v6534_v21, %v6064_v17  ;;  %v5476_v17 = vld [vmem:[%s9610_s8 + $0x238] sm:$0xf]  ;;  %v6499_v21 = vld [vmem:[%s9610_s8 + $0x5d0] sm:$0xf0] }
 0x292   : > { %3855 = vmatpush.bf16.msrb.mxu2 %v5641_v30  ;;  %v5841_v30 = vor.u32 %v6478_v7, %v5840_v16 }
 0x294   : > { %3868 = vmatpush.bf16.msrb.mxu0 %v5865_v32  ;;  %v6415_v32 = vld [vmem:[%s9610_s8 + $0x330] sm:$0xf0] }
 0x295   : > { %v5589_v37 = vor.u32 %v6415_v32, %v5588_v25  ;;  %v5448_v25 = vld [vmem:[%s9610_s8 + $0x200] sm:$0xf]  ;;  %v6380_v32 = vld [vmem:[%s9610_s8 + $0x218] sm:$0xf0] }
 0x2e1   : > { %v2281_v33 = vpop.permute.xlu1 %2280 }
 0x2e2   : > { %v2296_v58 = vmul.f32 %v2292_v45, %v2281_v33  ;;  %v2297_v59 = vmul.f32 %v2293_v43, %v2281_v33  ;;  %v2298_v60 = vmul.f32 %v2294_v44, %v2281_v33  ;;  %v2299_v61 = vmul.f32 %v2295_v46, %v2281_v33  ;;  %v6471_v33 = vld [vmem:[%s9610_s8 + $0x4f0] sm:$0xf0]  ;;  %v5560_v45 = vld [vmem:[%s9610_s8 + $0x2e0] sm:$0xf]  ;;  %v6408_v43 = vld [vmem:[%s9610_s8 + $0x2f8] sm:$0xf0] }
 0x2e3   : > { %v5813_v41 = vor.u32 %v6471_v33, %v5812_v31  ;;  %v5784_v44 = vld [vmem:[%s9610_s8 + $0x4a0] sm:$0xf]  ;;  %v6464_v46 = vld [vmem:[%s9610_s8 + $0x4b8] sm:$0xf0] }
 0x2e4   : > { %v5672_v31 = vld [vmem:[%s9610_s8 + $0x3c0] sm:$0xf]  ;;  %v6436_v33 = vld [vmem:[%s9610_s8 + $0x3d8] sm:$0xf0] }
 0x2ea   : > { %v2302_v62 = vpop.permute.xlu1 %2301 }
 0x2eb   : > { %v2316_v63 = vmul.f32 %v2312_v24, %v2302_v62  ;;  %v2317_v0 = vmul.f32 %v2313_v48, %v2302_v62  ;;  %v2318_v1 = vmul.f32 %v2314_v49, %v2302_v62  ;;  %v2319_v2 = vmul.f32 %v2315_v50, %v2302_v62  ;;  %v6520_v24 = vld [vmem:[%s9610_s8 + $0x678] sm:$0xf0]  ;;  %v5308_v50 = vld [vmem:[%s9610_s8 + $0xe8] sm:$0xf]  ;;  %v6513_v62 = vld [vmem:[%s9610_s8 + $0x640] sm:$0xf0] }
 0x2ec   : > { %v5337_v48 = vor.u32 %v6352_v40, %v5336_v39  ;;  %v5561_v49 = vor.u32 %v6408_v43, %v5560_v45  ;;  %v5449_v39 = vor.u32 %v6380_v32, %v5448_v25  ;;  %v6317_v40 = vld [vmem:[%s9610_s8 + $0x20] sm:$0xf0]  ;;  %v5673_v45 = vor.u32 %v6436_v33, %v5672_v31  ;;  %v6398_v25 = vld [vmem:[%s9610_s8 + $0x2ac] sm:$0xf]  ;;  %v5534_v32 = vld [vmem:[%s9610_s8 + $0x2c4] sm:$0xf0] }
 0x2ed   : > { %v2320_v3 = vadd.f32 %v2316_v63, %v2296_v58  ;;  %v2321_v4 = vadd.f32 %v2317_v0, %v2297_v59  ;;  %v2322_v5 = vadd.f32 %v2318_v1, %v2298_v60  ;;  %v2323_v6 = vadd.f32 %v2319_v2, %v2299_v61  ;;  %v6401_v58 = vld [vmem:[%s9610_s8 + $0x2c0] sm:$0xf0]  ;;  %v5756_v59 = vld [vmem:[%s9610_s8 + $0x468] sm:$0xf]  ;;  %v5280_v1 = vld [vmem:[%s9610_s8 + $0xb0] sm:$0xf] }
 0x2ee   : > { %v6457_v60 = vld [vmem:[%s9610_s8 + $0x480] sm:$0xf0]  ;;  %v5980_v61 = vld [vmem:[%s9610_s8 + $0x628] sm:$0xf]  ;;  %v6338_v2 = vld [vmem:[%s9610_s8 + $0xc8] sm:$0xf0]  ;;  %v5897_v43 = vor.u32 %v6492_v36, %v5896_v34 }
 0x2ef   : > { %v2334_v9 = vadd.f32 %v2326_v52, %v2320_v3  ;;  %v2335_v55 = vadd.f32 %v2327_v53, %v2321_v4  ;;  %v2336_v10 = vadd.f32 %v2328_v54, %v2322_v5  ;;  %v2337_v11 = vadd.f32 %v2329_v56, %v2323_v6  ;;  %v6345_v52 = vld [vmem:[%s9610_s8 + $0x100] sm:$0xf0]  ;;  %v5532_v56 = vld [vmem:[%s9610_s8 + $0x2a8] sm:$0xf]  ;;  %v5504_v5 = vld [vmem:[%s9610_s8 + $0x270] sm:$0xf] }
 0x2f0   : > { %v5785_v53 = vor.u32 %v6464_v46, %v5784_v44  ;;  %v6009_v54 = vor.u32 %v6520_v24, %v6008_v47  ;;  %v5309_v63 = vor.u32 %v6345_v52, %v5308_v50  ;;  %v5533_v0 = vor.u32 %v6401_v58, %v5532_v56  ;;  %v6394_v6 = vld [vmem:[%s9610_s8 + $0x288] sm:$0xf0]  ;;  %v5644_v44 = vld [vmem:[%s9610_s8 + $0x388] sm:$0xf]  ;;  %v6429_v46 = vld [vmem:[%s9610_s8 + $0x3a0] sm:$0xf0] }
 0x2f1   : > { %v2338_v18 = vmax.f32 %v2334_v9, 0.0  ;;  %v2339_v19 = vmax.f32 %v2335_v55, 0.0  ;;  %v2340_v57 = vmax.f32 %v2336_v10, 0.0  ;;  %v2341_v20 = vmax.f32 %v2337_v11, 0.0  ;;  %v6450_v9 = vld [vmem:[%s9610_s8 + $0x448] sm:$0xf0] }
 0x2f2   : > { %v5757_v3 = vor.u32 %v6457_v60, %v5756_v59  ;;  %v5981_v4 = vor.u32 %v6513_v62, %v5980_v61  ;;  %v5952_v55 = vld [vmem:[%s9610_s8 + $0x5f0] sm:$0xf]  ;;  %v6506_v10 = vld [vmem:[%s9610_s8 + $0x608] sm:$0xf0]  ;;  %v5281_v11 = vor.u32 %v6338_v2, %v5280_v1  ;;  %v5505_v12 = vor.u32 %v6394_v6, %v5504_v5  ;;  %v5868_v47 = vld [vmem:[%s9610_s8 + $0x548] sm:$0xf] }
 0x2f3   : > { %v8571_v15 = vpack.c.bf16 %v2338_v18, %v2338_v18  ;;  %v8573_v51 = vpack.c.bf16 %v2339_v19, %v2339_v19  ;;  %v8575_v26 = vpack.c.bf16 %v2340_v57, %v2340_v57  ;;  %v8577_v27 = vpack.c.bf16 %v2341_v20, %v2341_v20  ;;  %v6387_v18 = vld [vmem:[%s9610_s8 + $0x250] sm:$0xf0]  ;;  %v5700_v19 = vld [vmem:[%s9610_s8 + $0x3f8] sm:$0xf]  ;;  %v6485_v24 = vld [vmem:[%s9610_s8 + $0x560] sm:$0xf0] }
 0x2f4   : > { %v5729_v16 = vor.u32 %v6450_v9, %v5728_v8  ;;  %v5953_v7 = vor.u32 %v6506_v10, %v5952_v55  ;;  %v6443_v57 = vld [vmem:[%s9610_s8 + $0x410] sm:$0xf0]  ;;  %v5924_v20 = vld [vmem:[%s9610_s8 + $0x5b8] sm:$0xf]  ;;  %v5618_v52 = vld [vmem:[%s9610_s8 + $0x36c] sm:$0xf0]  ;;  %v5645_v61 = vor.u32 %v6429_v46, %v5644_v44  ;;  %v5869_v62 = vor.u32 %v6485_v24, %v5868_v47 }
 0x2f5   : > { %3778 = vmatmul.bf16.vlgmr.msra.gmra.mxu3 %v8571_v15  ;;  %3791 = vmatmul.bf16.vlgmr.msra.gmra.mxu1 %v8573_v51  ;;  %v6419_v50 = vld [vmem:[%s9610_s8 + $0x354] sm:$0xf]  ;;  %v5842_v58 = vld [vmem:[%s9610_s8 + $0x52c] sm:$0xf0]  ;;  %v6356_v1 = vld [vmem:[%s9610_s8 + $0x15c] sm:$0xf] }
 0x2f6   : > { %3804 = vmatmul.bf16.vlgmr.msra.gmra.mxu2 %v8575_v26  ;;  %3817 = vmatmul.bf16.vlgmr.msra.gmra.mxu0 %v8577_v27  ;;  %v6531_v59 = vld [vmem:[%s9610_s8 + $0x6d4] sm:$0xf]  ;;  %v6066_v60 = vld [vmem:[%s9610_s8 + $0x6ec] sm:$0xf0]  ;;  %v5366_v2 = vld [vmem:[%s9610_s8 + $0x174] sm:$0xf0] }
 0x2f7   : > { %3874 = vmatpush.bf16.msra.mxu3 %v5393_v22  ;;  %3887 = vmatpush.bf16.msra.mxu1 %v5617_v23  ;;  %v5253_v22 = vor.u32 %v6331_v14, %v5252_v13  ;;  %v5477_v23 = vor.u32 %v6387_v18, %v5476_v17  ;;  %v6412_v5 = vld [vmem:[%s9610_s8 + $0x31c] sm:$0xf]  ;;  %v5590_v6 = vld [vmem:[%s9610_s8 + $0x334] sm:$0xf0]  ;;  %v6349_v13 = vld [vmem:[%s9610_s8 + $0x124] sm:$0xf] }
 0x2f8   : > { %3900 = vmatpush.bf16.msra.mxu2 %v5841_v30  ;;  %3913 = vmatpush.bf16.msra.mxu0 %v6065_v35  ;;  %v5701_v30 = vor.u32 %v6443_v57, %v5700_v19  ;;  %v5925_v35 = vor.u32 %v6499_v21, %v5924_v20  ;;  %v6468_v8 = vld [vmem:[%s9610_s8 + $0x4dc] sm:$0xf]  ;;  %v5814_v9 = vld [vmem:[%s9610_s8 + $0x4f4] sm:$0xf0]  ;;  %v5338_v14 = vld [vmem:[%s9610_s8 + $0x13c] sm:$0xf0] }
 0x2f9   : > { %v6524_v55 = vld [vmem:[%s9610_s8 + $0x69c] sm:$0xf]  ;;  %v6038_v10 = vld [vmem:[%s9610_s8 + $0x6b4] sm:$0xf0]  ;;  %v6405_v17 = vld [vmem:[%s9610_s8 + $0x2e4] sm:$0xf] }
 0x2fa   : > { %v5562_v18 = vld [vmem:[%s9610_s8 + $0x2fc] sm:$0xf0]  ;;  %v6461_v19 = vld [vmem:[%s9610_s8 + $0x4a4] sm:$0xf]  ;;  %v6454_v31 = vld [vmem:[%s9610_s8 + $0x46c] sm:$0xf] }
 0x2fb   : > { %3875 = vmatpush.bf16.msra.mxu3 %v5365_v38  ;;  %3888 = vmatpush.bf16.msra.mxu1 %v5589_v37  ;;  %v5196_v38 = vld [vmem:[%s9610_s8 + $0x8] sm:$0xf]  ;;  %v5225_v37 = vor.u32 %v6324_v29, %v5224_v28  ;;  %v5786_v57 = vld [vmem:[%s9610_s8 + $0x4bc] sm:$0xf0]  ;;  %v6517_v20 = vld [vmem:[%s9610_s8 + $0x664] sm:$0xf] }
 0x2fc   : > { %3901 = vmatpush.bf16.msra.mxu2 %v5813_v41  ;;  %3914 = vmatpush.bf16.msra.mxu0 %v6037_v42  ;;  %v5420_v41 = vld [vmem:[%s9610_s8 + $0x1c8] sm:$0xf]  ;;  %v6373_v42 = vld [vmem:[%s9610_s8 + $0x1e0] sm:$0xf0]  ;;  %v6010_v21 = vld [vmem:[%s9610_s8 + $0x67c] sm:$0xf0] }
 0x2fd   : > { %v5421_v56 = vor.u32 %v6373_v42, %v5420_v41  ;;  %v6342_v28 = vld [vmem:[%s9610_s8 + $0xec] sm:$0xf]  ;;  %v5310_v29 = vld [vmem:[%s9610_s8 + $0x104] sm:$0xf0]  ;;  %v6447_v44 = vld [vmem:[%s9610_s8 + $0x434] sm:$0xf] }
 0x2fe   : > { %v5758_v33 = vld [vmem:[%s9610_s8 + $0x484] sm:$0xf0]  ;;  %v6510_v34 = vld [vmem:[%s9610_s8 + $0x62c] sm:$0xf]  ;;  %v5730_v46 = vld [vmem:[%s9610_s8 + $0x44c] sm:$0xf0] }
 0x2ff   : > { %3876 = vmatpush.bf16.msra.mxu3 %v5337_v48  ;;  %3889 = vmatpush.bf16.msra.mxu1 %v5561_v49  ;;  %v6363_v48 = vld [vmem:[%s9610_s8 + $0x194] sm:$0xf]  ;;  %v5394_v49 = vld [vmem:[%s9610_s8 + $0x1ac] sm:$0xf0]  ;;  %v5982_v36 = vld [vmem:[%s9610_s8 + $0x644] sm:$0xf0]  ;;  %v5761_v41 = vor.u32 %v6454_v31, %v5758_v33 }
 0x300   : > { %3902 = vmatpush.bf16.msra.mxu2 %v5785_v53  ;;  %3915 = vmatpush.bf16.msra.mxu0 %v6009_v54  ;;  %v6475_v53 = vld [vmem:[%s9610_s8 + $0x514] sm:$0xf]  ;;  %v5197_v54 = vor.u32 %v6317_v40, %v5196_v38  ;;  %v5313_v38 = vor.u32 %v6342_v28, %v5310_v29  ;;  %v5282_v40 = vld [vmem:[%s9610_s8 + $0xcc] sm:$0xf0]  ;;  %v5985_v42 = vor.u32 %v6510_v34, %v5982_v36  ;;  %v5624_v28 = vld [vmem:[%s9610_s8 + $0x358] sm:$0xf] }
 0x301   : > { %v6503_v47 = vld [vmem:[%s9610_s8 + $0x5f4] sm:$0xf]  ;;  %v5954_v24 = vld [vmem:[%s9610_s8 + $0x60c] sm:$0xf0]  ;;  %v6072_v31 = vld [vmem:[%s9610_s8 + $0x6d8] sm:$0xf] }
 0x302   : > { %v6423_v29 = vld [vmem:[%s9610_s8 + $0x370] sm:$0xf0] }
 0x303   : > { %3877 = vmatpush.bf16.msra.mxu3 %v5309_v63  ;;  %3890 = vmatpush.bf16.msra.mxu1 %v5533_v0  ;;  %v5397_v63 = vor.u32 %v6363_v48, %v5394_v49  ;;  %v5621_v0 = vor.u32 %v6419_v50, %v5618_v52  ;;  %v6328_v50 = vld [vmem:[%s9610_s8 + $0x7c] sm:$0xf]  ;;  %v5254_v52 = vld [vmem:[%s9610_s8 + $0x94] sm:$0xf0]  ;;  %v6535_v33 = vld [vmem:[%s9610_s8 + $0x6f0] sm:$0xf0] }
 0x304   : > { %3903 = vmatpush.bf16.msra.mxu2 %v5757_v3  ;;  %3916 = vmatpush.bf16.msra.mxu0 %v5981_v4  ;;  %v5845_v3 = vor.u32 %v6475_v53, %v5842_v58  ;;  %v6069_v4 = vor.u32 %v6531_v59, %v6066_v60  ;;  %v5733_v53 = vor.u32 %v6447_v44, %v5730_v46  ;;  %v5478_v58 = vld [vmem:[%s9610_s8 + $0x254] sm:$0xf0]  ;;  %v6440_v59 = vld [vmem:[%s9610_s8 + $0x3fc] sm:$0xf]  ;;  %v5820_v44 = vld [vmem:[%s9610_s8 + $0x4e0] sm:$0xf] }
 0x305   : > { %3830 = vmatmul.bf16.vlgmr.msrb.gmra.mxu3 %v8571_v15  ;;  %3843 = vmatmul.bf16.vlgmr.msrb.gmra.mxu1 %v8573_v51  ;;  %v5702_v60 = vld [vmem:[%s9610_s8 + $0x414] sm:$0xf0]  ;;  %v6472_v46 = vld [vmem:[%s9610_s8 + $0x4f8] sm:$0xf0] }
 0x306   : > { %3856 = vmatmul.bf16.vlgmr.msrb.gmra.mxu2 %v8575_v26  ;;  %3869 = vmatmul.bf16.vlgmr.msrb.gmra.mxu0 %v8577_v27 }
 0x307   : > { %3878 = vmatpush.bf16.msra.mxu3 %v5281_v11  ;;  %3891 = vmatpush.bf16.msra.mxu1 %v5505_v12  ;;  %v5369_v11 = vor.u32 %v6356_v1, %v5366_v2  ;;  %v5593_v12 = vor.u32 %v6412_v5, %v5590_v6  ;;  %v6321_v1 = vld [vmem:[%s9610_s8 + $0x44] sm:$0xf]  ;;  %v5226_v2 = vld [vmem:[%s9610_s8 + $0x5c] sm:$0xf0] }
 0x308   : > { %3904 = vmatpush.bf16.msra.mxu2 %v5729_v16  ;;  %3917 = vmatpush.bf16.msra.mxu0 %v5953_v7  ;;  %v5817_v16 = vor.u32 %v6468_v8, %v5814_v9  ;;  %v6041_v7 = vor.u32 %v6524_v55, %v6038_v10  ;;  %v6377_v5 = vld [vmem:[%s9610_s8 + $0x204] sm:$0xf]  ;;  %v5450_v6 = vld [vmem:[%s9610_s8 + $0x21c] sm:$0xf0] }
 0x309   : > { %v6433_v8 = vld [vmem:[%s9610_s8 + $0x3c4] sm:$0xf]  ;;  %v5674_v9 = vld [vmem:[%s9610_s8 + $0x3dc] sm:$0xf0] }
 0x30a   : > { %v6489_v55 = vld [vmem:[%s9610_s8 + $0x584] sm:$0xf]  ;;  %v5898_v10 = vld [vmem:[%s9610_s8 + $0x59c] sm:$0xf0] }
 0x30b   : > { %3879 = vmatpush.bf16.msra.mxu3 %v5253_v22  ;;  %3892 = vmatpush.bf16.msra.mxu1 %v5477_v23  ;;  %v5341_v22 = vor.u32 %v6349_v13, %v5338_v14  ;;  %v5565_v23 = vor.u32 %v6405_v17, %v5562_v18  ;;  %v5453_v13 = vor.u32 %v6377_v5, %v5450_v6  ;;  %v5198_v14 = vld [vmem:[%s9610_s8 + $0x24] sm:$0xf0]  ;;  %v5540_v5 = vld [vmem:[%s9610_s8 + $0x2b0] sm:$0xf]  ;;  %v6402_v6 = vld [vmem:[%s9610_s8 + $0x2c8] sm:$0xf0] }
 0x30c   : > { %3905 = vmatpush.bf16.msra.mxu2 %v5701_v30  ;;  %3918 = vmatpush.bf16.msra.mxu0 %v5925_v35  ;;  %v5789_v30 = vor.u32 %v6461_v19, %v5786_v57  ;;  %v6013_v35 = vor.u32 %v6517_v20, %v6010_v21  ;;  %v5677_v17 = vor.u32 %v6433_v8, %v5674_v9  ;;  %v6426_v19 = vld [vmem:[%s9610_s8 + $0x38c] sm:$0xf]  ;;  %v5646_v57 = vld [vmem:[%s9610_s8 + $0x3a4] sm:$0xf0]  ;;  %v5764_v8 = vld [vmem:[%s9610_s8 + $0x470] sm:$0xf] }
 0x30d   : > { %v5901_v18 = vor.u32 %v6489_v55, %v5898_v10  ;;  %v6482_v20 = vld [vmem:[%s9610_s8 + $0x54c] sm:$0xf]  ;;  %v5870_v21 = vld [vmem:[%s9610_s8 + $0x564] sm:$0xf0]  ;;  %v5649_v34 = vor.u32 %v6426_v19, %v5646_v57  ;;  %v5988_v55 = vld [vmem:[%s9610_s8 + $0x630] sm:$0xf] }
 0x30e   : > { %v5873_v36 = vor.u32 %v6482_v20, %v5870_v21  ;;  %v6458_v9 = vld [vmem:[%s9610_s8 + $0x488] sm:$0xf0]  ;;  %v5736_v19 = vld [vmem:[%s9610_s8 + $0x438] sm:$0xf]  ;;  %v6451_v57 = vld [vmem:[%s9610_s8 + $0x450] sm:$0xf0] }
 0x30f   : > { %3880 = vmatpush.bf16.msra.mxu3 %v5225_v37  ;;  %3893 = vmatpush.bf16.msra.mxu1 %v5449_v39  ;;  %v5537_v37 = vor.u32 %v6398_v25, %v5534_v32  ;;  %v6335_v39 = vld [vmem:[%s9610_s8 + $0xb4] sm:$0xf]  ;;  %v6514_v10 = vld [vmem:[%s9610_s8 + $0x648] sm:$0xf0]  ;;  %v5960_v20 = vld [vmem:[%s9610_s8 + $0x5f8] sm:$0xf] }
 0x310   : > { %3906 = vmatpush.bf16.msra.mxu2 %v5673_v45  ;;  %3919 = vmatpush.bf16.msra.mxu0 %v5897_v43  ;;  %v6391_v45 = vld [vmem:[%s9610_s8 + $0x274] sm:$0xf]  ;;  %v5506_v43 = vld [vmem:[%s9610_s8 + $0x28c] sm:$0xf0]  ;;  %v5285_v48 = vor.u32 %v6335_v39, %v5282_v40  ;;  %v5372_v39 = vld [vmem:[%s9610_s8 + $0x160] sm:$0xf] }
 0x311   : > { %v5509_v49 = vor.u32 %v6391_v45, %v5506_v43  ;;  %v6479_v32 = vld [vmem:[%s9610_s8 + $0x530] sm:$0xf0]  ;;  %v6360_v40 = vld [vmem:[%s9610_s8 + $0x178] sm:$0xf0]  ;;  %v5596_v45 = vld [vmem:[%s9610_s8 + $0x320] sm:$0xf] }
 0x312   : > { %v6416_v43 = vld [vmem:[%s9610_s8 + $0x338] sm:$0xf0]  ;;  %v6507_v21 = vld [vmem:[%s9610_s8 + $0x610] sm:$0xf0] }
 0x313   : > { %3881 = vmatpush.bf16.msra.mxu3 %v5197_v54  ;;  %3894 = vmatpush.bf16.msra.mxu1 %v5421_v56  ;;  %v5957_v54 = vor.u32 %v6503_v47, %v5954_v24  ;;  %v6384_v56 = vld [vmem:[%s9610_s8 + $0x23c] sm:$0xf]  ;;  %v6044_v47 = vld [vmem:[%s9610_s8 + $0x6a0] sm:$0xf] }
 0x314   : > { %3907 = vmatpush.bf16.msra.mxu2 %v5645_v61  ;;  %3920 = vmatpush.bf16.msra.mxu0 %v5869_v62  ;;  %v6496_v61 = vld [vmem:[%s9610_s8 + $0x5bc] sm:$0xf]  ;;  %v5926_v62 = vld [vmem:[%s9610_s8 + $0x5d4] sm:$0xf0] }
 0x315   : > { %v6528_v24 = vld [vmem:[%s9610_s8 + $0x6b8] sm:$0xf0] }
 0x316   : > { %3882 = vmatmul.bf16.vlgmr.msra.gmra.mxu3 %v8571_v15  ;;  %3895 = vmatmul.bf16.vlgmr.msra.gmra.mxu1 %v8573_v51 }
 0x317   : > { %3926 = vmatpush.bf16.msrb.mxu3 %v5397_v63  ;;  %3939 = vmatpush.bf16.msrb.mxu1 %v5621_v0  ;;  %v5257_v63 = vor.u32 %v6328_v50, %v5254_v52  ;;  %v5481_v0 = vor.u32 %v6384_v56, %v5478_v58  ;;  %v5344_v50 = vld [vmem:[%s9610_s8 + $0x128] sm:$0xf]  ;;  %v6353_v52 = vld [vmem:[%s9610_s8 + $0x140] sm:$0xf0] }
 0x318   : > { %3952 = vmatpush.bf16.msrb.mxu2 %v5845_v3  ;;  %3965 = vmatpush.bf16.msrb.mxu0 %v6069_v4  ;;  %v5705_v3 = vor.u32 %v6440_v59, %v5702_v60  ;;  %v5929_v4 = vor.u32 %v6496_v61, %v5926_v62  ;;  %v5568_v56 = vld [vmem:[%s9610_s8 + $0x2e8] sm:$0xf]  ;;  %v6409_v58 = vld [vmem:[%s9610_s8 + $0x300] sm:$0xf0] }
 0x319   : > { %3908 = vmatmul.bf16.vlgmr.msra.gmra.mxu2 %v8575_v26  ;;  %3921 = vmatmul.bf16.vlgmr.msra.gmra.mxu0 %v8577_v27  ;;  %v5792_v59 = vld [vmem:[%s9610_s8 + $0x4a8] sm:$0xf]  ;;  %v6465_v60 = vld [vmem:[%s9610_s8 + $0x4c0] sm:$0xf0] }
 0x31a   : > { %v6016_v61 = vld [vmem:[%s9610_s8 + $0x668] sm:$0xf]  ;;  %v6521_v62 = vld [vmem:[%s9610_s8 + $0x680] sm:$0xf0] }
 0x31b   : > { %3927 = vmatpush.bf16.msrb.mxu3 %v5369_v11  ;;  %3940 = vmatpush.bf16.msrb.mxu1 %v5593_v12  ;;  %v6314_v11 = vld [vmem:[%s9610_s8 + $0xc] sm:$0xf]  ;;  %v5229_v12 = vor.u32 %v6321_v1, %v5226_v2  ;;  %v5316_v1 = vld [vmem:[%s9610_s8 + $0xf0] sm:$0xf] }
 0x31c   : > { %3953 = vmatpush.bf16.msrb.mxu2 %v5817_v16  ;;  %3966 = vmatpush.bf16.msrb.mxu0 %v6041_v7  ;;  %v6370_v16 = vld [vmem:[%s9610_s8 + $0x1cc] sm:$0xf]  ;;  %v5422_v7 = vld [vmem:[%s9610_s8 + $0x1e4] sm:$0xf0] }
 0x31d   : > { %v5425_v25 = vor.u32 %v6370_v16, %v5422_v7  ;;  %v6346_v2 = vld [vmem:[%s9610_s8 + $0x108] sm:$0xf0]  ;;  %v5765_v16 = vor.u32 %v6458_v9, %v5764_v8  ;;  %v5989_v7 = vor.u32 %v6514_v10, %v5988_v55  ;;  %v6532_v8 = vld [vmem:[%s9610_s8 + $0x6dc] sm:$0xf]  ;;  %v6074_v9 = vld [vmem:[%s9610_s8 + $0x6f4] sm:$0xf0] }
 0x31f   : > { %3928 = vmatpush.bf16.msrb.mxu3 %v5341_v22  ;;  %3941 = vmatpush.bf16.msrb.mxu1 %v5565_v23  ;;  %v5400_v22 = vld [vmem:[%s9610_s8 + $0x198] sm:$0xf]  ;;  %v6367_v23 = vld [vmem:[%s9610_s8 + $0x1b0] sm:$0xf0] }
 0x320   : > { %3954 = vmatpush.bf16.msrb.mxu2 %v5789_v30  ;;  %3967 = vmatpush.bf16.msrb.mxu0 %v6013_v35  ;;  %v5848_v30 = vld [vmem:[%s9610_s8 + $0x518] sm:$0xf]  ;;  %v5201_v35 = vor.u32 %v6314_v11, %v5198_v14  ;;  %v5317_v11 = vor.u32 %v6346_v2, %v5316_v1  ;;  %v6339_v14 = vld [vmem:[%s9610_s8 + $0xd0] sm:$0xf0]  ;;  %v6420_v1 = vld [vmem:[%s9610_s8 + $0x35c] sm:$0xf] }
 0x321   : > { %v5626_v2 = vld [vmem:[%s9610_s8 + $0x374] sm:$0xf0] }
 0x323   : > { %3929 = vmatpush.bf16.msrb.mxu3 %v5313_v38  ;;  %3942 = vmatpush.bf16.msrb.mxu1 %v5537_v37  ;;  %v5401_v38 = vor.u32 %v6367_v23, %v5400_v22  ;;  %v5625_v37 = vor.u32 %v6423_v29, %v5624_v28  ;;  %v5260_v28 = vld [vmem:[%s9610_s8 + $0x80] sm:$0xf]  ;;  %v6332_v29 = vld [vmem:[%s9610_s8 + $0x98] sm:$0xf0] }
 0x324   : > { %3955 = vmatpush.bf16.msrb.mxu2 %v5761_v41  ;;  %3968 = vmatpush.bf16.msrb.mxu0 %v5985_v42  ;;  %v5849_v41 = vor.u32 %v6479_v32, %v5848_v30  ;;  %v6073_v42 = vor.u32 %v6535_v33, %v6072_v31  ;;  %v5737_v30 = vor.u32 %v6451_v57, %v5736_v19  ;;  %v6388_v32 = vld [vmem:[%s9610_s8 + $0x258] sm:$0xf0]  ;;  %v5708_v31 = vld [vmem:[%s9610_s8 + $0x400] sm:$0xf]  ;;  %v6469_v19 = vld [vmem:[%s9610_s8 + $0x4e4] sm:$0xf] }
 0x325   : > { %v6444_v33 = vld [vmem:[%s9610_s8 + $0x418] sm:$0xf0]  ;;  %v5822_v57 = vld [vmem:[%s9610_s8 + $0x4fc] sm:$0xf0] }
 0x327   : > { %3930 = vmatpush.bf16.msrb.mxu3 %v5285_v48  ;;  %3943 = vmatpush.bf16.msrb.mxu1 %v5509_v49  ;;  %v5373_v48 = vor.u32 %v6360_v40, %v5372_v39  ;;  %v5597_v49 = vor.u32 %v6416_v43, %v5596_v45  ;;  %v5232_v39 = vld [vmem:[%s9610_s8 + $0x48] sm:$0xf]  ;;  %v6325_v40 = vld [vmem:[%s9610_s8 + $0x60] sm:$0xf0] }
 0x328   : > { %3956 = vmatpush.bf16.msrb.mxu2 %v5733_v53  ;;  %3969 = vmatpush.bf16.msrb.mxu0 %v5957_v54  ;;  %v5821_v53 = vor.u32 %v6472_v46, %v5820_v44  ;;  %v6045_v54 = vor.u32 %v6528_v24, %v6044_v47  ;;  %v5456_v45 = vld [vmem:[%s9610_s8 + $0x208] sm:$0xf]  ;;  %v6381_v43 = vld [vmem:[%s9610_s8 + $0x220] sm:$0xf0] }
 0x329   : > { %v5680_v44 = vld [vmem:[%s9610_s8 + $0x3c8] sm:$0xf]  ;;  %v6437_v46 = vld [vmem:[%s9610_s8 + $0x3e0] sm:$0xf0] }
 0x32a   : > { %v5904_v47 = vld [vmem:[%s9610_s8 + $0x588] sm:$0xf]  ;;  %v6493_v24 = vld [vmem:[%s9610_s8 + $0x5a0] sm:$0xf0] }
 0x32b   : > { %3931 = vmatpush.bf16.msrb.mxu3 %v5257_v63  ;;  %3944 = vmatpush.bf16.msrb.mxu1 %v5481_v0  ;;  %v5345_v63 = vor.u32 %v6353_v52, %v5344_v50  ;;  %v5569_v0 = vor.u32 %v6409_v58, %v5568_v56  ;;  %v5457_v50 = vor.u32 %v6381_v43, %v5456_v45  ;;  %v6318_v52 = vld [vmem:[%s9610_s8 + $0x28] sm:$0xf0]  ;;  %v6399_v45 = vld [vmem:[%s9610_s8 + $0x2b4] sm:$0xf]  ;;  %v5542_v43 = vld [vmem:[%s9610_s8 + $0x2cc] sm:$0xf0] }
 0x32c   : > { %3957 = vmatpush.bf16.msrb.mxu2 %v5705_v3  ;;  %3970 = vmatpush.bf16.msrb.mxu0 %v5929_v4  ;;  %v5793_v3 = vor.u32 %v6465_v60, %v5792_v59  ;;  %v6017_v4 = vor.u32 %v6521_v62, %v6016_v61  ;;  %v5681_v56 = vor.u32 %v6437_v46, %v5680_v44  ;;  %v5652_v59 = vld [vmem:[%s9610_s8 + $0x390] sm:$0xf]  ;;  %v6430_v60 = vld [vmem:[%s9610_s8 + $0x3a8] sm:$0xf0]  ;;  %v6455_v44 = vld [vmem:[%s9610_s8 + $0x474] sm:$0xf] }
 0x32d   : > { %v5905_v58 = vor.u32 %v6493_v24, %v5904_v47  ;;  %v5876_v61 = vld [vmem:[%s9610_s8 + $0x550] sm:$0xf]  ;;  %v6486_v62 = vld [vmem:[%s9610_s8 + $0x568] sm:$0xf0]  ;;  %v5653_v55 = vor.u32 %v6430_v60, %v5652_v59  ;;  %v6511_v47 = vld [vmem:[%s9610_s8 + $0x634] sm:$0xf] }
 0x32e   : > { %v5877_v10 = vor.u32 %v6486_v62, %v5876_v61  ;;  %v5766_v46 = vld [vmem:[%s9610_s8 + $0x48c] sm:$0xf0]  ;;  %v6448_v59 = vld [vmem:[%s9610_s8 + $0x43c] sm:$0xf]  ;;  %v5738_v60 = vld [vmem:[%s9610_s8 + $0x454] sm:$0xf0] }
 0x32f   : > { %3932 = vmatpush.bf16.msrb.mxu3 %v5229_v12  ;;  %3945 = vmatpush.bf16.msrb.mxu1 %v5453_v13  ;;  %v5541_v12 = vor.u32 %v6402_v6, %v5540_v5  ;;  %v5288_v13 = vld [vmem:[%s9610_s8 + $0xb8] sm:$0xf]  ;;  %v5990_v24 = vld [vmem:[%s9610_s8 + $0x64c] sm:$0xf0]  ;;  %v6504_v61 = vld [vmem:[%s9610_s8 + $0x5fc] sm:$0xf] }
 0x330   : > { %3958 = vmatpush.bf16.msrb.mxu2 %v5677_v17  ;;  %3971 = vmatpush.bf16.msrb.mxu0 %v5901_v18  ;;  %v5512_v17 = vld [vmem:[%s9610_s8 + $0x278] sm:$0xf]  ;;  %v6395_v18 = vld [vmem:[%s9610_s8 + $0x290] sm:$0xf0]  ;;  %v5289_v22 = vor.u32 %v6339_v14, %v5288_v13  ;;  %v6357_v13 = vld [vmem:[%s9610_s8 + $0x164] sm:$0xf] }
 0x331   : > { %v5513_v23 = vor.u32 %v6395_v18, %v5512_v17  ;;  %v5850_v6 = vld [vmem:[%s9610_s8 + $0x534] sm:$0xf0]  ;;  %v5374_v14 = vld [vmem:[%s9610_s8 + $0x17c] sm:$0xf0]  ;;  %v6413_v17 = vld [vmem:[%s9610_s8 + $0x324] sm:$0xf] }
 0x332   : > { %v5598_v18 = vld [vmem:[%s9610_s8 + $0x33c] sm:$0xf0]  ;;  %v5962_v62 = vld [vmem:[%s9610_s8 + $0x614] sm:$0xf0] }
 0x333   : > { %3933 = vmatpush.bf16.msrb.mxu3 %v5201_v35  ;;  %3946 = vmatpush.bf16.msrb.mxu1 %v5425_v25  ;;  %v5961_v35 = vor.u32 %v6507_v21, %v5960_v20  ;;  %v5484_v25 = vld [vmem:[%s9610_s8 + $0x240] sm:$0xf]  ;;  %v6525_v20 = vld [vmem:[%s9610_s8 + $0x6a4] sm:$0xf] }
 0x334   : > { %3959 = vmatpush.bf16.msrb.mxu2 %v5649_v34  ;;  %3972 = vmatpush.bf16.msrb.mxu0 %v5873_v36  ;;  %v5932_v34 = vld [vmem:[%s9610_s8 + $0x5c0] sm:$0xf]  ;;  %v6500_v36 = vld [vmem:[%s9610_s8 + $0x5d8] sm:$0xf0] }
 0x335   : > { %v6046_v21 = vld [vmem:[%s9610_s8 + $0x6bc] sm:$0xf0] }
 0x336   : > { %3934 = vmatmul.bf16.vlgmr.msrb.gmra.mxu3 %v8571_v15  ;;  %3947 = vmatmul.bf16.vlgmr.msrb.gmra.mxu1 %v8573_v51 }
 0x337   : > { %3978 = vmatpush.bf16.msra.mxu3 %v5401_v38  ;;  %3991 = vmatpush.bf16.msra.mxu1 %v5625_v37  ;;  %v5261_v38 = vor.u32 %v6332_v29, %v5260_v28  ;;  %v5485_v37 = vor.u32 %v6388_v32, %v5484_v25  ;;  %v6350_v28 = vld [vmem:[%s9610_s8 + $0x12c] sm:$0xf]  ;;  %v5346_v29 = vld [vmem:[%s9610_s8 + $0x144] sm:$0xf0] }
 0x338   : > { %4004 = vmatpush.bf16.msra.mxu2 %v5849_v41  ;;  %4017 = vmatpush.bf16.msra.mxu0 %v6073_v42  ;;  %v5709_v41 = vor.u32 %v6444_v33, %v5708_v31  ;;  %v5933_v42 = vor.u32 %v6500_v36, %v5932_v34  ;;  %v6406_v25 = vld [vmem:[%s9610_s8 + $0x2ec] sm:$0xf]  ;;  %v5570_v32 = vld [vmem:[%s9610_s8 + $0x304] sm:$0xf0] }
 0x339   : > { %3960 = vmatmul.bf16.vlgmr.msrb.gmra.mxu2 %v8575_v26  ;;  %3973 = vmatmul.bf16.vlgmr.msrb.gmra.mxu0 %v8577_v27  ;;  %v6462_v31 = vld [vmem:[%s9610_s8 + $0x4ac] sm:$0xf]  ;;  %v5794_v33 = vld [vmem:[%s9610_s8 + $0x4c4] sm:$0xf0] }
 0x33a   : > { %v6518_v34 = vld [vmem:[%s9610_s8 + $0x66c] sm:$0xf]  ;;  %v6018_v36 = vld [vmem:[%s9610_s8 + $0x684] sm:$0xf0] }
 0x33b   : > { %3979 = vmatpush.bf16.msra.mxu3 %v5373_v48  ;;  %3992 = vmatpush.bf16.msra.mxu1 %v5597_v49  ;;  %v5204_v48 = vld [vmem:[%s9610_s8 + $0x10] sm:$0xf]  ;;  %v5233_v49 = vor.u32 %v6325_v40, %v5232_v39  ;;  %v6343_v39 = vld [vmem:[%s9610_s8 + $0xf4] sm:$0xf] }
 0x33c   : > { %4005 = vmatpush.bf16.msra.mxu2 %v5821_v53  ;;  %4018 = vmatpush.bf16.msra.mxu0 %v6045_v54  ;;  %v5428_v53 = vld [vmem:[%s9610_s8 + $0x1d0] sm:$0xf]  ;;  %v6374_v54 = vld [vmem:[%s9610_s8 + $0x1e8] sm:$0xf0] }
 0x33d   : > { %v5429_v5 = vor.u32 %v6374_v54, %v5428_v53  ;;  %v5318_v40 = vld [vmem:[%s9610_s8 + $0x10c] sm:$0xf0]  ;;  %v5769_v53 = vor.u32 %v6455_v44, %v5766_v46  ;;  %v5993_v54 = vor.u32 %v6511_v47, %v5990_v24  ;;  %v6080_v44 = vld [vmem:[%s9610_s8 + $0x6e0] sm:$0xf]  ;;  %v6536_v46 = vld [vmem:[%s9610_s8 + $0x6f8] sm:$0xf0] }
 0x33f   : > { %3980 = vmatpush.bf16.msra.mxu3 %v5345_v63  ;;  %3993 = vmatpush.bf16.msra.mxu1 %v5569_v0  ;;  %v6364_v63 = vld [vmem:[%s9610_s8 + $0x19c] sm:$0xf]  ;;  %v5402_v0 = vld [vmem:[%s9610_s8 + $0x1b4] sm:$0xf0] }
 0x340   : > { %4006 = vmatpush.bf16.msra.mxu2 %v5793_v3  ;;  %4019 = vmatpush.bf16.msra.mxu0 %v6017_v4  ;;  %v6476_v3 = vld [vmem:[%s9610_s8 + $0x51c] sm:$0xf]  ;;  %v5205_v4 = vor.u32 %v6318_v52, %v5204_v48  ;;  %v5321_v48 = vor.u32 %v6343_v39, %v5318_v40  ;;  %v5290_v52 = vld [vmem:[%s9610_s8 + $0xd4] sm:$0xf0]  ;;  %v5632_v39 = vld [vmem:[%s9610_s8 + $0x360] sm:$0xf] }
 0x341   : > { %v6424_v40 = vld [vmem:[%s9610_s8 + $0x378] sm:$0xf0] }
 0x343   : > { %3981 = vmatpush.bf16.msra.mxu3 %v5317_v11  ;;  %3994 = vmatpush.bf16.msra.mxu1 %v5541_v12  ;;  %v5405_v11 = vor.u32 %v6364_v63, %v5402_v0  ;;  %v5629_v12 = vor.u32 %v6420_v1, %v5626_v2  ;;  %v6329_v1 = vld [vmem:[%s9610_s8 + $0x84] sm:$0xf]  ;;  %v5262_v2 = vld [vmem:[%s9610_s8 + $0x9c] sm:$0xf0] }
 0x344   : > { %4007 = vmatpush.bf16.msra.mxu2 %v5765_v16  ;;  %4020 = vmatpush.bf16.msra.mxu0 %v5989_v7  ;;  %v5853_v16 = vor.u32 %v6476_v3, %v5850_v6  ;;  %v6077_v7 = vor.u32 %v6532_v8, %v6074_v9  ;;  %v5741_v3 = vor.u32 %v6448_v59, %v5738_v60  ;;  %v5486_v6 = vld [vmem:[%s9610_s8 + $0x25c] sm:$0xf0]  ;;  %v6441_v8 = vld [vmem:[%s9610_s8 + $0x404] sm:$0xf]  ;;  %v5828_v59 = vld [vmem:[%s9610_s8 + $0x4e8] sm:$0xf] }
 0x345   : > { %v5710_v9 = vld [vmem:[%s9610_s8 + $0x41c] sm:$0xf0]  ;;  %v6473_v60 = vld [vmem:[%s9610_s8 + $0x500] sm:$0xf0] }
 0x347   : > { %3982 = vmatpush.bf16.msra.mxu3 %v5289_v22  ;;  %3995 = vmatpush.bf16.msra.mxu1 %v5513_v23  ;;  %v5377_v22 = vor.u32 %v6357_v13, %v5374_v14  ;;  %v5601_v23 = vor.u32 %v6413_v17, %v5598_v18  ;;  %v6322_v13 = vld [vmem:[%s9610_s8 + $0x4c] sm:$0xf]  ;;  %v5234_v14 = vld [vmem:[%s9610_s8 + $0x64] sm:$0xf0] }
 0x348   : > { %4008 = vmatpush.bf16.msra.mxu2 %v5737_v30  ;;  %4021 = vmatpush.bf16.msra.mxu0 %v5961_v35  ;;  %v5825_v30 = vor.u32 %v6469_v19, %v5822_v57  ;;  %v6049_v35 = vor.u32 %v6525_v20, %v6046_v21  ;;  %v6378_v17 = vld [vmem:[%s9610_s8 + $0x20c] sm:$0xf]  ;;  %v5458_v18 = vld [vmem:[%s9610_s8 + $0x224] sm:$0xf0] }
 0x349   : > { %v6434_v19 = vld [vmem:[%s9610_s8 + $0x3cc] sm:$0xf]  ;;  %v5682_v57 = vld [vmem:[%s9610_s8 + $0x3e4] sm:$0xf0] }
 0x34a   : > { %v6490_v20 = vld [vmem:[%s9610_s8 + $0x58c] sm:$0xf]  ;;  %v5906_v21 = vld [vmem:[%s9610_s8 + $0x5a4] sm:$0xf0] }
 0x34b   : > { %3983 = vmatpush.bf16.msra.mxu3 %v5261_v38  ;;  %3996 = vmatpush.bf16.msra.mxu1 %v5485_v37  ;;  %v5349_v38 = vor.u32 %v6350_v28, %v5346_v29  ;;  %v5573_v37 = vor.u32 %v6406_v25, %v5570_v32  ;;  %v5461_v28 = vor.u32 %v6378_v17, %v5458_v18  ;;  %v5206_v29 = vld [vmem:[%s9610_s8 + $0x2c] sm:$0xf0]  ;;  %v6347_v17 = vld [vmem:[%s9610_s8 + $0x110] sm:$0xf0]  ;;  %v5548_v18 = vld [vmem:[%s9610_s8 + $0x2b8] sm:$0xf] }
 0x34c   : > { %4009 = vmatpush.bf16.msra.mxu2 %v5709_v41  ;;  %4022 = vmatpush.bf16.msra.mxu0 %v5933_v42  ;;  %v5797_v41 = vor.u32 %v6462_v31, %v5794_v33  ;;  %v6021_v42 = vor.u32 %v6518_v34, %v6018_v36  ;;  %v5685_v25 = vor.u32 %v6434_v19, %v5682_v57  ;;  %v6427_v31 = vld [vmem:[%s9610_s8 + $0x394] sm:$0xf]  ;;  %v5654_v33 = vld [vmem:[%s9610_s8 + $0x3ac] sm:$0xf0] }
 0x34d   : > { %v5909_v32 = vor.u32 %v6490_v20, %v5906_v21  ;;  %v6483_v34 = vld [vmem:[%s9610_s8 + $0x554] sm:$0xf]  ;;  %v5878_v36 = vld [vmem:[%s9610_s8 + $0x56c] sm:$0xf0]  ;;  %v5657_v47 = vor.u32 %v6427_v31, %v5654_v33  ;;  %v5772_v21 = vld [vmem:[%s9610_s8 + $0x478] sm:$0xf] }
 0x34e   : > { %v5881_v24 = vor.u32 %v6483_v34, %v5878_v36  ;;  %v6403_v20 = vld [vmem:[%s9610_s8 + $0x2d0] sm:$0xf0]  ;;  %v5520_v36 = vld [vmem:[%s9610_s8 + $0x280] sm:$0xf] }
 0x34f   : > { %3984 = vmatpush.bf16.msra.mxu3 %v5233_v49  ;;  %3997 = vmatpush.bf16.msra.mxu1 %v5457_v50  ;;  %v5545_v49 = vor.u32 %v6399_v45, %v5542_v43  ;;  %v6336_v50 = vld [vmem:[%s9610_s8 + $0xbc] sm:$0xf] }
 0x350   : > { %4010 = vmatpush.bf16.msra.mxu2 %v5681_v56  ;;  %4023 = vmatpush.bf16.msra.mxu0 %v5905_v58  ;;  %v6392_v56 = vld [vmem:[%s9610_s8 + $0x27c] sm:$0xf]  ;;  %v5514_v58 = vld [vmem:[%s9610_s8 + $0x294] sm:$0xf0]  ;;  %v5293_v63 = vor.u32 %v6336_v50, %v5290_v52  ;;  %v5380_v50 = vld [vmem:[%s9610_s8 + $0x168] sm:$0xf] }
 0x351   : > { %v5517_v0 = vor.u32 %v6392_v56, %v5514_v58  ;;  %v6480_v43 = vld [vmem:[%s9610_s8 + $0x538] sm:$0xf0]  ;;  %v6361_v52 = vld [vmem:[%s9610_s8 + $0x180] sm:$0xf0]  ;;  %v5604_v56 = vld [vmem:[%s9610_s8 + $0x328] sm:$0xf] }
 0x352   : > { %v6417_v58 = vld [vmem:[%s9610_s8 + $0x340] sm:$0xf0] }
 0x353   : > { %3985 = vmatpush.bf16.msra.mxu3 %v5205_v4  ;;  %3998 = vmatpush.bf16.msra.mxu1 %v5429_v5  ;;  %v5965_v4 = vor.u32 %v6504_v61, %v5962_v62  ;;  %v6385_v5 = vld [vmem:[%s9610_s8 + $0x244] sm:$0xf]  ;;  %v6052_v61 = vld [vmem:[%s9610_s8 + $0x6a8] sm:$0xf] }
 0x354   : > { %4011 = vmatpush.bf16.msra.mxu2 %v5653_v55  ;;  %4024 = vmatpush.bf16.msra.mxu0 %v5877_v10  ;;  %v6497_v55 = vld [vmem:[%s9610_s8 + $0x5c4] sm:$0xf]  ;;  %v5934_v10 = vld [vmem:[%s9610_s8 + $0x5dc] sm:$0xf0] }
 0x355   : > { %v6529_v62 = vld [vmem:[%s9610_s8 + $0x6c0] sm:$0xf0] }
 0x356   : > { %3986 = vmatmul.bf16.vlgmr.msra.gmra.mxu3 %v8571_v15  ;;  %3999 = vmatmul.bf16.vlgmr.msra.gmra.mxu1 %v8573_v51 }
 0x357   : > { %4030 = vmatpush.bf16.msrb.mxu3 %v5405_v11  ;;  %4043 = vmatpush.bf16.msrb.mxu1 %v5629_v12  ;;  %v5265_v11 = vor.u32 %v6329_v1, %v5262_v2  ;;  %v5489_v12 = vor.u32 %v6385_v5, %v5486_v6  ;;  %v5352_v1 = vld [vmem:[%s9610_s8 + $0x130] sm:$0xf]  ;;  %v6354_v2 = vld [vmem:[%s9610_s8 + $0x148] sm:$0xf0] }
 0x358   : > { %4056 = vmatpush.bf16.msrb.mxu2 %v5853_v16  ;;  %4069 = vmatpush.bf16.msrb.mxu0 %v6077_v7  ;;  %v5713_v16 = vor.u32 %v6441_v8, %v5710_v9  ;;  %v5937_v7 = vor.u32 %v6497_v55, %v5934_v10  ;;  %v5576_v5 = vld [vmem:[%s9610_s8 + $0x2f0] sm:$0xf]  ;;  %v6410_v6 = vld [vmem:[%s9610_s8 + $0x308] sm:$0xf0] }
 0x359   : > { %4012 = vmatmul.bf16.vlgmr.msra.gmra.mxu2 %v8575_v26  ;;  %4025 = vmatmul.bf16.vlgmr.msra.gmra.mxu0 %v8577_v27  ;;  %v5800_v8 = vld [vmem:[%s9610_s8 + $0x4b0] sm:$0xf]  ;;  %v6466_v9 = vld [vmem:[%s9610_s8 + $0x4c8] sm:$0xf0] }
 0x35a   : > { %v6024_v55 = vld [vmem:[%s9610_s8 + $0x670] sm:$0xf]  ;;  %v6522_v10 = vld [vmem:[%s9610_s8 + $0x688] sm:$0xf0]  ;;  %v5801_v19 = vor.u32 %v6466_v9, %v5800_v8 }
 0x35b   : > { %4031 = vmatpush.bf16.msrb.mxu3 %v5377_v22  ;;  %4044 = vmatpush.bf16.msrb.mxu1 %v5601_v23  ;;  %v6315_v22 = vld [vmem:[%s9610_s8 + $0x14] sm:$0xf]  ;;  %v5237_v23 = vor.u32 %v6322_v13, %v5234_v14  ;;  %v5353_v13 = vor.u32 %v6354_v2, %v5352_v1  ;;  %v5577_v14 = vor.u32 %v6410_v6, %v5576_v5  ;;  %v5240_v1 = vld [vmem:[%s9610_s8 + $0x50] sm:$0xf]  ;;  %v6326_v2 = vld [vmem:[%s9610_s8 + $0x68] sm:$0xf0] }
 0x35c   : > { %4057 = vmatpush.bf16.msrb.mxu2 %v5825_v30  ;;  %4070 = vmatpush.bf16.msrb.mxu0 %v6049_v35  ;;  %v6371_v30 = vld [vmem:[%s9610_s8 + $0x1d4] sm:$0xf]  ;;  %v5430_v35 = vld [vmem:[%s9610_s8 + $0x1ec] sm:$0xf0]  ;;  %v6025_v57 = vor.u32 %v6522_v10, %v6024_v55  ;;  %v6382_v8 = vld [vmem:[%s9610_s8 + $0x228] sm:$0xf0] }
 0x35d   : > { %v5433_v45 = vor.u32 %v6371_v30, %v5430_v35  ;;  %v5549_v35 = vor.u32 %v6403_v20, %v5548_v18  ;;  %v5688_v9 = vld [vmem:[%s9610_s8 + $0x3d0] sm:$0xf]  ;;  %v6438_v55 = vld [vmem:[%s9610_s8 + $0x3e8] sm:$0xf0]  ;;  %v5241_v18 = vor.u32 %v6326_v2, %v5240_v1  ;;  %v6319_v20 = vld [vmem:[%s9610_s8 + $0x30] sm:$0xf0] }
 0x35f   : > { %4032 = vmatpush.bf16.msrb.mxu3 %v5349_v38  ;;  %4045 = vmatpush.bf16.msrb.mxu1 %v5573_v37  ;;  %v5408_v38 = vld [vmem:[%s9610_s8 + $0x1a0] sm:$0xf]  ;;  %v6368_v37 = vld [vmem:[%s9610_s8 + $0x1b8] sm:$0xf0] }
 0x360   : > { %4058 = vmatpush.bf16.msrb.mxu2 %v5797_v41  ;;  %4071 = vmatpush.bf16.msrb.mxu0 %v6021_v42  ;;  %v5856_v41 = vld [vmem:[%s9610_s8 + $0x520] sm:$0xf]  ;;  %v5209_v42 = vor.u32 %v6315_v22, %v5206_v29  ;;  %v6459_v22 = vld [vmem:[%s9610_s8 + $0x490] sm:$0xf0] }
 0x361   : > { %v5773_v31 = vor.u32 %v6459_v22, %v5772_v21  ;;  %v5436_v21 = vld [vmem:[%s9610_s8 + $0x1d8] sm:$0xf]  ;;  %v5689_v22 = vor.u32 %v6438_v55, %v5688_v9 }
 0x363   : > { %4033 = vmatpush.bf16.msrb.mxu3 %v5321_v48  ;;  %4046 = vmatpush.bf16.msrb.mxu1 %v5545_v49  ;;  %v5409_v48 = vor.u32 %v6368_v37, %v5408_v38  ;;  %v5633_v49 = vor.u32 %v6424_v40, %v5632_v39  ;;  %v6396_v38 = vld [vmem:[%s9610_s8 + $0x298] sm:$0xf0]  ;;  %v5744_v37 = vld [vmem:[%s9610_s8 + $0x440] sm:$0xf] }
 0x364   : > { %4059 = vmatpush.bf16.msrb.mxu2 %v5769_v53  ;;  %4072 = vmatpush.bf16.msrb.mxu0 %v5993_v54  ;;  %v5857_v53 = vor.u32 %v6480_v43, %v5856_v41  ;;  %v6081_v54 = vor.u32 %v6536_v46, %v6080_v44  ;;  %v6452_v41 = vld [vmem:[%s9610_s8 + $0x458] sm:$0xf0] }
 0x367   : > { %4034 = vmatpush.bf16.msrb.mxu3 %v5293_v63  ;;  %4047 = vmatpush.bf16.msrb.mxu1 %v5517_v0  ;;  %v5381_v63 = vor.u32 %v6361_v52, %v5380_v50  ;;  %v5605_v0 = vor.u32 %v6417_v58, %v5604_v56  ;;  %v5745_v50 = vor.u32 %v6452_v41, %v5744_v37  ;;  %v5716_v56 = vld [vmem:[%s9610_s8 + $0x408] sm:$0xf] }
 0x368   : > { %4060 = vmatpush.bf16.msrb.mxu2 %v5741_v3  ;;  %4073 = vmatpush.bf16.msrb.mxu0 %v5965_v4  ;;  %v5829_v3 = vor.u32 %v6473_v60, %v5828_v59  ;;  %v6053_v4 = vor.u32 %v6529_v62, %v6052_v61  ;;  %v6445_v59 = vld [vmem:[%s9610_s8 + $0x420] sm:$0xf0]  ;;  %v5940_v60 = vld [vmem:[%s9610_s8 + $0x5c8] sm:$0xf] }
 0x369   : > { %v6501_v61 = vld [vmem:[%s9610_s8 + $0x5e0] sm:$0xf0] }
 0x36a   : > { %v5941_v5 = vor.u32 %v6501_v61, %v5940_v60 }
 0x36b   : > { %4035 = vmatpush.bf16.msrb.mxu3 %v5265_v11  ;;  %4048 = vmatpush.bf16.msrb.mxu1 %v5489_v12  ;;  %v9422_v12 = vld [vmem:[%s9611_s9] sm:$0x7f] }
 0x36c   : > { %4061 = vmatpush.bf16.msrb.mxu2 %v5713_v16  ;;  %4074 = vmatpush.bf16.msrb.mxu0 %v5937_v7  ;;  %v5324_v7 = vld [vmem:[%s9610_s8 + $0xf8] sm:$0xf]  ;;  %v2604_v29 = vperm.slane %v9422_v12, 0  ;;  %v2607_v9 = vperm.slane %v9422_v12, 3 }
 0x36d   : > { %v5325_v30 = vor.u32 %v6347_v17, %v5324_v7  ;;  %v5212_v7 = vld [vmem:[%s9610_s8 + $0x18] sm:$0xf] }
 0x36f   : > { %4036 = vmatpush.bf16.msrb.mxu3 %v5237_v23  ;;  %4049 = vmatpush.bf16.msrb.mxu1 %v5461_v28  ;;  %v5996_v23 = vld [vmem:[%s9610_s8 + $0x638] sm:$0xf]  ;;  %v6515_v28 = vld [vmem:[%s9610_s8 + $0x650] sm:$0xf0] }
 0x370   : > { %4062 = vmatpush.bf16.msrb.mxu2 %v5685_v25  ;;  %4075 = vmatpush.bf16.msrb.mxu0 %v5909_v32  ;;  %v5296_v25 = vld [vmem:[%s9610_s8 + $0xc0] sm:$0xf]  ;;  %v6340_v32 = vld [vmem:[%s9610_s8 + $0xd8] sm:$0xf0]  ;;  %v5997_v33 = vor.u32 %v6515_v28, %v5996_v23  ;;  %v6375_v28 = vld [vmem:[%s9610_s8 + $0x1f0] sm:$0xf0] }
 0x371   : > { %v5297_v46 = vor.u32 %v6340_v32, %v5296_v25  ;;  %v6487_v25 = vld [vmem:[%s9610_s8 + $0x570] sm:$0xf0]  ;;  %v2605_v32 = vperm.slane %v9422_v12, 1 }
 0x372   : > { %v3792_v11 = vpop.f32.mrf.mxu1 }
 0x373   : > { %4037 = vmatpush.bf16.msrb.mxu3 %v5209_v42  ;;  %4050 = vmatpush.bf16.msrb.mxu1 %v5433_v45  ;;  %v3818_v16 = vpop.f32.mrf.mxu0  ;;  %v5968_v42 = vld [vmem:[%s9610_s8 + $0x600] sm:$0xf]  ;;  %v6508_v45 = vld [vmem:[%s9610_s8 + $0x618] sm:$0xf0] }
 0x374   : > { %4063 = vmatpush.bf16.msrb.mxu2 %v5657_v47  ;;  %4076 = vmatpush.bf16.msrb.mxu0 %v5881_v24  ;;  %v5521_v47 = vor.u32 %v6396_v38, %v5520_v36  ;;  %v5969_v52 = vor.u32 %v6508_v45, %v5968_v42 }
 0x376   : > { %4038 = vmatmul.bf16.vlgmr.msrb.gmra.mxu3 %v8571_v15  ;;  %4051 = vmatmul.bf16.vlgmr.msrb.gmra.mxu1 %v8573_v51 }
 0x377   : > { %4082 = vmatpush.bf16.msra.mxu3 %v5409_v48  ;;  %4095 = vmatpush.bf16.msra.mxu1 %v5633_v49  ;;  %v5268_v48 = vld [vmem:[%s9610_s8 + $0x88] sm:$0xf]  ;;  %v6333_v49 = vld [vmem:[%s9610_s8 + $0xa0] sm:$0xf0] }
 0x378   : > { %4108 = vmatpush.bf16.msra.mxu2 %v5857_v53  ;;  %4121 = vmatpush.bf16.msra.mxu0 %v6081_v54  ;;  %v3779_v34 = vpop.f32.mrf.mxu3  ;;  %v5492_v53 = vld [vmem:[%s9610_s8 + $0x248] sm:$0xf]  ;;  %v6389_v54 = vld [vmem:[%s9610_s8 + $0x260] sm:$0xf0] }
 0x379   : > { %4064 = vmatmul.bf16.vlgmr.msrb.gmra.mxu2 %v8575_v26  ;;  %4077 = vmatmul.bf16.vlgmr.msrb.gmra.mxu0 %v8577_v27  ;;  %v3780_v39 = vadd.f32 %v3779_v34, %v2604_v29  ;;  %v3805_v40 = vpop.f32.mrf.mxu2  ;;  %v5660_v29 = vld [vmem:[%s9610_s8 + $0x398] sm:$0xf] }
 0x37a   : > { %v3794_v43 = vpop.f32.mrf.mxu1 }
 0x37b   : > { %4083 = vmatpush.bf16.msra.mxu3 %v5381_v63  ;;  %4096 = vmatpush.bf16.msra.mxu1 %v5605_v0  ;;  %v3793_v44 = vadd.f32 %v3792_v11, %v3780_v39  ;;  %v3820_v24 = vpop.f32.mrf.mxu0  ;;  %v5269_v63 = vor.u32 %v6333_v49, %v5268_v48  ;;  %v5493_v0 = vor.u32 %v6389_v54, %v5492_v53 }
 0x37c   : > { %4109 = vmatpush.bf16.msra.mxu2 %v5829_v3  ;;  %4122 = vmatpush.bf16.msra.mxu0 %v6053_v4  ;;  %v5464_v3 = vld [vmem:[%s9610_s8 + $0x210] sm:$0xf]  ;;  %v5717_v4 = vor.u32 %v6445_v59, %v5716_v56 }
 0x37d   : > { %v3806_v58 = vadd.f32 %v3805_v40, %v3793_v44 }
 0x37f   : > { %4084 = vmatpush.bf16.msra.mxu3 %v5353_v13  ;;  %4097 = vmatpush.bf16.msra.mxu1 %v5577_v14  ;;  %v3819_v62 = vadd.f32 %v3818_v16, %v3806_v58  ;;  %v5912_v13 = vld [vmem:[%s9610_s8 + $0x590] sm:$0xf]  ;;  %v6494_v14 = vld [vmem:[%s9610_s8 + $0x5a8] sm:$0xf0] }
 0x380   : > { %4110 = vmatpush.bf16.msra.mxu2 %v5801_v19  ;;  %4123 = vmatpush.bf16.msra.mxu0 %v6025_v57  ;;  %v3781_v6 = vpop.f32.mrf.mxu3  ;;  %v5465_v19 = vor.u32 %v6382_v8, %v5464_v3  ;;  %v5913_v23 = vor.u32 %v6494_v14, %v5912_v13 }
 0x381   : > { %v4134_v10 = vsub.f32 0.0, %v3819_v62  ;;  %v3807_v11 = vpop.f32.mrf.mxu2 }
 0x382   : > { %v3844_v16 = vpop.f32.mrf.mxu1 }
 0x383   : > { %4085 = vmatpush.bf16.msra.mxu3 %v5325_v30  ;;  %4098 = vmatpush.bf16.msra.mxu1 %v5549_v35  ;;  %v4141_v17 = vmul.f32 1.442695, %v4134_v10  ;;  %v3870_v57 = vpop.f32.mrf.mxu0  ;;  %v6431_v30 = vld [vmem:[%s9610_s8 + $0x3b0] sm:$0xf0]  ;;  %v5884_v35 = vld [vmem:[%s9610_s8 + $0x558] sm:$0xf] }
 0x384   : > { %4111 = vmatpush.bf16.msra.mxu2 %v5773_v31  ;;  %4124 = vmatpush.bf16.msra.mxu0 %v5997_v33  ;;  %v5213_v31 = vor.u32 %v6319_v20, %v5212_v7  ;;  %v5437_v33 = vor.u32 %v6375_v28, %v5436_v21  ;;  %v5661_v34 = vor.u32 %v6431_v30, %v5660_v29  ;;  %v2608_v30 = vperm.slane %v9422_v12, 4 }
 0x385   : > { %6589 = vpow2.f32 %v4141_v17  ;;  %v5885_v36 = vor.u32 %v6487_v25, %v5884_v35 }
 0x387   : > { %4086 = vmatpush.bf16.msra.mxu3 %v5297_v46  ;;  %4099 = vmatpush.bf16.msra.mxu1 %v5521_v47 }
 0x388   : > { %4112 = vmatpush.bf16.msra.mxu2 %v5745_v50  ;;  %4125 = vmatpush.bf16.msra.mxu0 %v5969_v52  ;;  %v3831_v38 = vpop.f32.mrf.mxu3 }
 0x389   : > { %v3832_v37 = vadd.f32 %v3831_v38, %v2605_v32  ;;  %v3857_v39 = vpop.f32.mrf.mxu2 }
 0x38a   : > { %v3846_v40 = vpop.f32.mrf.mxu1 }
 0x38b   : > { %4087 = vmatpush.bf16.msra.mxu3 %v5269_v63  ;;  %4100 = vmatpush.bf16.msra.mxu1 %v5493_v0  ;;  %v6590_v41 = vpop.eup %6589  ;;  %v3845_v42 = vadd.f32 %v3844_v16, %v3832_v37  ;;  %v3872_v45 = vpop.f32.mrf.mxu0 }
 0x38c   : > { %4113 = vmatpush.bf16.msra.mxu2 %v5717_v4  ;;  %4126 = vmatpush.bf16.msra.mxu0 %v5941_v5  ;;  %v4155_v43 = vadd.f32 1.0, %v6590_v41 }
 0x38d   : > { %v3858_v44 = vadd.f32 %v3857_v39, %v3845_v42 }
 0x38e   : > { %6591 = vrcp.f32 %v4155_v43 }
 0x38f   : > { %4088 = vmatpush.bf16.msra.mxu3 %v5241_v18  ;;  %4101 = vmatpush.bf16.msra.mxu1 %v5465_v19  ;;  %v3871_v46 = vadd.f32 %v3870_v57, %v3858_v44 }
 0x390   : > { %4114 = vmatpush.bf16.msra.mxu2 %v5689_v22  ;;  %4127 = vmatpush.bf16.msra.mxu0 %v5913_v23  ;;  %v3833_v47 = vpop.f32.mrf.mxu3 }
 0x391   : > { %v4135_v24 = vsub.f32 0.0, %v3871_v46  ;;  %v3859_v48 = vpop.f32.mrf.mxu2  ;;  %v2609_v47 = vperm.slane %v9422_v12, 5 }
 0x393   : > { %4089 = vmatpush.bf16.msra.mxu3 %v5213_v31  ;;  %4102 = vmatpush.bf16.msra.mxu1 %v5437_v33  ;;  %v4143_v49 = vmul.f32 1.442695, %v4135_v24  ;;  %v3896_v52 = vpop.f32.mrf.mxu1 }
 0x394   : > { %4115 = vmatpush.bf16.msra.mxu2 %v5661_v34  ;;  %4128 = vmatpush.bf16.msra.mxu0 %v5885_v36  ;;  %v6592_v50 = vpop.eup %6591 }
 0x395   : > { %4169 = vst [vmem:[%s9553_s12] sm:$0xff] %v6592_v50  ;;  %6593 = vpow2.f32 %v4143_v49 }
 0x396   : > { %4090 = vmatmul.bf16.vlgmr.msra.gmra.mxu3 %v8571_v15  ;;  %4103 = vmatmul.bf16.vlgmr.msra.gmra.mxu1 %v8573_v51  ;;  %v3922_v53 = vpop.f32.mrf.mxu0  ;;  %v2606_v15 = vperm.slane %v9422_v12, 2 }
 0x397   : > { %4116 = vmatmul.bf16.vlgmr.msra.gmra.mxu2 %v8575_v26  ;;  %4129 = vmatmul.bf16.vlgmr.msra.gmra.mxu0 %v8577_v27 }
 0x399   : > { %v3883_v51 = vpop.f32.mrf.mxu3 }
 0x39a   : > { %v3884_v26 = vadd.f32 %v3883_v51, %v2606_v15 }
 0x39b   : > { %v6594_v54 = vpop.eup %6593  ;;  %v3898_v58 = vpop.f32.mrf.mxu1 }
 0x39c   : > { %v3909_v56 = vpop.f32.mrf.mxu2  ;;  %v4156_v27 = vadd.f32 1.0, %v6594_v54  ;;  %v3897_v59 = vadd.f32 %v3896_v52, %v3884_v26 }
 0x39e   : > { %v3924_v60 = vpop.f32.mrf.mxu0  ;;  %6595 = vrcp.f32 %v4156_v27  ;;  %v3910_v61 = vadd.f32 %v3909_v56, %v3897_v59 }
 0x3a0   : > { %v3923_v62 = vadd.f32 %v3922_v53, %v3910_v61 }
 0x3a1   : > { %v3885_v63 = vpop.f32.mrf.mxu3 }
 0x3a2   : > { %v4136_v0 = vsub.f32 0.0, %v3923_v62  ;;  %v2610_v63 = vperm.slane %v9422_v12, 6 }
 0x3a4   : > { %v3911_v1 = vpop.f32.mrf.mxu2  ;;  %v6596_v2 = vpop.eup %6595  ;;  %v4145_v3 = vmul.f32 1.442695, %v4136_v0 }
 0x3a5   : > { %4170 = vst [vmem:[%s9553_s12 + $0x8] sm:$0xff] %v6596_v2 }
 0x3a6   : > { %6597 = vpow2.f32 %v4145_v3 }
 0x3ac   : > { %v6598_v4 = vpop.eup %6597 }
 0x3ad   : > { %v4157_v5 = vadd.f32 1.0, %v6598_v4 }
 0x3af   : > { %6599 = vrcp.f32 %v4157_v5 }
 0x3b3   : > { %v3948_v6 = vpop.f32.mrf.mxu1 }
 0x3b5   : > { %v6600_v55 = vpop.eup %6599 }
 0x3b6   : > { %v3974_v8 = vpop.f32.mrf.mxu0  ;;  %4171 = vst [vmem:[%s9553_s12 + $0x10] sm:$0xff] %v6600_v55 }
 0x3b9   : > { %v3935_v10 = vpop.f32.mrf.mxu3 }
 0x3ba   : > { %v3936_v11 = vadd.f32 %v3935_v10, %v2607_v9 }
 0x3bb   : > { %v3950_v14 = vpop.f32.mrf.mxu1 }
 0x3bc   : > { %v3961_v13 = vpop.f32.mrf.mxu2  ;;  %v3949_v16 = vadd.f32 %v3948_v6, %v3936_v11 }
 0x3be   : > { %v3976_v7 = vpop.f32.mrf.mxu0  ;;  %v3962_v17 = vadd.f32 %v3961_v13, %v3949_v16 }
 0x3c0   : > { %v3975_v18 = vadd.f32 %v3974_v8, %v3962_v17 }
 0x3c1   : > { %v3937_v19 = vpop.f32.mrf.mxu3 }
 0x3c2   : > { %v4137_v57 = vsub.f32 0.0, %v3975_v18 }
 0x3c4   : > { %v3963_v20 = vpop.f32.mrf.mxu2  ;;  %v4147_v21 = vmul.f32 1.442695, %v4137_v57 }
 0x3c6   : > { %6601 = vpow2.f32 %v4147_v21 }
 0x3cc   : > { %v6602_v22 = vpop.eup %6601 }
 0x3cd   : > { %v4158_v23 = vadd.f32 1.0, %v6602_v22 }
 0x3cf   : > { %6603 = vrcp.f32 %v4158_v23 }
 0x3d3   : > { %v4000_v28 = vpop.f32.mrf.mxu1 }
 0x3d5   : > { %v6604_v35 = vpop.eup %6603 }
 0x3d6   : > { %v4026_v29 = vpop.f32.mrf.mxu0  ;;  %4172 = vst [vmem:[%s9553_s12 + $0x18] sm:$0xff] %v6604_v35 }
 0x3d9   : > { %v3987_v25 = vpop.f32.mrf.mxu3 }
 0x3da   : > { %v3988_v32 = vadd.f32 %v3987_v25, %v2608_v30 }
 0x3db   : > { %v4002_v33 = vpop.f32.mrf.mxu1 }
 0x3dc   : > { %v4013_v31 = vpop.f32.mrf.mxu2  ;;  %v4001_v34 = vadd.f32 %v4000_v28, %v3988_v32 }
 0x3de   : > { %v4028_v36 = vpop.f32.mrf.mxu0  ;;  %v4014_v38 = vadd.f32 %v4013_v31, %v4001_v34 }
 0x3e0   : > { %v4027_v37 = vadd.f32 %v4026_v29, %v4014_v38 }
 0x3e1   : > { %v3989_v39 = vpop.f32.mrf.mxu3 }
 0x3e2   : > { %v4138_v40 = vsub.f32 0.0, %v4027_v37 }
 0x3e4   : > { %v4015_v41 = vpop.f32.mrf.mxu2  ;;  %v4149_v42 = vmul.f32 1.442695, %v4138_v40 }
 0x3e6   : > { %6605 = vpow2.f32 %v4149_v42 }
 0x3ec   : > { %v6606_v45 = vpop.eup %6605 }
 0x3ed   : > { %v4159_v43 = vadd.f32 1.0, %v6606_v45 }
 0x3ef   : > { %6607 = vrcp.f32 %v4159_v43 }
 0x3f3   : > { %v4052_v44 = vpop.f32.mrf.mxu1 }
 0x3f5   : > { %v6608_v24 = vpop.eup %6607 }
 0x3f6   : > { %v4078_v46 = vpop.f32.mrf.mxu0  ;;  %4173 = vst [vmem:[%s9553_s12 + $0x20] sm:$0xff] %v6608_v24 }
 0x3f9   : > { %v4039_v48 = vpop.f32.mrf.mxu3 }
 0x3fa   : > { %v4040_v49 = vadd.f32 %v4039_v48, %v2609_v47 }
 0x3fb   : > { %v4054_v52 = vpop.f32.mrf.mxu1 }
 0x3fc   : > { %v4065_v50 = vpop.f32.mrf.mxu2  ;;  %v4053_v53 = vadd.f32 %v4052_v44, %v4040_v49 }
 0x3fe   : > { %v4080_v15 = vpop.f32.mrf.mxu0  ;;  %v4066_v51 = vadd.f32 %v4065_v50, %v4053_v53 }
 0x400   : > { %v4079_v54 = vadd.f32 %v4078_v46, %v4066_v51 }
 0x401   : > { %v4041_v26 = vpop.f32.mrf.mxu3 }
 0x402   : > { %v4139_v56 = vsub.f32 0.0, %v4079_v54 }
 0x404   : > { %v4067_v27 = vpop.f32.mrf.mxu2  ;;  %v4151_v58 = vmul.f32 1.442695, %v4139_v56 }
 0x406   : > { %6609 = vpow2.f32 %v4151_v58 }
 0x40c   : > { %v6610_v59 = vpop.eup %6609 }
 0x40d   : > { %v4160_v60 = vadd.f32 1.0, %v6610_v59 }
 0x40f   : > { %6611 = vrcp.f32 %v4160_v60 }
 0x413   : > { %v4104_v61 = vpop.f32.mrf.mxu1 }
 0x414   : > { %v4130_v62 = vpop.f32.mrf.mxu0 }
 0x415   : > { %v6612_v0 = vpop.eup %6611 }
 0x416   : > { %4174 = vst [vmem:[%s9553_s12 + $0x28] sm:$0xff] %v6612_v0 }
 0x419   : > { %v4091_v1 = vpop.f32.mrf.mxu3 }
 0x41a   : > { %v4092_v2 = vadd.f32 %v4091_v1, %v2610_v63  ;;  %v4117_v3 = vpop.f32.mrf.mxu2 }
 0x41b   : > { %v4106_v4 = vpop.f32.mrf.mxu1 }
 0x41c   : > { %v4105_v5 = vadd.f32 %v4104_v61, %v4092_v2  ;;  %v4132_v6 = vpop.f32.mrf.mxu0 }
 0x41e   : > { %v4118_v8 = vadd.f32 %v4117_v3, %v4105_v5 }
 0x420   : > { %v4131_v9 = vadd.f32 %v4130_v62, %v4118_v8 }
 0x421   : > { %v4093_v55 = vpop.f32.mrf.mxu3 }
 0x422   : > { %v4140_v10 = vsub.f32 0.0, %v4131_v9  ;;  %v4119_v11 = vpop.f32.mrf.mxu2 }
 0x424   : > { %v4153_v13 = vmul.f32 1.442695, %v4140_v10 }
 0x426   : > { %6613 = vpow2.f32 %v4153_v13 }
 0x42c   : > { %v6614_v12 = vpop.eup %6613 }
 0x42d   : > { %v4161_v14 = vadd.f32 1.0, %v6614_v12 }
 0x42f   : > { %6615 = vrcp.f32 %v4161_v14 }
 0x435   : > { %v6616_v16 = vpop.eup %6615 }
 0x436   : > { %4175 = vst.msk [vmem:[%s9553_s12 + $0x30] sm:$0xff] %vm1576_vm0, %v6616_v16 }
 0x437   : > { %6644 = shalt.err (!%p6641_p3)
}
 0x438   : > { %6540 = dma.vmem_to_hbm [thread:$0]  (%p6778_p5), %s4191_s11, 896, %s4193_s27, %s4177_s0  }
 0x439 PF: > { %p6546_p4 = scmp.ge.s32.totalorder %s6679_s16, 2  ;;  %s4204_s21 = sand.u32 1, %s6667_s13  }
 0x43a   : > { %s4205_s12 = scalar_lea.sflag [#allocation3], %s4204_s21 }
 0x43b   : > { %p6543_p7 = pnand %p6546_p4, %p6782_p6 }
 0x43d   : > { %p6544_p8 = pneg %p6543_p7 }
 0x43f   : > { %6662 = dma.done.wait (%p6544_p8), %s4205_s12, 896  }
 0x440   : > { %6664 = vsyncadd (%p6544_p8), %s4205_s12, 4294966400  ;;  %s9620_s26 = sld [smem:[#allocation5_spill]]  ;;  %p20_p9 = scmp.ge.s32.totalorder %s6765_s19, 4  }
 0x441   : > { %s9621_s15 = sld [smem:[#allocation6_spill]]  ;;  %s9622_s13 = smov %s6671_s14 }
 0x442   : > { %s9624_s16 = smov %s6765_s19  ;;  %22 = sbr.rel (!%p20_p9) target bundleno = 5 (0x5), region = 98 }
 0x446   : > { %s9623_s14 = smov %s9620_s26 }
 0x447   :  { %4211 = vsyncpa [#allocation3], 1 }
 0x448   :  { %4213 = vsyncpa [#allocation3 + $0x1], 1 }

</bundles_post_ra>
